<compile_context>
chip_gen: v6e
topology: v6e:2x2x1
jax: 0.10.0
libtpu: 0.0.40
codegen_flags: <defaults>
</compile_context>

<pallas_src>
import functools

import numpy as np
import jax
import jax.numpy as jnp
from jax.experimental import pallas as pl
from jax.experimental.pallas import tpu as pltpu

NW_PAD = 8  # fixed maximum number of lattice word states per step (sublane tile)


def _seq_kernel(T, hp, has_words, unroll, *refs):
    """Whole-sequence lattice-LSTM recurrence in ONE kernel invocation."""
    if has_words:
        (emb_ref, we_ref, b_ref, h0_ref, c0_ref, wh_ref, wcell_ref, wwt_ref,
         nw_ref, hseq_ref, cseq_ref, zin_ref, h_st, c_st) = refs
    else:
        (emb_ref, we_ref, b_ref, h0_ref, c0_ref, wh_ref,
         hseq_ref, cseq_ref, zin_ref, h_st, c_st) = refs

    # One-shot batched input projection for ALL timesteps: bf16 x bf16 -> f32
    # accumulate on the MXU, plus bias.  Stays in VMEM scratch for the loop.
    zin_ref[...] = (jnp.dot(emb_ref[...], we_ref[...],
                            preferred_element_type=jnp.float32) + b_ref[...])
    h_st[...] = h0_ref[...]
    c_st[...] = c0_ref[...]

    hp3 = 3 * hp

    def step(t, carry):
        # Recurrent part: only h @ W_h per step, all f32 (cheap at M=1, and no
        # bf16 rounding feeding back through the recurrence).  z: [1, 4*HP].
        z = zin_ref[pl.ds(t, 1), :] + jnp.dot(
            h_st[...], wh_ref[...], preferred_element_type=jnp.float32)

        # Gate order (f, i, o, c): one fused sigmoid over the contiguous f|i|o
        # block (3 vregs), tanh only on the last HP slice.
        gates = jax.nn.sigmoid(z[:, :hp3])
        f = gates[:, 0 * hp:1 * hp]
        i = gates[:, 1 * hp:2 * hp]
        o = gates[:, 2 * hp:3 * hp]
        cg = jnp.tanh(z[:, hp3:])

        # Plain LSTM cell update (overwritten below if this step has words).
        c_prev = c_st[...]
        c_st[...] = f * c_prev + i * cg

        if has_words:
            nw = nw_ref[t]  # number of word states at this step (SMEM scalar)

            @pl.when(nw > 0)
            def _lattice():
                wts = wwt_ref[t]       # [NW_PAD, HP] f32 (VMEM-resident)
                cells = wcell_ref[t]   # [NW_PAD, HP] f32
                row = jax.lax.broadcasted_iota(jnp.int32, wts.shape, 0)
                wts_m = jnp.where(row < nw, wts, -jnp.inf)  # mask padded rows
                # softmax over {input gate i} U {word weights} per hidden unit,
                # without concatenating along the (ragged) sublane axis.
                m = jnp.maximum(i, jnp.max(wts_m, axis=0, keepdims=True))
                e_i = jnp.exp(i - m)
                e_w = jnp.exp(wts_m - m)
                denom = e_i + jnp.sum(e_w, axis=0, keepdims=True)
                num = e_i * cg + jnp.sum(e_w * cells, axis=0, keepdims=True)
                c_st[...] = num * pl.reciprocal(denom, approx=True)

        c_cur = c_st[...]
        h_cur = o * jnp.tanh(c_cur)
        h_st[...] = h_cur
        # Lane-dense (1, HP) row stores into the VMEM-resident outputs; Pallas
        # writes the whole (T, HP) slabs back to HBM once, after the kernel.
        hseq_ref[pl.ds(t, 1), :] = h_cur
        cseq_ref[pl.ds(t, 1), :] = c_cur
        return carry

    jax.lax.fori_loop(0, T, step, 0, unroll=unroll)


def char_lstm_sequence_forward(chars, h_pre, c_pre, params, words_per_step=None):
    """Applies CharLSTM.forward to every char in `chars` in ONE Pallas call.

    chars:          [T] int32 char indices
    h_pre, c_pre:   [1, H] float32 initial recurrent state
    params:         (embed_table[bf16, char_size, E], w_e[bf16, E, 4H],
                     w_h[f32, H, 4H], b[f32, 1, 4H])   gate order (f, i, o, c)
    words_per_step: length-T list; each entry a list of (cell_state[1,H],
                    weight[1,H]) pairs (possibly empty), per the module API.
    Returns (h_seq[T, H], c_seq[T, H]) float32.
    """
    embed_table, w_e, w_h, b = params
    T = int(chars.shape[0])
    E = int(embed_table.shape[1])
    H = int(h_pre.shape[1])
    HP = ((H + 127) // 128) * 128        # lane-pad hidden dim to 128
    HP4 = 4 * HP

    if words_per_step is None:
        words_per_step = [[] for _ in range(T)]
    has_words = any(len(w) > 0 for w in words_per_step)

    # ---- glue: embedding gather + padding to TPU-friendly layout -------------
    emb_seq = jnp.take(embed_table, chars, axis=0)            # [T, E] bf16

    def pad_gate_cols(w):
        # [rows, 4H] -> [rows, 4*HP]; each gate block padded to HP columns.
        return jnp.concatenate(
            [jnp.pad(w[:, g * H:(g + 1) * H], ((0, 0), (0, HP - H)))
             for g in range(4)], axis=1)

    w_e_p = pad_gate_cols(w_e)                                          # bf16 [E, 4HP]
    w_h_p = jnp.pad(pad_gate_cols(w_h.astype(jnp.float32)),
                    ((0, HP - H), (0, 0)))                              # f32 [HP, 4HP]
    b_p = pad_gate_cols(b.astype(jnp.float32))                          # f32 [1, 4HP]
    h0_p = jnp.pad(h_pre.astype(jnp.float32), ((0, 0), (0, HP - H)))
    c0_p = jnp.pad(c_pre.astype(jnp.float32), ((0, 0), (0, HP - H)))

    vmem = pltpu.MemorySpace.VMEM
    smem = pltpu.MemorySpace.SMEM

    out_shape = (jax.ShapeDtypeStruct((T, HP), jnp.float32),
                 jax.ShapeDtypeStruct((T, HP), jnp.float32))
    out_specs = (pl.BlockSpec(memory_space=vmem),    # h_seq: VMEM-resident, one writeback
                 pl.BlockSpec(memory_space=vmem))    # c_seq
    scratch = [pltpu.VMEM((T, HP4), jnp.float32),    # z_in for all timesteps
               pltpu.VMEM((1, HP), jnp.float32),     # h state
               pltpu.VMEM((1, HP), jnp.float32)]     # c state

    unroll = T <= 32                                  # char sequences are short

    if has_words:
        # Dense, fixed-shape lattice inputs + per-step counts (SMEM).
        wcells = np.zeros((T, NW_PAD, HP), np.float32)
        wwts = np.zeros((T, NW_PAD, HP), np.float32)
        nw = np.zeros((T,), np.int32)
        for ti, words in enumerate(words_per_step):
            assert len(words) <= NW_PAD, "increase NW_PAD"
            nw[ti] = len(words)
            for j, (cs, wt) in enumerate(words):
                wcells[ti, j, :H] = np.asarray(cs, np.float32)[0]
                wwts[ti, j, :H] = np.asarray(wt, np.float32)[0]
        wcells, wwts, nw = jnp.asarray(wcells), jnp.asarray(wwts), jnp.asarray(nw)

        in_specs = ([pl.BlockSpec(memory_space=vmem)] * 8      # all tensors resident
                    + [pl.BlockSpec(memory_space=smem)])       # per-step word counts
        args = (emb_seq, w_e_p, b_p, h0_p, c0_p, w_h_p, wcells, wwts, nw)
    else:
        in_specs = [pl.BlockSpec(memory_space=vmem)] * 6
        args = (emb_seq, w_e_p, b_p, h0_p, c0_p, w_h_p)

    kernel = functools.partial(_seq_kernel, T, HP, has_words, unroll)
    h_seq, c_seq = pl.pallas_call(
        kernel,
        out_shape=out_shape,
        in_specs=in_specs,
        out_specs=out_specs,
        scratch_shapes=scratch,
        compiler_params=pltpu.CompilerParams(vmem_limit_bytes=64 << 20),
    )(*args)
    return h_seq[:, :H], c_seq[:, :H]


def ref_char_lstm_step(emb, h_pre, c_pre, w_e, w_h, b, words):
    """Pure-JAX f32 per-step reference (mirrors CharLSTM.forward)."""
    H = h_pre.shape[1]
    z = emb @ w_e + h_pre @ w_h + b
    f = jax.nn.sigmoid(z[:, 0 * H:1 * H])
    i = jax.nn.sigmoid(z[:, 1 * H:2 * H])
    o = jax.nn.sigmoid(z[:, 2 * H:3 * H])
    cg = jnp.tanh(z[:, 3 * H:4 * H])
    if words:
        wts = jnp.concatenate([i] + [w for _, w in words], axis=0)
        wts = jax.nn.softmax(wts, axis=0)
        cs = jnp.concatenate([cg] + [c for c, _ in words], axis=0)
        c_cur = jnp.sum(wts * cs, axis=0, keepdims=True)
    else:
        c_cur = f * c_pre + i * cg
    h_cur = o * jnp.tanh(c_cur)
    return h_cur, c_cur


if __name__ == "__main__":
    key = jax.random.PRNGKey(0)
    char_size, E, H, T = 64, 16, 32, 8
    ks = jax.random.split(key, 10)

    # Parameters in fused-gate layout (gate order f, i, o, c).  The embedding
    # table and W_e (one-shot batched projection) are bf16 (MXU-native); W_h
    # (recurrent matmul) and the bias stay f32.
    embed_table = (0.1 * jax.random.normal(ks[0], (char_size, E), jnp.float32)
                   ).astype(jnp.bfloat16)
    w_e = (0.1 * jax.random.normal(ks[1], (E, 4 * H), jnp.float32)
           ).astype(jnp.bfloat16)
    w_h = 0.1 * jax.random.normal(ks[2], (H, 4 * H), jnp.float32)
    b = 0.1 * jax.random.normal(ks[3], (1, 4 * H), jnp.float32)
    params = (embed_table, w_e, w_h, b)

    chars = jax.random.randint(ks[4], (T,), 0, char_size, dtype=jnp.int32)
    h0 = jax.random.normal(ks[5], (1, H), jnp.float32)
    c0 = jax.random.normal(ks[6], (1, H), jnp.float32)

    # Lattice word states with a variable count per step (including none).
    n_words = [0, 2, 0, 3, 1, 0, 2, 3]
    words_per_step = []
    for t in range(T):
        ws = []
        for j in range(n_words[t]):
            kc, kw = jax.random.split(jax.random.fold_in(ks[7], 10 * t + j))
            ws.append((jax.random.normal(kc, (1, H), jnp.float32),
                       jax.random.normal(kw, (1, H), jnp.float32)))
        words_per_step.append(ws)

    # f32 copies of the params for the pure-JAX reference.
    emb_f32 = embed_table.astype(jnp.float32)
    we_f32 = w_e.astype(jnp.float32)
    wh_f32 = w_h.astype(jnp.float32)

    def run_ref(wps):
        h, c = h0, c0
        hs, cs = [], []
        for t in range(T):
            e = emb_f32[chars[t]][None, :]
            h, c = ref_char_lstm_step(e, h, c, we_f32, wh_f32, b, wps[t])
            hs.append(h)
            cs.append(c)
        return jnp.concatenate(hs, 0), jnp.concatenate(cs, 0)

    # Path 1: lattice sequence (mixed per-step word counts, including zero).
    h_seq, c_seq = char_lstm_sequence_forward(chars, h0, c0, params,
                                              words_per_step)
    jax.block_until_ready((h_seq, c_seq))
    h_ref, c_ref = run_ref(words_per_step)
    # bf16 input-projection operands vs f32 reference.
    assert jnp.allclose(h_seq, h_ref, atol=1e-2), "h mismatch (lattice)"
    assert jnp.allclose(c_seq, c_ref, atol=1e-2), "c mismatch (lattice)"

    # Path 2: plain LSTM sequence (no word states at all -> specialized kernel
    # without the word inputs / word-count SMEM array).
    h_seq2, c_seq2 = char_lstm_sequence_forward(chars, h0, c0, params)
    jax.block_until_ready((h_seq2, c_seq2))
    h_ref2, c_ref2 = run_ref([[] for _ in range(T)])
    assert jnp.allclose(h_seq2, h_ref2, atol=1e-2), "h mismatch (plain)"
    assert jnp.allclose(c_seq2, c_ref2, atol=1e-2), "c mismatch (plain)"

    print("KERNEL_OK")
</pallas_src>

<mosaic_0001>
module attributes {stable_mosaic.version = 11 : i64} {
  func.func @_seq_kernel(%arg0: memref<8x16xbf16, #tpu.memory_space<vmem>>, %arg1: memref<16x512xbf16, #tpu.memory_space<vmem>>, %arg2: memref<1x512xf32, #tpu.memory_space<vmem>>, %arg3: memref<1x128xf32, #tpu.memory_space<vmem>>, %arg4: memref<1x128xf32, #tpu.memory_space<vmem>>, %arg5: memref<128x512xf32, #tpu.memory_space<vmem>>, %arg6: memref<8x8x128xf32, #tpu.memory_space<vmem>>, %arg7: memref<8x8x128xf32, #tpu.memory_space<vmem>>, %arg8: memref<8xi32, #tpu.memory_space<smem>>, %arg9: memref<8x128xf32, #tpu.memory_space<vmem>>, %arg10: memref<8x128xf32, #tpu.memory_space<vmem>>, %arg11: memref<8x512xf32, #tpu.memory_space<vmem>>, %arg12: memref<1x128xf32, #tpu.memory_space<vmem>>, %arg13: memref<1x128xf32, #tpu.memory_space<vmem>>) attributes {dimension_semantics = [], scalar_prefetch = 0 : i64, scratch_operands = 3 : i64, tpu.core_type = #tpu.core_type<tc>} {
    %c0 = arith.constant 0 : index
    %c0_0 = arith.constant 0 : index
    %0 = vector.load %arg0[%c0, %c0_0] : memref<8x16xbf16, #tpu.memory_space<vmem>>, vector<8x16xbf16>
    %c0_1 = arith.constant 0 : index
    %c0_2 = arith.constant 0 : index
    %1 = vector.load %arg1[%c0_1, %c0_2] : memref<16x512xbf16, #tpu.memory_space<vmem>>, vector<16x512xbf16>
    %cst = arith.constant dense<0.000000e+00> : vector<8x512xf32>
    %2 = tpu.matmul %0, %1, %cst {dimension_numbers = #tpu.dot_dimension_numbers<[1], [0], [0], [1], [0, 0, 1, 1], [], []>} : vector<8x16xbf16>, vector<16x512xbf16>, vector<8x512xf32> -> vector<8x512xf32>
    %c0_3 = arith.constant 0 : index
    %c0_4 = arith.constant 0 : index
    %3 = vector.load %arg2[%c0_3, %c0_4] : memref<1x512xf32, #tpu.memory_space<vmem>>, vector<1x512xf32>
    %4 = vector.broadcast %3 : vector<1x512xf32> to vector<8x512xf32>
    %5 = arith.addf %2, %4 : vector<8x512xf32>
    %c0_5 = arith.constant 0 : index
    %c0_6 = arith.constant 0 : index
    %6 = vector.load %arg11[%c0_5, %c0_6] : memref<8x512xf32, #tpu.memory_space<vmem>>, vector<8x512xf32>
    tpu.vector_store %arg11[%c0_5, %c0_6], %5 {strides = array<i32>} : memref<8x512xf32, #tpu.memory_space<vmem>>, vector<8x512xf32>,
    %c0_7 = arith.constant 0 : index
    %c0_8 = arith.constant 0 : index
    %7 = vector.load %arg3[%c0_7, %c0_8] : memref<1x128xf32, #tpu.memory_space<vmem>>, vector<1x128xf32>
    %c0_9 = arith.constant 0 : index
    %c0_10 = arith.constant 0 : index
    %8 = vector.load %arg12[%c0_9, %c0_10] : memref<1x128xf32, #tpu.memory_space<vmem>>, vector<1x128xf32>
    tpu.vector_store %arg12[%c0_9, %c0_10], %7 {strides = array<i32>} : memref<1x128xf32, #tpu.memory_space<vmem>>, vector<1x128xf32>,
    %c0_11 = arith.constant 0 : index
    %c0_12 = arith.constant 0 : index
    %9 = vector.load %arg4[%c0_11, %c0_12] : memref<1x128xf32, #tpu.memory_space<vmem>>, vector<1x128xf32>
    %c0_13 = arith.constant 0 : index
    %c0_14 = arith.constant 0 : index
    %10 = vector.load %arg13[%c0_13, %c0_14] : memref<1x128xf32, #tpu.memory_space<vmem>>, vector<1x128xf32>
    tpu.vector_store %arg13[%c0_13, %c0_14], %9 {strides = array<i32>} : memref<1x128xf32, #tpu.memory_space<vmem>>, vector<1x128xf32>,
    %c0_i32 = arith.constant 0 : i32
    %11 = arith.index_cast %c0_i32 : i32 to index
    %c0_15 = arith.constant 0 : index
    %12 = vector.load %arg11[%11, %c0_15] : memref<8x512xf32, #tpu.memory_space<vmem>>, vector<1x512xf32>
    %c0_16 = arith.constant 0 : index
    %c0_17 = arith.constant 0 : index
    %13 = vector.load %arg12[%c0_16, %c0_17] : memref<1x128xf32, #tpu.memory_space<vmem>>, vector<1x128xf32>
    %c0_18 = arith.constant 0 : index
    %c0_19 = arith.constant 0 : index
    %14 = vector.load %arg5[%c0_18, %c0_19] : memref<128x512xf32, #tpu.memory_space<vmem>>, vector<128x512xf32>
    %cst_20 = arith.constant dense<0.000000e+00> : vector<1x512xf32>
    %15 = tpu.matmul %13, %14, %cst_20 {dimension_numbers = #tpu.dot_dimension_numbers<[1], [0], [0], [1], [0, 0, 1, 1], [], []>} : vector<1x128xf32>, vector<128x512xf32>, vector<1x512xf32> -> vector<1x512xf32>
    %16 = arith.addf %12, %15 : vector<1x512xf32>
    %17 = vector.extract_strided_slice %16 {offsets = [0, 0], sizes = [1, 384], strides = [1, 1]} : vector<1x512xf32> to vector<1x384xf32>
    %18 = arith.negf %17 : vector<1x384xf32>
    %19 = math.exp %18 : vector<1x384xf32>
    %cst_21 = arith.constant 1.000000e+00 : f32
    %20 = vector.broadcast %cst_21 : f32 to vector<1x384xf32>
    %21 = arith.addf %20, %19 : vector<1x384xf32>
    %22 = arith.divf %20, %21 : vector<1x384xf32>
    %23 = vector.extract_strided_slice %22 {offsets = [0, 0], sizes = [1, 128], strides = [1, 1]} : vector<1x384xf32> to vector<1x128xf32>
    %24 = vector.extract_strided_slice %22 {offsets = [0, 128], sizes = [1, 128], strides = [1, 1]} : vector<1x384xf32> to vector<1x128xf32>
    %25 = vector.extract_strided_slice %22 {offsets = [0, 256], sizes = [1, 128], strides = [1, 1]} : vector<1x384xf32> to vector<1x128xf32>
    %26 = vector.extract_strided_slice %16 {offsets = [0, 384], sizes = [1, 128], strides = [1, 1]} : vector<1x512xf32> to vector<1x128xf32>
    %27 = math.tanh %26 : vector<1x128xf32>
    %c0_22 = arith.constant 0 : index
    %c0_23 = arith.constant 0 : index
    %28 = vector.load %arg13[%c0_22, %c0_23] : memref<1x128xf32, #tpu.memory_space<vmem>>, vector<1x128xf32>
    %29 = arith.mulf %23, %28 : vector<1x128xf32>
    %30 = arith.mulf %24, %27 : vector<1x128xf32>
    %31 = arith.addf %29, %30 : vector<1x128xf32>
    %c0_24 = arith.constant 0 : index
    %c0_25 = arith.constant 0 : index
    %32 = vector.load %arg13[%c0_24, %c0_25] : memref<1x128xf32, #tpu.memory_space<vmem>>, vector<1x128xf32>
    tpu.vector_store %arg13[%c0_24, %c0_25], %31 {strides = array<i32>} : memref<1x128xf32, #tpu.memory_space<vmem>>, vector<1x128xf32>,
    %33 = arith.index_cast %c0_i32 : i32 to index
    %34 = memref.load %arg8[%33] : memref<8xi32, #tpu.memory_space<smem>>
    %c0_i32_26 = arith.constant 0 : i32
    %35 = arith.cmpi sgt, %34, %c0_i32_26 : i32
    %36 = arith.extui %35 : i1 to i32
    %c0_i32_27 = arith.constant 0 : i32
    %37 = arith.cmpi ne, %36, %c0_i32_27 : i32
    scf.if %37 {
      %291 = arith.index_cast %c0_i32 : i32 to index
      %c0_167 = arith.constant 0 : index
      %c0_168 = arith.constant 0 : index
      %292 = vector.load %arg7[%291, %c0_167, %c0_168] : memref<8x8x128xf32, #tpu.memory_space<vmem>>, vector<1x8x128xf32>
      %293 = vector.shape_cast %292 : vector<1x8x128xf32> to vector<8x128xf32>
      %294 = arith.index_cast %c0_i32 : i32 to index
      %c0_169 = arith.constant 0 : index
      %c0_170 = arith.constant 0 : index
      %295 = vector.load %arg6[%294, %c0_169, %c0_170] : memref<8x8x128xf32, #tpu.memory_space<vmem>>, vector<1x8x128xf32>
      %296 = vector.shape_cast %295 : vector<1x8x128xf32> to vector<8x128xf32>
      %297 = tpu.iota {dimensions = array<i32: 0>} : vector<8x128xi32>
      %298 = vector.broadcast %34 : i32 to vector<8x128xi32>
      %299 = arith.cmpi slt, %297, %298 : vector<8x128xi32>
      %cst_171 = arith.constant 0xFF800000 : f32
      %300 = vector.broadcast %cst_171 : f32 to vector<8x128xf32>
      %301 = arith.select %299, %293, %300 : vector<8x128xi1>, vector<8x128xf32>
      %cst_172 = arith.constant dense<0xFF800000> : vector<128xf32>
      %302 = vector.multi_reduction <maximumf>, %301, %cst_172 [0] : vector<8x128xf32> to vector<128xf32>
      %303 = vector.shape_cast %302 : vector<128xf32> to vector<1x128xf32>
      %304 = arith.maximumf %24, %303 : vector<1x128xf32>
      %305 = arith.subf %24, %304 : vector<1x128xf32>
      %306 = math.exp %305 : vector<1x128xf32>
      %307 = vector.broadcast %304 : vector<1x128xf32> to vector<8x128xf32>
      %308 = arith.subf %301, %307 : vector<8x128xf32>
      %309 = math.exp %308 : vector<8x128xf32>
      %cst_173 = arith.constant dense<0.000000e+00> : vector<128xf32>
      %310 = vector.multi_reduction <add>, %309, %cst_173 [0] : vector<8x128xf32> to vector<128xf32>
      %311 = vector.shape_cast %310 : vector<128xf32> to vector<1x128xf32>
      %312 = arith.addf %306, %311 : vector<1x128xf32>
      %313 = arith.mulf %306, %27 : vector<1x128xf32>
      %314 = arith.mulf %309, %296 : vector<8x128xf32>
      %cst_174 = arith.constant dense<0.000000e+00> : vector<128xf32>
      %315 = vector.multi_reduction <add>, %314, %cst_174 [0] : vector<8x128xf32> to vector<128xf32>
      %316 = vector.shape_cast %315 : vector<128xf32> to vector<1x128xf32>
      %317 = arith.addf %313, %316 : vector<1x128xf32>
      %318 = tpu.reciprocal %312 {approx = true} : vector<1x128xf32> -> vector<1x128xf32>
      %319 = arith.mulf %317, %318 : vector<1x128xf32>
      %c0_175 = arith.constant 0 : index
      %c0_176 = arith.constant 0 : index
      %320 = vector.load %arg13[%c0_175, %c0_176] : memref<1x128xf32, #tpu.memory_space<vmem>>, vector<1x128xf32>
      tpu.vector_store %arg13[%c0_175, %c0_176], %319 {strides = array<i32>} : memref<1x128xf32, #tpu.memory_space<vmem>>, vector<1x128xf32>,
    } else {
    }
    %c0_28 = arith.constant 0 : index
    %c0_29 = arith.constant 0 : index
    %38 = vector.load %arg13[%c0_28, %c0_29] : memref<1x128xf32, #tpu.memory_space<vmem>>, vector<1x128xf32>
    %39 = math.tanh %38 : vector<1x128xf32>
    %40 = arith.mulf %25, %39 : vector<1x128xf32>
    %c0_30 = arith.constant 0 : index
    %c0_31 = arith.constant 0 : index
    %41 = vector.load %arg12[%c0_30, %c0_31] : memref<1x128xf32, #tpu.memory_space<vmem>>, vector<1x128xf32>
    tpu.vector_store %arg12[%c0_30, %c0_31], %40 {strides = array<i32>} : memref<1x128xf32, #tpu.memory_space<vmem>>, vector<1x128xf32>,
    %42 = arith.index_cast %c0_i32 : i32 to index
    %c0_32 = arith.constant 0 : index
    %43 = vector.load %arg9[%42, %c0_32] : memref<8x128xf32, #tpu.memory_space<vmem>>, vector<1x128xf32>
    tpu.vector_store %arg9[%42, %c0_32], %40 {strides = array<i32>} : memref<8x128xf32, #tpu.memory_space<vmem>>, vector<1x128xf32>,
    %44 = arith.index_cast %c0_i32 : i32 to index
    %c0_33 = arith.constant 0 : index
    %45 = vector.load %arg10[%44, %c0_33] : memref<8x128xf32, #tpu.memory_space<vmem>>, vector<1x128xf32>
    tpu.vector_store %arg10[%44, %c0_33], %38 {strides = array<i32>} : memref<8x128xf32, #tpu.memory_space<vmem>>, vector<1x128xf32>,
    %c1_i32 = arith.constant 1 : i32
    %46 = arith.index_cast %c1_i32 : i32 to index
    %c0_34 = arith.constant 0 : index
    %47 = vector.load %arg11[%46, %c0_34] : memref<8x512xf32, #tpu.memory_space<vmem>>, vector<1x512xf32>
    %c0_35 = arith.constant 0 : index
    %c0_36 = arith.constant 0 : index
    %48 = vector.load %arg12[%c0_35, %c0_36] : memref<1x128xf32, #tpu.memory_space<vmem>>, vector<1x128xf32>
    %c0_37 = arith.constant 0 : index
    %c0_38 = arith.constant 0 : index
    %49 = vector.load %arg5[%c0_37, %c0_38] : memref<128x512xf32, #tpu.memory_space<vmem>>, vector<128x512xf32>
    %cst_39 = arith.constant dense<0.000000e+00> : vector<1x512xf32>
    %50 = tpu.matmul %48, %49, %cst_39 {dimension_numbers = #tpu.dot_dimension_numbers<[1], [0], [0], [1], [0, 0, 1, 1], [], []>} : vector<1x128xf32>, vector<128x512xf32>, vector<1x512xf32> -> vector<1x512xf32>
    %51 = arith.addf %47, %50 : vector<1x512xf32>
    %52 = vector.extract_strided_slice %51 {offsets = [0, 0], sizes = [1, 384], strides = [1, 1]} : vector<1x512xf32> to vector<1x384xf32>
    %53 = arith.negf %52 : vector<1x384xf32>
    %54 = math.exp %53 : vector<1x384xf32>
    %cst_40 = arith.constant 1.000000e+00 : f32
    %55 = vector.broadcast %cst_40 : f32 to vector<1x384xf32>
    %56 = arith.addf %55, %54 : vector<1x384xf32>
    %57 = arith.divf %55, %56 : vector<1x384xf32>
    %58 = vector.extract_strided_slice %57 {offsets = [0, 0], sizes = [1, 128], strides = [1, 1]} : vector<1x384xf32> to vector<1x128xf32>
    %59 = vector.extract_strided_slice %57 {offsets = [0, 128], sizes = [1, 128], strides = [1, 1]} : vector<1x384xf32> to vector<1x128xf32>
    %60 = vector.extract_strided_slice %57 {offsets = [0, 256], sizes = [1, 128], strides = [1, 1]} : vector<1x384xf32> to vector<1x128xf32>
    %61 = vector.extract_strided_slice %51 {offsets = [0, 384], sizes = [1, 128], strides = [1, 1]} : vector<1x512xf32> to vector<1x128xf32>
    %62 = math.tanh %61 : vector<1x128xf32>
    %c0_41 = arith.constant 0 : index
    %c0_42 = arith.constant 0 : index
    %63 = vector.load %arg13[%c0_41, %c0_42] : memref<1x128xf32, #tpu.memory_space<vmem>>, vector<1x128xf32>
    %64 = arith.mulf %58, %63 : vector<1x128xf32>
    %65 = arith.mulf %59, %62 : vector<1x128xf32>
    %66 = arith.addf %64, %65 : vector<1x128xf32>
    %c0_43 = arith.constant 0 : index
    %c0_44 = arith.constant 0 : index
    %67 = vector.load %arg13[%c0_43, %c0_44] : memref<1x128xf32, #tpu.memory_space<vmem>>, vector<1x128xf32>
    tpu.vector_store %arg13[%c0_43, %c0_44], %66 {strides = array<i32>} : memref<1x128xf32, #tpu.memory_space<vmem>>, vector<1x128xf32>,
    %68 = arith.index_cast %c1_i32 : i32 to index
    %69 = memref.load %arg8[%68] : memref<8xi32, #tpu.memory_space<smem>>
    %c0_i32_45 = arith.constant 0 : i32
    %70 = arith.cmpi sgt, %69, %c0_i32_45 : i32
    %71 = arith.extui %70 : i1 to i32
    %c0_i32_46 = arith.constant 0 : i32
    %72 = arith.cmpi ne, %71, %c0_i32_46 : i32
    scf.if %72 {
      %291 = arith.index_cast %c1_i32 : i32 to index
      %c0_167 = arith.constant 0 : index
      %c0_168 = arith.constant 0 : index
      %292 = vector.load %arg7[%291, %c0_167, %c0_168] : memref<8x8x128xf32, #tpu.memory_space<vmem>>, vector<1x8x128xf32>
      %293 = vector.shape_cast %292 : vector<1x8x128xf32> to vector<8x128xf32>
      %294 = arith.index_cast %c1_i32 : i32 to index
      %c0_169 = arith.constant 0 : index
      %c0_170 = arith.constant 0 : index
      %295 = vector.load %arg6[%294, %c0_169, %c0_170] : memref<8x8x128xf32, #tpu.memory_space<vmem>>, vector<1x8x128xf32>
      %296 = vector.shape_cast %295 : vector<1x8x128xf32> to vector<8x128xf32>
      %297 = tpu.iota {dimensions = array<i32: 0>} : vector<8x128xi32>
      %298 = vector.broadcast %69 : i32 to vector<8x128xi32>
      %299 = arith.cmpi slt, %297, %298 : vector<8x128xi32>
      %cst_171 = arith.constant 0xFF800000 : f32
      %300 = vector.broadcast %cst_171 : f32 to vector<8x128xf32>
      %301 = arith.select %299, %293, %300 : vector<8x128xi1>, vector<8x128xf32>
      %cst_172 = arith.constant dense<0xFF800000> : vector<128xf32>
      %302 = vector.multi_reduction <maximumf>, %301, %cst_172 [0] : vector<8x128xf32> to vector<128xf32>
      %303 = vector.shape_cast %302 : vector<128xf32> to vector<1x128xf32>
      %304 = arith.maximumf %59, %303 : vector<1x128xf32>
      %305 = arith.subf %59, %304 : vector<1x128xf32>
      %306 = math.exp %305 : vector<1x128xf32>
      %307 = vector.broadcast %304 : vector<1x128xf32> to vector<8x128xf32>
      %308 = arith.subf %301, %307 : vector<8x128xf32>
      %309 = math.exp %308 : vector<8x128xf32>
      %cst_173 = arith.constant dense<0.000000e+00> : vector<128xf32>
      %310 = vector.multi_reduction <add>, %309, %cst_173 [0] : vector<8x128xf32> to vector<128xf32>
      %311 = vector.shape_cast %310 : vector<128xf32> to vector<1x128xf32>
      %312 = arith.addf %306, %311 : vector<1x128xf32>
      %313 = arith.mulf %306, %62 : vector<1x128xf32>
      %314 = arith.mulf %309, %296 : vector<8x128xf32>
      %cst_174 = arith.constant dense<0.000000e+00> : vector<128xf32>
      %315 = vector.multi_reduction <add>, %314, %cst_174 [0] : vector<8x128xf32> to vector<128xf32>
      %316 = vector.shape_cast %315 : vector<128xf32> to vector<1x128xf32>
      %317 = arith.addf %313, %316 : vector<1x128xf32>
      %318 = tpu.reciprocal %312 {approx = true} : vector<1x128xf32> -> vector<1x128xf32>
      %319 = arith.mulf %317, %318 : vector<1x128xf32>
      %c0_175 = arith.constant 0 : index
      %c0_176 = arith.constant 0 : index
      %320 = vector.load %arg13[%c0_175, %c0_176] : memref<1x128xf32, #tpu.memory_space<vmem>>, vector<1x128xf32>
      tpu.vector_store %arg13[%c0_175, %c0_176], %319 {strides = array<i32>} : memref<1x128xf32, #tpu.memory_space<vmem>>, vector<1x128xf32>,
    } else {
    }
    %c0_47 = arith.constant 0 : index
    %c0_48 = arith.constant 0 : index
    %73 = vector.load %arg13[%c0_47, %c0_48] : memref<1x128xf32, #tpu.memory_space<vmem>>, vector<1x128xf32>
    %74 = math.tanh %73 : vector<1x128xf32>
    %75 = arith.mulf %60, %74 : vector<1x128xf32>
    %c0_49 = arith.constant 0 : index
    %c0_50 = arith.constant 0 : index
    %76 = vector.load %arg12[%c0_49, %c0_50] : memref<1x128xf32, #tpu.memory_space<vmem>>, vector<1x128xf32>
    tpu.vector_store %arg12[%c0_49, %c0_50], %75 {strides = array<i32>} : memref<1x128xf32, #tpu.memory_space<vmem>>, vector<1x128xf32>,
    %77 = arith.index_cast %c1_i32 : i32 to index
    %c0_51 = arith.constant 0 : index
    %78 = vector.load %arg9[%77, %c0_51] : memref<8x128xf32, #tpu.memory_space<vmem>>, vector<1x128xf32>
    tpu.vector_store %arg9[%77, %c0_51], %75 {strides = array<i32>} : memref<8x128xf32, #tpu.memory_space<vmem>>, vector<1x128xf32>,
    %79 = arith.index_cast %c1_i32 : i32 to index
    %c0_52 = arith.constant 0 : index
    %80 = vector.load %arg10[%79, %c0_52] : memref<8x128xf32, #tpu.memory_space<vmem>>, vector<1x128xf32>
    tpu.vector_store %arg10[%79, %c0_52], %73 {strides = array<i32>} : memref<8x128xf32, #tpu.memory_space<vmem>>, vector<1x128xf32>,
    %c2_i32 = arith.constant 2 : i32
    %81 = arith.index_cast %c2_i32 : i32 to index
    %c0_53 = arith.constant 0 : index
    %82 = vector.load %arg11[%81, %c0_53] : memref<8x512xf32, #tpu.memory_space<vmem>>, vector<1x512xf32>
    %c0_54 = arith.constant 0 : index
    %c0_55 = arith.constant 0 : index
    %83 = vector.load %arg12[%c0_54, %c0_55] : memref<1x128xf32, #tpu.memory_space<vmem>>, vector<1x128xf32>
    %c0_56 = arith.constant 0 : index
    %c0_57 = arith.constant 0 : index
    %84 = vector.load %arg5[%c0_56, %c0_57] : memref<128x512xf32, #tpu.memory_space<vmem>>, vector<128x512xf32>
    %cst_58 = arith.constant dense<0.000000e+00> : vector<1x512xf32>
    %85 = tpu.matmul %83, %84, %cst_58 {dimension_numbers = #tpu.dot_dimension_numbers<[1], [0], [0], [1], [0, 0, 1, 1], [], []>} : vector<1x128xf32>, vector<128x512xf32>, vector<1x512xf32> -> vector<1x512xf32>
    %86 = arith.addf %82, %85 : vector<1x512xf32>
    %87 = vector.extract_strided_slice %86 {offsets = [0, 0], sizes = [1, 384], strides = [1, 1]} : vector<1x512xf32> to vector<1x384xf32>
    %88 = arith.negf %87 : vector<1x384xf32>
    %89 = math.exp %88 : vector<1x384xf32>
    %cst_59 = arith.constant 1.000000e+00 : f32
    %90 = vector.broadcast %cst_59 : f32 to vector<1x384xf32>
    %91 = arith.addf %90, %89 : vector<1x384xf32>
    %92 = arith.divf %90, %91 : vector<1x384xf32>
    %93 = vector.extract_strided_slice %92 {offsets = [0, 0], sizes = [1, 128], strides = [1, 1]} : vector<1x384xf32> to vector<1x128xf32>
    %94 = vector.extract_strided_slice %92 {offsets = [0, 128], sizes = [1, 128], strides = [1, 1]} : vector<1x384xf32> to vector<1x128xf32>
    %95 = vector.extract_strided_slice %92 {offsets = [0, 256], sizes = [1, 128], strides = [1, 1]} : vector<1x384xf32> to vector<1x128xf32>
    %96 = vector.extract_strided_slice %86 {offsets = [0, 384], sizes = [1, 128], strides = [1, 1]} : vector<1x512xf32> to vector<1x128xf32>
    %97 = math.tanh %96 : vector<1x128xf32>
    %c0_60 = arith.constant 0 : index
    %c0_61 = arith.constant 0 : index
    %98 = vector.load %arg13[%c0_60, %c0_61] : memref<1x128xf32, #tpu.memory_space<vmem>>, vector<1x128xf32>
    %99 = arith.mulf %93, %98 : vector<1x128xf32>
    %100 = arith.mulf %94, %97 : vector<1x128xf32>
    %101 = arith.addf %99, %100 : vector<1x128xf32>
    %c0_62 = arith.constant 0 : index
    %c0_63 = arith.constant 0 : index
    %102 = vector.load %arg13[%c0_62, %c0_63] : memref<1x128xf32, #tpu.memory_space<vmem>>, vector<1x128xf32>
    tpu.vector_store %arg13[%c0_62, %c0_63], %101 {strides = array<i32>} : memref<1x128xf32, #tpu.memory_space<vmem>>, vector<1x128xf32>,
    %103 = arith.index_cast %c2_i32 : i32 to index
    %104 = memref.load %arg8[%103] : memref<8xi32, #tpu.memory_space<smem>>
    %c0_i32_64 = arith.constant 0 : i32
    %105 = arith.cmpi sgt, %104, %c0_i32_64 : i32
    %106 = arith.extui %105 : i1 to i32
    %c0_i32_65 = arith.constant 0 : i32
    %107 = arith.cmpi ne, %106, %c0_i32_65 : i32
    scf.if %107 {
      %291 = arith.index_cast %c2_i32 : i32 to index
      %c0_167 = arith.constant 0 : index
      %c0_168 = arith.constant 0 : index
      %292 = vector.load %arg7[%291, %c0_167, %c0_168] : memref<8x8x128xf32, #tpu.memory_space<vmem>>, vector<1x8x128xf32>
      %293 = vector.shape_cast %292 : vector<1x8x128xf32> to vector<8x128xf32>
      %294 = arith.index_cast %c2_i32 : i32 to index
      %c0_169 = arith.constant 0 : index
      %c0_170 = arith.constant 0 : index
      %295 = vector.load %arg6[%294, %c0_169, %c0_170] : memref<8x8x128xf32, #tpu.memory_space<vmem>>, vector<1x8x128xf32>
      %296 = vector.shape_cast %295 : vector<1x8x128xf32> to vector<8x128xf32>
      %297 = tpu.iota {dimensions = array<i32: 0>} : vector<8x128xi32>
      %298 = vector.broadcast %104 : i32 to vector<8x128xi32>
      %299 = arith.cmpi slt, %297, %298 : vector<8x128xi32>
      %cst_171 = arith.constant 0xFF800000 : f32
      %300 = vector.broadcast %cst_171 : f32 to vector<8x128xf32>
      %301 = arith.select %299, %293, %300 : vector<8x128xi1>, vector<8x128xf32>
      %cst_172 = arith.constant dense<0xFF800000> : vector<128xf32>
      %302 = vector.multi_reduction <maximumf>, %301, %cst_172 [0] : vector<8x128xf32> to vector<128xf32>
      %303 = vector.shape_cast %302 : vector<128xf32> to vector<1x128xf32>
      %304 = arith.maximumf %94, %303 : vector<1x128xf32>
      %305 = arith.subf %94, %304 : vector<1x128xf32>
      %306 = math.exp %305 : vector<1x128xf32>
      %307 = vector.broadcast %304 : vector<1x128xf32> to vector<8x128xf32>
      %308 = arith.subf %301, %307 : vector<8x128xf32>
      %309 = math.exp %308 : vector<8x128xf32>
      %cst_173 = arith.constant dense<0.000000e+00> : vector<128xf32>
      %310 = vector.multi_reduction <add>, %309, %cst_173 [0] : vector<8x128xf32> to vector<128xf32>
      %311 = vector.shape_cast %310 : vector<128xf32> to vector<1x128xf32>
      %312 = arith.addf %306, %311 : vector<1x128xf32>
      %313 = arith.mulf %306, %97 : vector<1x128xf32>
      %314 = arith.mulf %309, %296 : vector<8x128xf32>
      %cst_174 = arith.constant dense<0.000000e+00> : vector<128xf32>
      %315 = vector.multi_reduction <add>, %314, %cst_174 [0] : vector<8x128xf32> to vector<128xf32>
      %316 = vector.shape_cast %315 : vector<128xf32> to vector<1x128xf32>
      %317 = arith.addf %313, %316 : vector<1x128xf32>
      %318 = tpu.reciprocal %312 {approx = true} : vector<1x128xf32> -> vector<1x128xf32>
      %319 = arith.mulf %317, %318 : vector<1x128xf32>
      %c0_175 = arith.constant 0 : index
      %c0_176 = arith.constant 0 : index
      %320 = vector.load %arg13[%c0_175, %c0_176] : memref<1x128xf32, #tpu.memory_space<vmem>>, vector<1x128xf32>
      tpu.vector_store %arg13[%c0_175, %c0_176], %319 {strides = array<i32>} : memref<1x128xf32, #tpu.memory_space<vmem>>, vector<1x128xf32>,
    } else {
    }
    %c0_66 = arith.constant 0 : index
    %c0_67 = arith.constant 0 : index
    %108 = vector.load %arg13[%c0_66, %c0_67] : memref<1x128xf32, #tpu.memory_space<vmem>>, vector<1x128xf32>
    %109 = math.tanh %108 : vector<1x128xf32>
    %110 = arith.mulf %95, %109 : vector<1x128xf32>
    %c0_68 = arith.constant 0 : index
    %c0_69 = arith.constant 0 : index
    %111 = vector.load %arg12[%c0_68, %c0_69] : memref<1x128xf32, #tpu.memory_space<vmem>>, vector<1x128xf32>
    tpu.vector_store %arg12[%c0_68, %c0_69], %110 {strides = array<i32>} : memref<1x128xf32, #tpu.memory_space<vmem>>, vector<1x128xf32>,
    %112 = arith.index_cast %c2_i32 : i32 to index
    %c0_70 = arith.constant 0 : index
    %113 = vector.load %arg9[%112, %c0_70] : memref<8x128xf32, #tpu.memory_space<vmem>>, vector<1x128xf32>
    tpu.vector_store %arg9[%112, %c0_70], %110 {strides = array<i32>} : memref<8x128xf32, #tpu.memory_space<vmem>>, vector<1x128xf32>,
    %114 = arith.index_cast %c2_i32 : i32 to index
    %c0_71 = arith.constant 0 : index
    %115 = vector.load %arg10[%114, %c0_71] : memref<8x128xf32, #tpu.memory_space<vmem>>, vector<1x128xf32>
    tpu.vector_store %arg10[%114, %c0_71], %108 {strides = array<i32>} : memref<8x128xf32, #tpu.memory_space<vmem>>, vector<1x128xf32>,
    %c3_i32 = arith.constant 3 : i32
    %116 = arith.index_cast %c3_i32 : i32 to index
    %c0_72 = arith.constant 0 : index
    %117 = vector.load %arg11[%116, %c0_72] : memref<8x512xf32, #tpu.memory_space<vmem>>, vector<1x512xf32>
    %c0_73 = arith.constant 0 : index
    %c0_74 = arith.constant 0 : index
    %118 = vector.load %arg12[%c0_73, %c0_74] : memref<1x128xf32, #tpu.memory_space<vmem>>, vector<1x128xf32>
    %c0_75 = arith.constant 0 : index
    %c0_76 = arith.constant 0 : index
    %119 = vector.load %arg5[%c0_75, %c0_76] : memref<128x512xf32, #tpu.memory_space<vmem>>, vector<128x512xf32>
    %cst_77 = arith.constant dense<0.000000e+00> : vector<1x512xf32>
    %120 = tpu.matmul %118, %119, %cst_77 {dimension_numbers = #tpu.dot_dimension_numbers<[1], [0], [0], [1], [0, 0, 1, 1], [], []>} : vector<1x128xf32>, vector<128x512xf32>, vector<1x512xf32> -> vector<1x512xf32>
    %121 = arith.addf %117, %120 : vector<1x512xf32>
    %122 = vector.extract_strided_slice %121 {offsets = [0, 0], sizes = [1, 384], strides = [1, 1]} : vector<1x512xf32> to vector<1x384xf32>
    %123 = arith.negf %122 : vector<1x384xf32>
    %124 = math.exp %123 : vector<1x384xf32>
    %cst_78 = arith.constant 1.000000e+00 : f32
    %125 = vector.broadcast %cst_78 : f32 to vector<1x384xf32>
    %126 = arith.addf %125, %124 : vector<1x384xf32>
    %127 = arith.divf %125, %126 : vector<1x384xf32>
    %128 = vector.extract_strided_slice %127 {offsets = [0, 0], sizes = [1, 128], strides = [1, 1]} : vector<1x384xf32> to vector<1x128xf32>
    %129 = vector.extract_strided_slice %127 {offsets = [0, 128], sizes = [1, 128], strides = [1, 1]} : vector<1x384xf32> to vector<1x128xf32>
    %130 = vector.extract_strided_slice %127 {offsets = [0, 256], sizes = [1, 128], strides = [1, 1]} : vector<1x384xf32> to vector<1x128xf32>
    %131 = vector.extract_strided_slice %121 {offsets = [0, 384], sizes = [1, 128], strides = [1, 1]} : vector<1x512xf32> to vector<1x128xf32>
    %132 = math.tanh %131 : vector<1x128xf32>
    %c0_79 = arith.constant 0 : index
    %c0_80 = arith.constant 0 : index
    %133 = vector.load %arg13[%c0_79, %c0_80] : memref<1x128xf32, #tpu.memory_space<vmem>>, vector<1x128xf32>
    %134 = arith.mulf %128, %133 : vector<1x128xf32>
    %135 = arith.mulf %129, %132 : vector<1x128xf32>
    %136 = arith.addf %134, %135 : vector<1x128xf32>
    %c0_81 = arith.constant 0 : index
    %c0_82 = arith.constant 0 : index
    %137 = vector.load %arg13[%c0_81, %c0_82] : memref<1x128xf32, #tpu.memory_space<vmem>>, vector<1x128xf32>
    tpu.vector_store %arg13[%c0_81, %c0_82], %136 {strides = array<i32>} : memref<1x128xf32, #tpu.memory_space<vmem>>, vector<1x128xf32>,
    %138 = arith.index_cast %c3_i32 : i32 to index
    %139 = memref.load %arg8[%138] : memref<8xi32, #tpu.memory_space<smem>>
    %c0_i32_83 = arith.constant 0 : i32
    %140 = arith.cmpi sgt, %139, %c0_i32_83 : i32
    %141 = arith.extui %140 : i1 to i32
    %c0_i32_84 = arith.constant 0 : i32
    %142 = arith.cmpi ne, %141, %c0_i32_84 : i32
    scf.if %142 {
      %291 = arith.index_cast %c3_i32 : i32 to index
      %c0_167 = arith.constant 0 : index
      %c0_168 = arith.constant 0 : index
      %292 = vector.load %arg7[%291, %c0_167, %c0_168] : memref<8x8x128xf32, #tpu.memory_space<vmem>>, vector<1x8x128xf32>
      %293 = vector.shape_cast %292 : vector<1x8x128xf32> to vector<8x128xf32>
      %294 = arith.index_cast %c3_i32 : i32 to index
      %c0_169 = arith.constant 0 : index
      %c0_170 = arith.constant 0 : index
      %295 = vector.load %arg6[%294, %c0_169, %c0_170] : memref<8x8x128xf32, #tpu.memory_space<vmem>>, vector<1x8x128xf32>
      %296 = vector.shape_cast %295 : vector<1x8x128xf32> to vector<8x128xf32>
      %297 = tpu.iota {dimensions = array<i32: 0>} : vector<8x128xi32>
      %298 = vector.broadcast %139 : i32 to vector<8x128xi32>
      %299 = arith.cmpi slt, %297, %298 : vector<8x128xi32>
      %cst_171 = arith.constant 0xFF800000 : f32
      %300 = vector.broadcast %cst_171 : f32 to vector<8x128xf32>
      %301 = arith.select %299, %293, %300 : vector<8x128xi1>, vector<8x128xf32>
      %cst_172 = arith.constant dense<0xFF800000> : vector<128xf32>
      %302 = vector.multi_reduction <maximumf>, %301, %cst_172 [0] : vector<8x128xf32> to vector<128xf32>
      %303 = vector.shape_cast %302 : vector<128xf32> to vector<1x128xf32>
      %304 = arith.maximumf %129, %303 : vector<1x128xf32>
      %305 = arith.subf %129, %304 : vector<1x128xf32>
      %306 = math.exp %305 : vector<1x128xf32>
      %307 = vector.broadcast %304 : vector<1x128xf32> to vector<8x128xf32>
      %308 = arith.subf %301, %307 : vector<8x128xf32>
      %309 = math.exp %308 : vector<8x128xf32>
      %cst_173 = arith.constant dense<0.000000e+00> : vector<128xf32>
      %310 = vector.multi_reduction <add>, %309, %cst_173 [0] : vector<8x128xf32> to vector<128xf32>
      %311 = vector.shape_cast %310 : vector<128xf32> to vector<1x128xf32>
      %312 = arith.addf %306, %311 : vector<1x128xf32>
      %313 = arith.mulf %306, %132 : vector<1x128xf32>
      %314 = arith.mulf %309, %296 : vector<8x128xf32>
      %cst_174 = arith.constant dense<0.000000e+00> : vector<128xf32>
      %315 = vector.multi_reduction <add>, %314, %cst_174 [0] : vector<8x128xf32> to vector<128xf32>
      %316 = vector.shape_cast %315 : vector<128xf32> to vector<1x128xf32>
      %317 = arith.addf %313, %316 : vector<1x128xf32>
      %318 = tpu.reciprocal %312 {approx = true} : vector<1x128xf32> -> vector<1x128xf32>
      %319 = arith.mulf %317, %318 : vector<1x128xf32>
      %c0_175 = arith.constant 0 : index
      %c0_176 = arith.constant 0 : index
      %320 = vector.load %arg13[%c0_175, %c0_176] : memref<1x128xf32, #tpu.memory_space<vmem>>, vector<1x128xf32>
      tpu.vector_store %arg13[%c0_175, %c0_176], %319 {strides = array<i32>} : memref<1x128xf32, #tpu.memory_space<vmem>>, vector<1x128xf32>,
    } else {
    }
    %c0_85 = arith.constant 0 : index
    %c0_86 = arith.constant 0 : index
    %143 = vector.load %arg13[%c0_85, %c0_86] : memref<1x128xf32, #tpu.memory_space<vmem>>, vector<1x128xf32>
    %144 = math.tanh %143 : vector<1x128xf32>
    %145 = arith.mulf %130, %144 : vector<1x128xf32>
    %c0_87 = arith.constant 0 : index
    %c0_88 = arith.constant 0 : index
    %146 = vector.load %arg12[%c0_87, %c0_88] : memref<1x128xf32, #tpu.memory_space<vmem>>, vector<1x128xf32>
    tpu.vector_store %arg12[%c0_87, %c0_88], %145 {strides = array<i32>} : memref<1x128xf32, #tpu.memory_space<vmem>>, vector<1x128xf32>,
    %147 = arith.index_cast %c3_i32 : i32 to index
    %c0_89 = arith.constant 0 : index
    %148 = vector.load %arg9[%147, %c0_89] : memref<8x128xf32, #tpu.memory_space<vmem>>, vector<1x128xf32>
    tpu.vector_store %arg9[%147, %c0_89], %145 {strides = array<i32>} : memref<8x128xf32, #tpu.memory_space<vmem>>, vector<1x128xf32>,
    %149 = arith.index_cast %c3_i32 : i32 to index
    %c0_90 = arith.constant 0 : index
    %150 = vector.load %arg10[%149, %c0_90] : memref<8x128xf32, #tpu.memory_space<vmem>>, vector<1x128xf32>
    tpu.vector_store %arg10[%149, %c0_90], %143 {strides = array<i32>} : memref<8x128xf32, #tpu.memory_space<vmem>>, vector<1x128xf32>,
    %c4_i32 = arith.constant 4 : i32
    %151 = arith.index_cast %c4_i32 : i32 to index
    %c0_91 = arith.constant 0 : index
    %152 = vector.load %arg11[%151, %c0_91] : memref<8x512xf32, #tpu.memory_space<vmem>>, vector<1x512xf32>
    %c0_92 = arith.constant 0 : index
    %c0_93 = arith.constant 0 : index
    %153 = vector.load %arg12[%c0_92, %c0_93] : memref<1x128xf32, #tpu.memory_space<vmem>>, vector<1x128xf32>
    %c0_94 = arith.constant 0 : index
    %c0_95 = arith.constant 0 : index
    %154 = vector.load %arg5[%c0_94, %c0_95] : memref<128x512xf32, #tpu.memory_space<vmem>>, vector<128x512xf32>
    %cst_96 = arith.constant dense<0.000000e+00> : vector<1x512xf32>
    %155 = tpu.matmul %153, %154, %cst_96 {dimension_numbers = #tpu.dot_dimension_numbers<[1], [0], [0], [1], [0, 0, 1, 1], [], []>} : vector<1x128xf32>, vector<128x512xf32>, vector<1x512xf32> -> vector<1x512xf32>
    %156 = arith.addf %152, %155 : vector<1x512xf32>
    %157 = vector.extract_strided_slice %156 {offsets = [0, 0], sizes = [1, 384], strides = [1, 1]} : vector<1x512xf32> to vector<1x384xf32>
    %158 = arith.negf %157 : vector<1x384xf32>
    %159 = math.exp %158 : vector<1x384xf32>
    %cst_97 = arith.constant 1.000000e+00 : f32
    %160 = vector.broadcast %cst_97 : f32 to vector<1x384xf32>
    %161 = arith.addf %160, %159 : vector<1x384xf32>
    %162 = arith.divf %160, %161 : vector<1x384xf32>
    %163 = vector.extract_strided_slice %162 {offsets = [0, 0], sizes = [1, 128], strides = [1, 1]} : vector<1x384xf32> to vector<1x128xf32>
    %164 = vector.extract_strided_slice %162 {offsets = [0, 128], sizes = [1, 128], strides = [1, 1]} : vector<1x384xf32> to vector<1x128xf32>
    %165 = vector.extract_strided_slice %162 {offsets = [0, 256], sizes = [1, 128], strides = [1, 1]} : vector<1x384xf32> to vector<1x128xf32>
    %166 = vector.extract_strided_slice %156 {offsets = [0, 384], sizes = [1, 128], strides = [1, 1]} : vector<1x512xf32> to vector<1x128xf32>
    %167 = math.tanh %166 : vector<1x128xf32>
    %c0_98 = arith.constant 0 : index
    %c0_99 = arith.constant 0 : index
    %168 = vector.load %arg13[%c0_98, %c0_99] : memref<1x128xf32, #tpu.memory_space<vmem>>, vector<1x128xf32>
    %169 = arith.mulf %163, %168 : vector<1x128xf32>
    %170 = arith.mulf %164, %167 : vector<1x128xf32>
    %171 = arith.addf %169, %170 : vector<1x128xf32>
    %c0_100 = arith.constant 0 : index
    %c0_101 = arith.constant 0 : index
    %172 = vector.load %arg13[%c0_100, %c0_101] : memref<1x128xf32, #tpu.memory_space<vmem>>, vector<1x128xf32>
    tpu.vector_store %arg13[%c0_100, %c0_101], %171 {strides = array<i32>} : memref<1x128xf32, #tpu.memory_space<vmem>>, vector<1x128xf32>,
    %173 = arith.index_cast %c4_i32 : i32 to index
    %174 = memref.load %arg8[%173] : memref<8xi32, #tpu.memory_space<smem>>
    %c0_i32_102 = arith.constant 0 : i32
    %175 = arith.cmpi sgt, %174, %c0_i32_102 : i32
    %176 = arith.extui %175 : i1 to i32
    %c0_i32_103 = arith.constant 0 : i32
    %177 = arith.cmpi ne, %176, %c0_i32_103 : i32
    scf.if %177 {
      %291 = arith.index_cast %c4_i32 : i32 to index
      %c0_167 = arith.constant 0 : index
      %c0_168 = arith.constant 0 : index
      %292 = vector.load %arg7[%291, %c0_167, %c0_168] : memref<8x8x128xf32, #tpu.memory_space<vmem>>, vector<1x8x128xf32>
      %293 = vector.shape_cast %292 : vector<1x8x128xf32> to vector<8x128xf32>
      %294 = arith.index_cast %c4_i32 : i32 to index
      %c0_169 = arith.constant 0 : index
      %c0_170 = arith.constant 0 : index
      %295 = vector.load %arg6[%294, %c0_169, %c0_170] : memref<8x8x128xf32, #tpu.memory_space<vmem>>, vector<1x8x128xf32>
      %296 = vector.shape_cast %295 : vector<1x8x128xf32> to vector<8x128xf32>
      %297 = tpu.iota {dimensions = array<i32: 0>} : vector<8x128xi32>
      %298 = vector.broadcast %174 : i32 to vector<8x128xi32>
      %299 = arith.cmpi slt, %297, %298 : vector<8x128xi32>
      %cst_171 = arith.constant 0xFF800000 : f32
      %300 = vector.broadcast %cst_171 : f32 to vector<8x128xf32>
      %301 = arith.select %299, %293, %300 : vector<8x128xi1>, vector<8x128xf32>
      %cst_172 = arith.constant dense<0xFF800000> : vector<128xf32>
      %302 = vector.multi_reduction <maximumf>, %301, %cst_172 [0] : vector<8x128xf32> to vector<128xf32>
      %303 = vector.shape_cast %302 : vector<128xf32> to vector<1x128xf32>
      %304 = arith.maximumf %164, %303 : vector<1x128xf32>
      %305 = arith.subf %164, %304 : vector<1x128xf32>
      %306 = math.exp %305 : vector<1x128xf32>
      %307 = vector.broadcast %304 : vector<1x128xf32> to vector<8x128xf32>
      %308 = arith.subf %301, %307 : vector<8x128xf32>
      %309 = math.exp %308 : vector<8x128xf32>
      %cst_173 = arith.constant dense<0.000000e+00> : vector<128xf32>
      %310 = vector.multi_reduction <add>, %309, %cst_173 [0] : vector<8x128xf32> to vector<128xf32>
      %311 = vector.shape_cast %310 : vector<128xf32> to vector<1x128xf32>
      %312 = arith.addf %306, %311 : vector<1x128xf32>
      %313 = arith.mulf %306, %167 : vector<1x128xf32>
      %314 = arith.mulf %309, %296 : vector<8x128xf32>
      %cst_174 = arith.constant dense<0.000000e+00> : vector<128xf32>
      %315 = vector.multi_reduction <add>, %314, %cst_174 [0] : vector<8x128xf32> to vector<128xf32>
      %316 = vector.shape_cast %315 : vector<128xf32> to vector<1x128xf32>
      %317 = arith.addf %313, %316 : vector<1x128xf32>
      %318 = tpu.reciprocal %312 {approx = true} : vector<1x128xf32> -> vector<1x128xf32>
      %319 = arith.mulf %317, %318 : vector<1x128xf32>
      %c0_175 = arith.constant 0 : index
      %c0_176 = arith.constant 0 : index
      %320 = vector.load %arg13[%c0_175, %c0_176] : memref<1x128xf32, #tpu.memory_space<vmem>>, vector<1x128xf32>
      tpu.vector_store %arg13[%c0_175, %c0_176], %319 {strides = array<i32>} : memref<1x128xf32, #tpu.memory_space<vmem>>, vector<1x128xf32>,
    } else {
    }
    %c0_104 = arith.constant 0 : index
    %c0_105 = arith.constant 0 : index
    %178 = vector.load %arg13[%c0_104, %c0_105] : memref<1x128xf32, #tpu.memory_space<vmem>>, vector<1x128xf32>
    %179 = math.tanh %178 : vector<1x128xf32>
    %180 = arith.mulf %165, %179 : vector<1x128xf32>
    %c0_106 = arith.constant 0 : index
    %c0_107 = arith.constant 0 : index
    %181 = vector.load %arg12[%c0_106, %c0_107] : memref<1x128xf32, #tpu.memory_space<vmem>>, vector<1x128xf32>
    tpu.vector_store %arg12[%c0_106, %c0_107], %180 {strides = array<i32>} : memref<1x128xf32, #tpu.memory_space<vmem>>, vector<1x128xf32>,
    %182 = arith.index_cast %c4_i32 : i32 to index
    %c0_108 = arith.constant 0 : index
    %183 = vector.load %arg9[%182, %c0_108] : memref<8x128xf32, #tpu.memory_space<vmem>>, vector<1x128xf32>
    tpu.vector_store %arg9[%182, %c0_108], %180 {strides = array<i32>} : memref<8x128xf32, #tpu.memory_space<vmem>>, vector<1x128xf32>,
    %184 = arith.index_cast %c4_i32 : i32 to index
    %c0_109 = arith.constant 0 : index
    %185 = vector.load %arg10[%184, %c0_109] : memref<8x128xf32, #tpu.memory_space<vmem>>, vector<1x128xf32>
    tpu.vector_store %arg10[%184, %c0_109], %178 {strides = array<i32>} : memref<8x128xf32, #tpu.memory_space<vmem>>, vector<1x128xf32>,
    %c5_i32 = arith.constant 5 : i32
    %186 = arith.index_cast %c5_i32 : i32 to index
    %c0_110 = arith.constant 0 : index
    %187 = vector.load %arg11[%186, %c0_110] : memref<8x512xf32, #tpu.memory_space<vmem>>, vector<1x512xf32>
    %c0_111 = arith.constant 0 : index
    %c0_112 = arith.constant 0 : index
    %188 = vector.load %arg12[%c0_111, %c0_112] : memref<1x128xf32, #tpu.memory_space<vmem>>, vector<1x128xf32>
    %c0_113 = arith.constant 0 : index
    %c0_114 = arith.constant 0 : index
    %189 = vector.load %arg5[%c0_113, %c0_114] : memref<128x512xf32, #tpu.memory_space<vmem>>, vector<128x512xf32>
    %cst_115 = arith.constant dense<0.000000e+00> : vector<1x512xf32>
    %190 = tpu.matmul %188, %189, %cst_115 {dimension_numbers = #tpu.dot_dimension_numbers<[1], [0], [0], [1], [0, 0, 1, 1], [], []>} : vector<1x128xf32>, vector<128x512xf32>, vector<1x512xf32> -> vector<1x512xf32>
    %191 = arith.addf %187, %190 : vector<1x512xf32>
    %192 = vector.extract_strided_slice %191 {offsets = [0, 0], sizes = [1, 384], strides = [1, 1]} : vector<1x512xf32> to vector<1x384xf32>
    %193 = arith.negf %192 : vector<1x384xf32>
    %194 = math.exp %193 : vector<1x384xf32>
    %cst_116 = arith.constant 1.000000e+00 : f32
    %195 = vector.broadcast %cst_116 : f32 to vector<1x384xf32>
    %196 = arith.addf %195, %194 : vector<1x384xf32>
    %197 = arith.divf %195, %196 : vector<1x384xf32>
    %198 = vector.extract_strided_slice %197 {offsets = [0, 0], sizes = [1, 128], strides = [1, 1]} : vector<1x384xf32> to vector<1x128xf32>
    %199 = vector.extract_strided_slice %197 {offsets = [0, 128], sizes = [1, 128], strides = [1, 1]} : vector<1x384xf32> to vector<1x128xf32>
    %200 = vector.extract_strided_slice %197 {offsets = [0, 256], sizes = [1, 128], strides = [1, 1]} : vector<1x384xf32> to vector<1x128xf32>
    %201 = vector.extract_strided_slice %191 {offsets = [0, 384], sizes = [1, 128], strides = [1, 1]} : vector<1x512xf32> to vector<1x128xf32>
    %202 = math.tanh %201 : vector<1x128xf32>
    %c0_117 = arith.constant 0 : index
    %c0_118 = arith.constant 0 : index
    %203 = vector.load %arg13[%c0_117, %c0_118] : memref<1x128xf32, #tpu.memory_space<vmem>>, vector<1x128xf32>
    %204 = arith.mulf %198, %203 : vector<1x128xf32>
    %205 = arith.mulf %199, %202 : vector<1x128xf32>
    %206 = arith.addf %204, %205 : vector<1x128xf32>
    %c0_119 = arith.constant 0 : index
    %c0_120 = arith.constant 0 : index
    %207 = vector.load %arg13[%c0_119, %c0_120] : memref<1x128xf32, #tpu.memory_space<vmem>>, vector<1x128xf32>
    tpu.vector_store %arg13[%c0_119, %c0_120], %206 {strides = array<i32>} : memref<1x128xf32, #tpu.memory_space<vmem>>, vector<1x128xf32>,
    %208 = arith.index_cast %c5_i32 : i32 to index
    %209 = memref.load %arg8[%208] : memref<8xi32, #tpu.memory_space<smem>>
    %c0_i32_121 = arith.constant 0 : i32
    %210 = arith.cmpi sgt, %209, %c0_i32_121 : i32
    %211 = arith.extui %210 : i1 to i32
    %c0_i32_122 = arith.constant 0 : i32
    %212 = arith.cmpi ne, %211, %c0_i32_122 : i32
    scf.if %212 {
      %291 = arith.index_cast %c5_i32 : i32 to index
      %c0_167 = arith.constant 0 : index
      %c0_168 = arith.constant 0 : index
      %292 = vector.load %arg7[%291, %c0_167, %c0_168] : memref<8x8x128xf32, #tpu.memory_space<vmem>>, vector<1x8x128xf32>
      %293 = vector.shape_cast %292 : vector<1x8x128xf32> to vector<8x128xf32>
      %294 = arith.index_cast %c5_i32 : i32 to index
      %c0_169 = arith.constant 0 : index
      %c0_170 = arith.constant 0 : index
      %295 = vector.load %arg6[%294, %c0_169, %c0_170] : memref<8x8x128xf32, #tpu.memory_space<vmem>>, vector<1x8x128xf32>
      %296 = vector.shape_cast %295 : vector<1x8x128xf32> to vector<8x128xf32>
      %297 = tpu.iota {dimensions = array<i32: 0>} : vector<8x128xi32>
      %298 = vector.broadcast %209 : i32 to vector<8x128xi32>
      %299 = arith.cmpi slt, %297, %298 : vector<8x128xi32>
      %cst_171 = arith.constant 0xFF800000 : f32
      %300 = vector.broadcast %cst_171 : f32 to vector<8x128xf32>
      %301 = arith.select %299, %293, %300 : vector<8x128xi1>, vector<8x128xf32>
      %cst_172 = arith.constant dense<0xFF800000> : vector<128xf32>
      %302 = vector.multi_reduction <maximumf>, %301, %cst_172 [0] : vector<8x128xf32> to vector<128xf32>
      %303 = vector.shape_cast %302 : vector<128xf32> to vector<1x128xf32>
      %304 = arith.maximumf %199, %303 : vector<1x128xf32>
      %305 = arith.subf %199, %304 : vector<1x128xf32>
      %306 = math.exp %305 : vector<1x128xf32>
      %307 = vector.broadcast %304 : vector<1x128xf32> to vector<8x128xf32>
      %308 = arith.subf %301, %307 : vector<8x128xf32>
      %309 = math.exp %308 : vector<8x128xf32>
      %cst_173 = arith.constant dense<0.000000e+00> : vector<128xf32>
      %310 = vector.multi_reduction <add>, %309, %cst_173 [0] : vector<8x128xf32> to vector<128xf32>
      %311 = vector.shape_cast %310 : vector<128xf32> to vector<1x128xf32>
      %312 = arith.addf %306, %311 : vector<1x128xf32>
      %313 = arith.mulf %306, %202 : vector<1x128xf32>
      %314 = arith.mulf %309, %296 : vector<8x128xf32>
      %cst_174 = arith.constant dense<0.000000e+00> : vector<128xf32>
      %315 = vector.multi_reduction <add>, %314, %cst_174 [0] : vector<8x128xf32> to vector<128xf32>
      %316 = vector.shape_cast %315 : vector<128xf32> to vector<1x128xf32>
      %317 = arith.addf %313, %316 : vector<1x128xf32>
      %318 = tpu.reciprocal %312 {approx = true} : vector<1x128xf32> -> vector<1x128xf32>
      %319 = arith.mulf %317, %318 : vector<1x128xf32>
      %c0_175 = arith.constant 0 : index
      %c0_176 = arith.constant 0 : index
      %320 = vector.load %arg13[%c0_175, %c0_176] : memref<1x128xf32, #tpu.memory_space<vmem>>, vector<1x128xf32>
      tpu.vector_store %arg13[%c0_175, %c0_176], %319 {strides = array<i32>} : memref<1x128xf32, #tpu.memory_space<vmem>>, vector<1x128xf32>,
    } else {
    }
    %c0_123 = arith.constant 0 : index
    %c0_124 = arith.constant 0 : index
    %213 = vector.load %arg13[%c0_123, %c0_124] : memref<1x128xf32, #tpu.memory_space<vmem>>, vector<1x128xf32>
    %214 = math.tanh %213 : vector<1x128xf32>
    %215 = arith.mulf %200, %214 : vector<1x128xf32>
    %c0_125 = arith.constant 0 : index
    %c0_126 = arith.constant 0 : index
    %216 = vector.load %arg12[%c0_125, %c0_126] : memref<1x128xf32, #tpu.memory_space<vmem>>, vector<1x128xf32>
    tpu.vector_store %arg12[%c0_125, %c0_126], %215 {strides = array<i32>} : memref<1x128xf32, #tpu.memory_space<vmem>>, vector<1x128xf32>,
    %217 = arith.index_cast %c5_i32 : i32 to index
    %c0_127 = arith.constant 0 : index
    %218 = vector.load %arg9[%217, %c0_127] : memref<8x128xf32, #tpu.memory_space<vmem>>, vector<1x128xf32>
    tpu.vector_store %arg9[%217, %c0_127], %215 {strides = array<i32>} : memref<8x128xf32, #tpu.memory_space<vmem>>, vector<1x128xf32>,
    %219 = arith.index_cast %c5_i32 : i32 to index
    %c0_128 = arith.constant 0 : index
    %220 = vector.load %arg10[%219, %c0_128] : memref<8x128xf32, #tpu.memory_space<vmem>>, vector<1x128xf32>
    tpu.vector_store %arg10[%219, %c0_128], %213 {strides = array<i32>} : memref<8x128xf32, #tpu.memory_space<vmem>>, vector<1x128xf32>,
    %c6_i32 = arith.constant 6 : i32
    %221 = arith.index_cast %c6_i32 : i32 to index
    %c0_129 = arith.constant 0 : index
    %222 = vector.load %arg11[%221, %c0_129] : memref<8x512xf32, #tpu.memory_space<vmem>>, vector<1x512xf32>
    %c0_130 = arith.constant 0 : index
    %c0_131 = arith.constant 0 : index
    %223 = vector.load %arg12[%c0_130, %c0_131] : memref<1x128xf32, #tpu.memory_space<vmem>>, vector<1x128xf32>
    %c0_132 = arith.constant 0 : index
    %c0_133 = arith.constant 0 : index
    %224 = vector.load %arg5[%c0_132, %c0_133] : memref<128x512xf32, #tpu.memory_space<vmem>>, vector<128x512xf32>
    %cst_134 = arith.constant dense<0.000000e+00> : vector<1x512xf32>
    %225 = tpu.matmul %223, %224, %cst_134 {dimension_numbers = #tpu.dot_dimension_numbers<[1], [0], [0], [1], [0, 0, 1, 1], [], []>} : vector<1x128xf32>, vector<128x512xf32>, vector<1x512xf32> -> vector<1x512xf32>
    %226 = arith.addf %222, %225 : vector<1x512xf32>
    %227 = vector.extract_strided_slice %226 {offsets = [0, 0], sizes = [1, 384], strides = [1, 1]} : vector<1x512xf32> to vector<1x384xf32>
    %228 = arith.negf %227 : vector<1x384xf32>
    %229 = math.exp %228 : vector<1x384xf32>
    %cst_135 = arith.constant 1.000000e+00 : f32
    %230 = vector.broadcast %cst_135 : f32 to vector<1x384xf32>
    %231 = arith.addf %230, %229 : vector<1x384xf32>
    %232 = arith.divf %230, %231 : vector<1x384xf32>
    %233 = vector.extract_strided_slice %232 {offsets = [0, 0], sizes = [1, 128], strides = [1, 1]} : vector<1x384xf32> to vector<1x128xf32>
    %234 = vector.extract_strided_slice %232 {offsets = [0, 128], sizes = [1, 128], strides = [1, 1]} : vector<1x384xf32> to vector<1x128xf32>
    %235 = vector.extract_strided_slice %232 {offsets = [0, 256], sizes = [1, 128], strides = [1, 1]} : vector<1x384xf32> to vector<1x128xf32>
    %236 = vector.extract_strided_slice %226 {offsets = [0, 384], sizes = [1, 128], strides = [1, 1]} : vector<1x512xf32> to vector<1x128xf32>
    %237 = math.tanh %236 : vector<1x128xf32>
    %c0_136 = arith.constant 0 : index
    %c0_137 = arith.constant 0 : index
    %238 = vector.load %arg13[%c0_136, %c0_137] : memref<1x128xf32, #tpu.memory_space<vmem>>, vector<1x128xf32>
    %239 = arith.mulf %233, %238 : vector<1x128xf32>
    %240 = arith.mulf %234, %237 : vector<1x128xf32>
    %241 = arith.addf %239, %240 : vector<1x128xf32>
    %c0_138 = arith.constant 0 : index
    %c0_139 = arith.constant 0 : index
    %242 = vector.load %arg13[%c0_138, %c0_139] : memref<1x128xf32, #tpu.memory_space<vmem>>, vector<1x128xf32>
    tpu.vector_store %arg13[%c0_138, %c0_139], %241 {strides = array<i32>} : memref<1x128xf32, #tpu.memory_space<vmem>>, vector<1x128xf32>,
    %243 = arith.index_cast %c6_i32 : i32 to index
    %244 = memref.load %arg8[%243] : memref<8xi32, #tpu.memory_space<smem>>
    %c0_i32_140 = arith.constant 0 : i32
    %245 = arith.cmpi sgt, %244, %c0_i32_140 : i32
    %246 = arith.extui %245 : i1 to i32
    %c0_i32_141 = arith.constant 0 : i32
    %247 = arith.cmpi ne, %246, %c0_i32_141 : i32
    scf.if %247 {
      %291 = arith.index_cast %c6_i32 : i32 to index
      %c0_167 = arith.constant 0 : index
      %c0_168 = arith.constant 0 : index
      %292 = vector.load %arg7[%291, %c0_167, %c0_168] : memref<8x8x128xf32, #tpu.memory_space<vmem>>, vector<1x8x128xf32>
      %293 = vector.shape_cast %292 : vector<1x8x128xf32> to vector<8x128xf32>
      %294 = arith.index_cast %c6_i32 : i32 to index
      %c0_169 = arith.constant 0 : index
      %c0_170 = arith.constant 0 : index
      %295 = vector.load %arg6[%294, %c0_169, %c0_170] : memref<8x8x128xf32, #tpu.memory_space<vmem>>, vector<1x8x128xf32>
      %296 = vector.shape_cast %295 : vector<1x8x128xf32> to vector<8x128xf32>
      %297 = tpu.iota {dimensions = array<i32: 0>} : vector<8x128xi32>
      %298 = vector.broadcast %244 : i32 to vector<8x128xi32>
      %299 = arith.cmpi slt, %297, %298 : vector<8x128xi32>
      %cst_171 = arith.constant 0xFF800000 : f32
      %300 = vector.broadcast %cst_171 : f32 to vector<8x128xf32>
      %301 = arith.select %299, %293, %300 : vector<8x128xi1>, vector<8x128xf32>
      %cst_172 = arith.constant dense<0xFF800000> : vector<128xf32>
      %302 = vector.multi_reduction <maximumf>, %301, %cst_172 [0] : vector<8x128xf32> to vector<128xf32>
      %303 = vector.shape_cast %302 : vector<128xf32> to vector<1x128xf32>
      %304 = arith.maximumf %234, %303 : vector<1x128xf32>
      %305 = arith.subf %234, %304 : vector<1x128xf32>
      %306 = math.exp %305 : vector<1x128xf32>
      %307 = vector.broadcast %304 : vector<1x128xf32> to vector<8x128xf32>
      %308 = arith.subf %301, %307 : vector<8x128xf32>
      %309 = math.exp %308 : vector<8x128xf32>
      %cst_173 = arith.constant dense<0.000000e+00> : vector<128xf32>
      %310 = vector.multi_reduction <add>, %309, %cst_173 [0] : vector<8x128xf32> to vector<128xf32>
      %311 = vector.shape_cast %310 : vector<128xf32> to vector<1x128xf32>
      %312 = arith.addf %306, %311 : vector<1x128xf32>
      %313 = arith.mulf %306, %237 : vector<1x128xf32>
      %314 = arith.mulf %309, %296 : vector<8x128xf32>
      %cst_174 = arith.constant dense<0.000000e+00> : vector<128xf32>
      %315 = vector.multi_reduction <add>, %314, %cst_174 [0] : vector<8x128xf32> to vector<128xf32>
      %316 = vector.shape_cast %315 : vector<128xf32> to vector<1x128xf32>
      %317 = arith.addf %313, %316 : vector<1x128xf32>
      %318 = tpu.reciprocal %312 {approx = true} : vector<1x128xf32> -> vector<1x128xf32>
      %319 = arith.mulf %317, %318 : vector<1x128xf32>
      %c0_175 = arith.constant 0 : index
      %c0_176 = arith.constant 0 : index
      %320 = vector.load %arg13[%c0_175, %c0_176] : memref<1x128xf32, #tpu.memory_space<vmem>>, vector<1x128xf32>
      tpu.vector_store %arg13[%c0_175, %c0_176], %319 {strides = array<i32>} : memref<1x128xf32, #tpu.memory_space<vmem>>, vector<1x128xf32>,
    } else {
    }
    %c0_142 = arith.constant 0 : index
    %c0_143 = arith.constant 0 : index
    %248 = vector.load %arg13[%c0_142, %c0_143] : memref<1x128xf32, #tpu.memory_space<vmem>>, vector<1x128xf32>
    %249 = math.tanh %248 : vector<1x128xf32>
    %250 = arith.mulf %235, %249 : vector<1x128xf32>
    %c0_144 = arith.constant 0 : index
    %c0_145 = arith.constant 0 : index
    %251 = vector.load %arg12[%c0_144, %c0_145] : memref<1x128xf32, #tpu.memory_space<vmem>>, vector<1x128xf32>
    tpu.vector_store %arg12[%c0_144, %c0_145], %250 {strides = array<i32>} : memref<1x128xf32, #tpu.memory_space<vmem>>, vector<1x128xf32>,
    %252 = arith.index_cast %c6_i32 : i32 to index
    %c0_146 = arith.constant 0 : index
    %253 = vector.load %arg9[%252, %c0_146] : memref<8x128xf32, #tpu.memory_space<vmem>>, vector<1x128xf32>
    tpu.vector_store %arg9[%252, %c0_146], %250 {strides = array<i32>} : memref<8x128xf32, #tpu.memory_space<vmem>>, vector<1x128xf32>,
    %254 = arith.index_cast %c6_i32 : i32 to index
    %c0_147 = arith.constant 0 : index
    %255 = vector.load %arg10[%254, %c0_147] : memref<8x128xf32, #tpu.memory_space<vmem>>, vector<1x128xf32>
    tpu.vector_store %arg10[%254, %c0_147], %248 {strides = array<i32>} : memref<8x128xf32, #tpu.memory_space<vmem>>, vector<1x128xf32>,
    %c7_i32 = arith.constant 7 : i32
    %256 = arith.index_cast %c7_i32 : i32 to index
    %c0_148 = arith.constant 0 : index
    %257 = vector.load %arg11[%256, %c0_148] : memref<8x512xf32, #tpu.memory_space<vmem>>, vector<1x512xf32>
    %c0_149 = arith.constant 0 : index
    %c0_150 = arith.constant 0 : index
    %258 = vector.load %arg12[%c0_149, %c0_150] : memref<1x128xf32, #tpu.memory_space<vmem>>, vector<1x128xf32>
    %c0_151 = arith.constant 0 : index
    %c0_152 = arith.constant 0 : index
    %259 = vector.load %arg5[%c0_151, %c0_152] : memref<128x512xf32, #tpu.memory_space<vmem>>, vector<128x512xf32>
    %cst_153 = arith.constant dense<0.000000e+00> : vector<1x512xf32>
    %260 = tpu.matmul %258, %259, %cst_153 {dimension_numbers = #tpu.dot_dimension_numbers<[1], [0], [0], [1], [0, 0, 1, 1], [], []>} : vector<1x128xf32>, vector<128x512xf32>, vector<1x512xf32> -> vector<1x512xf32>
    %261 = arith.addf %257, %260 : vector<1x512xf32>
    %262 = vector.extract_strided_slice %261 {offsets = [0, 0], sizes = [1, 384], strides = [1, 1]} : vector<1x512xf32> to vector<1x384xf32>
    %263 = arith.negf %262 : vector<1x384xf32>
    %264 = math.exp %263 : vector<1x384xf32>
    %cst_154 = arith.constant 1.000000e+00 : f32
    %265 = vector.broadcast %cst_154 : f32 to vector<1x384xf32>
    %266 = arith.addf %265, %264 : vector<1x384xf32>
    %267 = arith.divf %265, %266 : vector<1x384xf32>
    %268 = vector.extract_strided_slice %267 {offsets = [0, 0], sizes = [1, 128], strides = [1, 1]} : vector<1x384xf32> to vector<1x128xf32>
    %269 = vector.extract_strided_slice %267 {offsets = [0, 128], sizes = [1, 128], strides = [1, 1]} : vector<1x384xf32> to vector<1x128xf32>
    %270 = vector.extract_strided_slice %267 {offsets = [0, 256], sizes = [1, 128], strides = [1, 1]} : vector<1x384xf32> to vector<1x128xf32>
    %271 = vector.extract_strided_slice %261 {offsets = [0, 384], sizes = [1, 128], strides = [1, 1]} : vector<1x512xf32> to vector<1x128xf32>
    %272 = math.tanh %271 : vector<1x128xf32>
    %c0_155 = arith.constant 0 : index
    %c0_156 = arith.constant 0 : index
    %273 = vector.load %arg13[%c0_155, %c0_156] : memref<1x128xf32, #tpu.memory_space<vmem>>, vector<1x128xf32>
    %274 = arith.mulf %268, %273 : vector<1x128xf32>
    %275 = arith.mulf %269, %272 : vector<1x128xf32>
    %276 = arith.addf %274, %275 : vector<1x128xf32>
    %c0_157 = arith.constant 0 : index
    %c0_158 = arith.constant 0 : index
    %277 = vector.load %arg13[%c0_157, %c0_158] : memref<1x128xf32, #tpu.memory_space<vmem>>, vector<1x128xf32>
    tpu.vector_store %arg13[%c0_157, %c0_158], %276 {strides = array<i32>} : memref<1x128xf32, #tpu.memory_space<vmem>>, vector<1x128xf32>,
    %278 = arith.index_cast %c7_i32 : i32 to index
    %279 = memref.load %arg8[%278] : memref<8xi32, #tpu.memory_space<smem>>
    %c0_i32_159 = arith.constant 0 : i32
    %280 = arith.cmpi sgt, %279, %c0_i32_159 : i32
    %281 = arith.extui %280 : i1 to i32
    %c0_i32_160 = arith.constant 0 : i32
    %282 = arith.cmpi ne, %281, %c0_i32_160 : i32
    scf.if %282 {
      %291 = arith.index_cast %c7_i32 : i32 to index
      %c0_167 = arith.constant 0 : index
      %c0_168 = arith.constant 0 : index
      %292 = vector.load %arg7[%291, %c0_167, %c0_168] : memref<8x8x128xf32, #tpu.memory_space<vmem>>, vector<1x8x128xf32>
      %293 = vector.shape_cast %292 : vector<1x8x128xf32> to vector<8x128xf32>
      %294 = arith.index_cast %c7_i32 : i32 to index
      %c0_169 = arith.constant 0 : index
      %c0_170 = arith.constant 0 : index
      %295 = vector.load %arg6[%294, %c0_169, %c0_170] : memref<8x8x128xf32, #tpu.memory_space<vmem>>, vector<1x8x128xf32>
      %296 = vector.shape_cast %295 : vector<1x8x128xf32> to vector<8x128xf32>
      %297 = tpu.iota {dimensions = array<i32: 0>} : vector<8x128xi32>
      %298 = vector.broadcast %279 : i32 to vector<8x128xi32>
      %299 = arith.cmpi slt, %297, %298 : vector<8x128xi32>
      %cst_171 = arith.constant 0xFF800000 : f32
      %300 = vector.broadcast %cst_171 : f32 to vector<8x128xf32>
      %301 = arith.select %299, %293, %300 : vector<8x128xi1>, vector<8x128xf32>
      %cst_172 = arith.constant dense<0xFF800000> : vector<128xf32>
      %302 = vector.multi_reduction <maximumf>, %301, %cst_172 [0] : vector<8x128xf32> to vector<128xf32>
      %303 = vector.shape_cast %302 : vector<128xf32> to vector<1x128xf32>
      %304 = arith.maximumf %269, %303 : vector<1x128xf32>
      %305 = arith.subf %269, %304 : vector<1x128xf32>
      %306 = math.exp %305 : vector<1x128xf32>
      %307 = vector.broadcast %304 : vector<1x128xf32> to vector<8x128xf32>
      %308 = arith.subf %301, %307 : vector<8x128xf32>
      %309 = math.exp %308 : vector<8x128xf32>
      %cst_173 = arith.constant dense<0.000000e+00> : vector<128xf32>
      %310 = vector.multi_reduction <add>, %309, %cst_173 [0] : vector<8x128xf32> to vector<128xf32>
      %311 = vector.shape_cast %310 : vector<128xf32> to vector<1x128xf32>
      %312 = arith.addf %306, %311 : vector<1x128xf32>
      %313 = arith.mulf %306, %272 : vector<1x128xf32>
      %314 = arith.mulf %309, %296 : vector<8x128xf32>
      %cst_174 = arith.constant dense<0.000000e+00> : vector<128xf32>
      %315 = vector.multi_reduction <add>, %314, %cst_174 [0] : vector<8x128xf32> to vector<128xf32>
      %316 = vector.shape_cast %315 : vector<128xf32> to vector<1x128xf32>
      %317 = arith.addf %313, %316 : vector<1x128xf32>
      %318 = tpu.reciprocal %312 {approx = true} : vector<1x128xf32> -> vector<1x128xf32>
      %319 = arith.mulf %317, %318 : vector<1x128xf32>
      %c0_175 = arith.constant 0 : index
      %c0_176 = arith.constant 0 : index
      %320 = vector.load %arg13[%c0_175, %c0_176] : memref<1x128xf32, #tpu.memory_space<vmem>>, vector<1x128xf32>
      tpu.vector_store %arg13[%c0_175, %c0_176], %319 {strides = array<i32>} : memref<1x128xf32, #tpu.memory_space<vmem>>, vector<1x128xf32>,
    } else {
    }
    %c0_161 = arith.constant 0 : index
    %c0_162 = arith.constant 0 : index
    %283 = vector.load %arg13[%c0_161, %c0_162] : memref<1x128xf32, #tpu.memory_space<vmem>>, vector<1x128xf32>
    %284 = math.tanh %283 : vector<1x128xf32>
    %285 = arith.mulf %270, %284 : vector<1x128xf32>
    %c0_163 = arith.constant 0 : index
    %c0_164 = arith.constant 0 : index
    %286 = vector.load %arg12[%c0_163, %c0_164] : memref<1x128xf32, #tpu.memory_space<vmem>>, vector<1x128xf32>
    tpu.vector_store %arg12[%c0_163, %c0_164], %285 {strides = array<i32>} : memref<1x128xf32, #tpu.memory_space<vmem>>, vector<1x128xf32>,
    %287 = arith.index_cast %c7_i32 : i32 to index
    %c0_165 = arith.constant 0 : index
    %288 = vector.load %arg9[%287, %c0_165] : memref<8x128xf32, #tpu.memory_space<vmem>>, vector<1x128xf32>
    tpu.vector_store %arg9[%287, %c0_165], %285 {strides = array<i32>} : memref<8x128xf32, #tpu.memory_space<vmem>>, vector<1x128xf32>,
    %289 = arith.index_cast %c7_i32 : i32 to index
    %c0_166 = arith.constant 0 : index
    %290 = vector.load %arg10[%289, %c0_166] : memref<8x128xf32, #tpu.memory_space<vmem>>, vector<1x128xf32>
    tpu.vector_store %arg10[%289, %c0_166], %283 {strides = array<i32>} : memref<8x128xf32, #tpu.memory_space<vmem>>, vector<1x128xf32>,
    %c8_i32 = arith.constant 8 : i32
    return
  }
}

</mosaic_0001>

<bundles_post_ra>
// kernel: tpu_custom_call.1
= control target key start
LH: loop header
LB: loop body
LE: loop exit
PB: predicated region body
PF: predicated region fallthrough
CT: control target
= control target key end

     0   :  { %16 = vsyncpa [#allocation6], 0  ;;  %s3432_s0 = inlined_call_operand.hbm [shape: bf16[8,16], index: 0, kind: input, shape index: {}]   ;;  %s3433_s1 = inlined_call_operand.hbm [shape: bf16[16,512], index: 1, kind: input, shape index: {}]   ;;  %s3434_s2 = inlined_call_operand.hbm [shape: f32[1,512], index: 2, kind: input, shape index: {}]   ;;  %s3435_s3 = inlined_call_operand.vmem [shape: f32[1,128], index: 3, kind: input, shape index: {}]   ;;  %s3436_s4 = inlined_call_operand.vmem [shape: f32[1,128], index: 4, kind: input, shape index: {}]   ;;  %s3437_s5 = inlined_call_operand.hbm [shape: f32[128,512], index: 5, kind: input, shape index: {}]   ;;  %s3438_s6 = inlined_call_operand.hbm [shape: f32[8,8,128], index: 6, kind: input, shape index: {}]   ;;  %s3439_s7 = inlined_call_operand.hbm [shape: f32[8,8,128], index: 7, kind: input, shape index: {}]   ;;  %s3440_s8 = inlined_call_operand.vmem [shape: s32[8], index: 8, kind: input, shape index: {}]   ;;  %s3441_s9 = inlined_call_operand.hbm [shape: f32[8,128], index: 9, kind: output, shape index: {0}]   ;;  %s3442_s10 = inlined_call_operand.hbm [shape: f32[8,128], index: 10, kind: output, shape index: {1}]  }
   0x1   :  { %17 = vsyncpa [#allocation10], 0 }
   0x2   :  { %18 = vsyncpa [#allocation13], 0 }
   0x3   :  { %19 = vsyncpa [#allocation16], 0 }
   0x4   :  { %20 = vsyncpa [#allocation8], 0 }
   0x5   :  { %21 = vsyncpa [#allocation7], 0 }
   0x6   :  { %22 = vsyncpa [#allocation20], 0  ;;  %s3186_s13 = smov [#allocation9]  }
   0x7   :  { %s38_s14 = sshll.u32 %s3186_s13, 4  ;;  %s39_s14 = int_to_ptr.vmem [resolvable:$true] %s38_s14 }
   0x8   :  { %s3008_s15 = scalar_lea.vmem %s39_s14, 512  ;;  %p3013_p1 = scmp.lt.s32.totalorder %s39_s14, %s39_s14 }
   0x9   :  { %p3009_p0 = scmp.ne.s32.totalorder %s39_s14, %s3008_s15  ;;  %p3014_p2 = scmp.lt.s32.totalorder %s3008_s15, %s3008_s15 }
   0xb   :  { %p3015_p3 = por %p3014_p2, %p3013_p1 }
   0xd   :  { %p3016_p4 = pnand %p3015_p3, %p3009_p0 }
   0xf   :  { %3019 = shalt.err (!%p3016_p4)
}
  0x10   :  { %s3187_s16 = smov 256   ;;  %s3188_s17 = smov 16  }
  0x11   :  { %44 = dma.hbm_to_vmem [thread:$0]  %s3433_s1, 512, %s39_s14, [#allocation10], %s3187_s16, %s3187_s16, %s3188_s17  }
  0x12   :  { %s3189_s20 = smov [#allocation12]  }
  0x13   :  { %s64_s21 = sshll.u32 %s3189_s20, 4  ;;  %s65_s21 = int_to_ptr.vmem [resolvable:$true] %s64_s21 }
  0x14   :  { %s3028_s22 = scalar_lea.vmem %s65_s21, 8192  ;;  %p3033_p6 = scmp.lt.s32.totalorder %s65_s21, %s65_s21 }
  0x15   :  { %p3029_p5 = scmp.ne.s32.totalorder %s65_s21, %s3028_s22  ;;  %p3034_p7 = scmp.lt.s32.totalorder %s3028_s22, %s3028_s22 }
  0x17   :  { %p3035_p8 = por %p3034_p7, %p3033_p6 }
  0x19   :  { %p3036_p9 = pnand %p3035_p8, %p3029_p5 }
  0x1b   :  { %3039 = shalt.err (!%p3036_p9)
}
  0x1c   :  { %s3190_s23 = smov 512   ;;  %s3191_s24 = smov 32  }
  0x1d   :  { %70 = dma.hbm_to_vmem [thread:$0]  %s3437_s5, 8192, %s65_s21, [#allocation13], %s3190_s23, %s3190_s23, %s3191_s24  }
  0x1e   :  { %s3192_s27 = smov [#allocation5]   ;;  %s3193_s29 = smov [#allocation11]  }
  0x1f   :  { %s29_s28 = sshll.u32 %s3192_s27, 4  ;;  %s51_s1 = sshll.u32 %s3193_s29, 4  ;;  %s30_s28 = int_to_ptr.vmem [resolvable:$true] %s29_s28  ;;  %s52_s1 = int_to_ptr.vmem [resolvable:$true] %s51_s1 }
  0x20   :  { %s3048_s30 = scalar_lea.vmem %s30_s28, 64  ;;  %p3053_p11 = scmp.lt.s32.totalorder %s30_s28, %s30_s28 }
  0x21   :  { %p3049_p10 = scmp.ne.s32.totalorder %s30_s28, %s3048_s30  ;;  %p3054_p12 = scmp.lt.s32.totalorder %s3048_s30, %s3048_s30 }
  0x23   :  { %p3055_p13 = por %p3054_p12, %p3053_p11 }
  0x25   :  { %p3056_p0 = pnand %p3055_p13, %p3049_p10 }
  0x27   :  { %3059 = shalt.err (!%p3056_p0)
}
  0x28   :  { %32 = dma.hbm_to_vmem [thread:$0]  %s3432_s0, 64, %s30_s28, [#allocation6]  }
  0x29   :  { %s3068_s13 = scalar_lea.vmem %s52_s1, 64  ;;  %p3073_p2 = scmp.lt.s32.totalorder %s52_s1, %s52_s1 }
  0x2a   :  { %p3069_p1 = scmp.ne.s32.totalorder %s52_s1, %s3068_s13  ;;  %p3074_p3 = scmp.lt.s32.totalorder %s3068_s13, %s3068_s13 }
  0x2c   :  { %p3075_p4 = por %p3074_p3, %p3073_p2 }
  0x2e   :  { %p3076_p5 = pnand %p3075_p4, %p3069_p1 }
  0x30   :  { %3079 = shalt.err (!%p3076_p5)
}
  0x31   :  { %54 = dma.hbm_to_vmem [thread:$0]  %s3434_s2, 64, %s52_s1, [#allocation10]  }
  0x32   :  { %s3194_s15 = smov [#allocation14]  }
  0x33   :  { %s76_s16 = sshll.u32 %s3194_s15, 4  ;;  %s77_s16 = int_to_ptr.vmem [resolvable:$true] %s76_s16 }
  0x34   :  { %s3088_s17 = scalar_lea.vmem %s77_s16, 1024  ;;  %p3093_p7 = scmp.lt.s32.totalorder %s77_s16, %s77_s16 }
  0x35   :  { %p3089_p6 = scmp.ne.s32.totalorder %s77_s16, %s3088_s17  ;;  %p3094_p8 = scmp.lt.s32.totalorder %s3088_s17, %s3088_s17 }
  0x37   :  { %p3095_p9 = por %p3094_p8, %p3093_p7 }
  0x39   :  { %p3096_p10 = pnand %p3095_p9, %p3089_p6 }
  0x3b   :  { %3099 = shalt.err (!%p3096_p10)
}
  0x3c   :  { %s3195_s0 = smov 128   ;;  %s3196_s18 = smov 8  }
  0x3d   :  { %82 = dma.hbm_to_vmem [thread:$0]  %s3438_s6, 1024, %s77_s16, [#allocation13], %s3195_s0, %s3195_s0, %s3196_s18  }
  0x3e   :  { %s3197_s21 = smov [#allocation15]   ;;  %s101_s24 = sshll.u32 %s3440_s8, 4  ;;  %s102_s24 = int_to_ptr.vmem [resolvable:$true] %s101_s24 }
  0x3f   :  { %s88_s22 = sshll.u32 %s3197_s21, 4  ;;  %s89_s22 = int_to_ptr.vmem [resolvable:$true] %s88_s22 }
  0x40   :  { %s3108_s25 = scalar_lea.vmem %s89_s22, 1024  ;;  %p3113_p12 = scmp.lt.s32.totalorder %s89_s22, %s89_s22 }
  0x41   :  { %p3109_p11 = scmp.ne.s32.totalorder %s89_s22, %s3108_s25  ;;  %p3114_p13 = scmp.lt.s32.totalorder %s3108_s25, %s3108_s25 }
  0x43   :  { %p3115_p0 = por %p3114_p13, %p3113_p12 }
  0x45   :  { %p3116_p1 = pnand %p3115_p0, %p3109_p11 }
  0x47   :  { %3119 = shalt.err (!%p3116_p1)
}
  0x48   :  { %94 = dma.hbm_to_vmem [thread:$0]  %s3439_s7, 1024, %s89_s22, [#allocation16], %s3195_s0, %s3195_s0, %s3196_s18  }
  0x49   :  { %s3120_s6 = scalar_lea.vmem %s102_s24, 16  ;;  %p3125_p3 = scmp.lt.s32.totalorder %s102_s24, %s102_s24 }
  0x4a   :  { %p3121_p2 = scmp.ne.s32.totalorder %s102_s24, %s3120_s6  ;;  %p3126_p4 = scmp.lt.s32.totalorder %s3120_s6, %s3120_s6 }
  0x4c   :  { %p3127_p5 = por %p3126_p4, %p3125_p3 }
  0x4e   :  { %p3128_p6 = pnand %p3127_p5, %p3121_p2 }
  0x50   :  { %3131 = shalt.err (!%p3128_p6)
}
  0x51   :  { %s3198_s8 = smov [#allocation17]  }
  0x52   :  { %104 = dma.vmem_to_smem %s102_s24, 16, %s3198_s8, [#allocation8]  }
  0x53   :  { %3172 = dma.done.wait [#allocation6], 64  }
  0x54   :  { %3173 = vsyncadd [#allocation6], 4294967232 }
  0x55   :  { %3174 = dma.done.wait [#allocation10], 576  }
  0x56   :  { %3175 = vsyncadd [#allocation10], 4294966720 }
  0x57   :  { %3176 = dma.done.wait [#allocation13], 9216  }
  0x58   :  { %3177 = vsyncadd [#allocation13], 4294958080 }
  0x59   :  { %3178 = dma.done.wait [#allocation16], 1024  }
  0x5a   :  { %3179 = vsyncadd [#allocation16], 4294966272 }
  0x5b   :  { %3180 = dma.done.wait [#allocation8], 16  }
  0x5c   :  { %3181 = vsyncadd [#allocation8], 4294967280 }
  0x5d   :  { %126 = sfence }
  0x5e   :  { %v2882_v0 = vld [vmem:[#allocation9 + $0x4] ss:$16 sps:$4 sm:$0xff]   ;;  %v2884_v1 = vld [vmem:[#allocation9 + $0xc] ss:$16 sps:$4 sm:$0xff]   ;;  %v3199_v2 = vmov 0   ;;  %vm175_vm0 = vcmask 130048  }
  0x5f   :  { %211 = vmatprep.mubr.bf16.mxu0 %v3199_v2  ;;  %252 = vmatprep.mubr.bf16.mxu1 %v3199_v2  ;;  %v2886_v3 = vld [vmem:[#allocation9] ss:$16 sps:$4 sm:$0xff]   ;;  %v2887_v4 = vld [vmem:[#allocation9 + $0x8] ss:$16 sps:$4 sm:$0xff]   ;;  %v128_v7 = vld [vmem:[#allocation5] sm:$0xf] }
  0x60   :  { %193 = vmatprep.subr.bf16.mxu0 %v2882_v0  ;;  %234 = vmatprep.subr.bf16.mxu1 %v2884_v1  ;;  %v332_v5 = vld [vmem:[#allocation12 + $0x1e8] sm:$0xff]  ;;  %v334_v6 = vld [vmem:[#allocation12 + $0x1f8] sm:$0xff]  ;;  %v331_v8 = vld [vmem:[#allocation12 + $0x1e0] sm:$0xff]  ;;  %s3288_s1 = sld [smem:[#allocation17]] }
  0x61   :  { %194 = vmatpush1.bf16.msra.mxu0 %v2886_v3  ;;  %235 = vmatpush1.bf16.msra.mxu1 %v2887_v4  ;;  %v333_v9 = vld [vmem:[#allocation12 + $0x1f0] sm:$0xff]  ;;  %v328_v10 = vld [vmem:[#allocation12 + $0x1c8] sm:$0xff]  ;;  %v330_v11 = vld [vmem:[#allocation12 + $0x1d8] sm:$0xff] }
  0x62   :  { %335 = vmatprep.subr.mxu0 %v332_v5  ;;  %406 = vmatprep.subr.mxu1 %v334_v6  ;;  %v327_v12 = vld [vmem:[#allocation12 + $0x1c0] sm:$0xff]  ;;  %v329_v13 = vld [vmem:[#allocation12 + $0x1d0] sm:$0xff]  ;;  %v324_v14 = vld [vmem:[#allocation12 + $0x1a8] sm:$0xff] }
  0x63   :  { %v326_v15 = vld [vmem:[#allocation12 + $0x1b8] sm:$0xff]  ;;  %v323_v16 = vld [vmem:[#allocation12 + $0x1a0] sm:$0xff]  ;;  %v325_v17 = vld [vmem:[#allocation12 + $0x1b0] sm:$0xff] }
  0x64   :  { %2839 = vmatmul.mubr.msk.bf16.vlgmr.msra.gmra.mxu0 %vm175_vm0, %v128_v7  ;;  %2840 = vmatmul.mubr.msk.bf16.vlgmr.msra.gmra.mxu1 %vm175_vm0, %v128_v7  ;;  %v320_v18 = vld [vmem:[#allocation12 + $0x188] sm:$0xff]  ;;  %v322_v19 = vld [vmem:[#allocation12 + $0x198] sm:$0xff]  ;;  %v319_v20 = vld [vmem:[#allocation12 + $0x180] sm:$0xff] }
  0x65   :  { %336 = vmatpush1.msra.mxu0 %v331_v8  ;;  %407 = vmatpush1.msra.mxu1 %v333_v9  ;;  %v321_v21 = vld [vmem:[#allocation12 + $0x190] sm:$0xff]  ;;  %v316_v22 = vld [vmem:[#allocation12 + $0x168] sm:$0xff]  ;;  %v318_v23 = vld [vmem:[#allocation12 + $0x178] sm:$0xff]  ;;  %v3200_v8 = vmov 0.0  }
  0x66   :  { %337 = vmatprep.subr.mxu0 %v328_v10  ;;  %408 = vmatprep.subr.mxu1 %v330_v11  ;;  %v315_v24 = vld [vmem:[#allocation12 + $0x160] sm:$0xff]  ;;  %v317_v25 = vld [vmem:[#allocation12 + $0x170] sm:$0xff]  ;;  %v312_v26 = vld [vmem:[#allocation12 + $0x148] sm:$0xff]  ;;  %v135_v10 = vlaneseq  ;;  %p2842_p7 = scmp.le.s32.totalorder %s3288_s1, 0 }
  0x67   :  { %338 = vmatpush1.msra.mxu0 %v327_v12  ;;  %409 = vmatpush1.msra.mxu1 %v329_v13  ;;  %v314_v27 = vld [vmem:[#allocation12 + $0x158] sm:$0xff]  ;;  %v311_v28 = vld [vmem:[#allocation12 + $0x140] sm:$0xff]  ;;  %v313_v29 = vld [vmem:[#allocation12 + $0x150] sm:$0xff] }
  0x68   :  { %339 = vmatprep.subr.mxu0 %v324_v14  ;;  %410 = vmatprep.subr.mxu1 %v326_v15  ;;  %v308_v30 = vld [vmem:[#allocation12 + $0x128] sm:$0xff]  ;;  %v310_v31 = vld [vmem:[#allocation12 + $0x138] sm:$0xff]  ;;  %v307_v32 = vld [vmem:[#allocation12 + $0x120] sm:$0xff]  ;;  %v3290_v11 = vshrl.u32 %v135_v10, 7 }
  0x69   :  { %340 = vmatpush1.msra.mxu0 %v323_v16  ;;  %411 = vmatpush1.msra.mxu1 %v325_v17  ;;  %v309_v33 = vld [vmem:[#allocation12 + $0x130] sm:$0xff]  ;;  %v304_v34 = vld [vmem:[#allocation12 + $0x108] sm:$0xff]  ;;  %v306_v35 = vld [vmem:[#allocation12 + $0x118] sm:$0xff] }
  0x6a   :  { %341 = vmatprep.subr.mxu0 %v320_v18  ;;  %412 = vmatprep.subr.mxu1 %v322_v19  ;;  %v303_v36 = vld [vmem:[#allocation12 + $0x100] sm:$0xff]  ;;  %v305_v37 = vld [vmem:[#allocation12 + $0x110] sm:$0xff]  ;;  %v300_v38 = vld [vmem:[#allocation12 + $0xe8] sm:$0xff]  ;;  %v3293_v12 = vsub.s32 0, %v3290_v11  ;;  %v145_v13 = vsub.s32 2, %v3290_v11  ;;  %v141_v15 = vsub.s32 1, %v3290_v11 }
  0x6b   :  { %342 = vmatpush1.msra.mxu0 %v319_v20  ;;  %413 = vmatpush1.msra.mxu1 %v321_v21  ;;  %v302_v39 = vld [vmem:[#allocation12 + $0xf8] sm:$0xff]  ;;  %v299_v40 = vld [vmem:[#allocation12 + $0xe0] sm:$0xff]  ;;  %v301_v41 = vld [vmem:[#allocation12 + $0xf0] sm:$0xff]  ;;  %v149_v16 = vsub.s32 3, %v3290_v11 }
  0x6c   :  { %343 = vmatprep.subr.mxu0 %v316_v22  ;;  %414 = vmatprep.subr.mxu1 %v318_v23  ;;  %v296_v42 = vld [vmem:[#allocation12 + $0xc8] sm:$0xff]  ;;  %v298_v43 = vld [vmem:[#allocation12 + $0xd8] sm:$0xff]  ;;  %v295_v44 = vld [vmem:[#allocation12 + $0xc0] sm:$0xff] }
  0x6d   :  { %344 = vmatpush1.msra.mxu0 %v315_v24  ;;  %415 = vmatpush1.msra.mxu1 %v317_v25  ;;  %v297_v45 = vld [vmem:[#allocation12 + $0xd0] sm:$0xff]  ;;  %v292_v46 = vld [vmem:[#allocation12 + $0xa8] sm:$0xff]  ;;  %v294_v47 = vld [vmem:[#allocation12 + $0xb8] sm:$0xff] }
  0x6e   :  { %345 = vmatprep.subr.mxu0 %v312_v26  ;;  %416 = vmatprep.subr.mxu1 %v314_v27  ;;  %v265_v48 = vld [vmem:[%s3435_s3] sm:$0x1]  ;;  %v291_v49 = vld [vmem:[#allocation12 + $0xa0] sm:$0xff]  ;;  %v288_v51 = vld [vmem:[#allocation12 + $0x88] sm:$0xff] }
  0x6f   :  { %346 = vmatpush1.msra.mxu0 %v311_v28  ;;  %417 = vmatpush1.msra.mxu1 %v313_v29  ;;  %v293_v50 = vld [vmem:[#allocation12 + $0xb0] sm:$0xff]  ;;  %266 = vst [vmem:[#allocation3] sm:$0x1] %v265_v48  ;;  %v290_v52 = vld [vmem:[#allocation12 + $0x98] sm:$0xff]  ;;  %v287_v53 = vld [vmem:[#allocation12 + $0x80] sm:$0xff] }
  0x70   :  { %347 = vmatprep.subr.mxu0 %v308_v30  ;;  %418 = vmatprep.subr.mxu1 %v310_v31  ;;  %v289_v54 = vld [vmem:[#allocation12 + $0x90] sm:$0xff]  ;;  %v284_v55 = vld [vmem:[#allocation12 + $0x68] sm:$0xff]  ;;  %v286_v56 = vld [vmem:[#allocation12 + $0x78] sm:$0xff] }
  0x71   :  { %348 = vmatpush1.msra.mxu0 %v307_v32  ;;  %419 = vmatpush1.msra.mxu1 %v309_v33  ;;  %v283_v57 = vld [vmem:[#allocation12 + $0x60] sm:$0xff]  ;;  %v285_v58 = vld [vmem:[#allocation12 + $0x70] sm:$0xff]  ;;  %v280_v59 = vld [vmem:[#allocation12 + $0x48] sm:$0xff]  ;;  %v3201_v33 = vmov 1966171168  }
  0x72   :  { %349 = vmatprep.subr.mxu0 %v304_v34  ;;  %420 = vmatprep.subr.mxu1 %v306_v35  ;;  %v282_v60 = vld [vmem:[#allocation12 + $0x58] sm:$0xff]  ;;  %v279_v61 = vld [vmem:[#allocation12 + $0x40] sm:$0xff]  ;;  %v281_v62 = vld [vmem:[#allocation12 + $0x50] sm:$0xff]  ;;  %v484_v34 = vunpack.c.l.s4 %v3201_v33 }
  0x73   :  { %350 = vmatpush1.msra.mxu0 %v303_v36  ;;  %421 = vmatpush1.msra.mxu1 %v305_v37  ;;  %v276_v63 = vld [vmem:[#allocation12 + $0x28] sm:$0xff]  ;;  %v278_v0 = vld [vmem:[#allocation12 + $0x38] sm:$0xff]  ;;  %v275_v1 = vld [vmem:[#allocation12 + $0x20] sm:$0xff] }
  0x74   :  { %351 = vmatprep.subr.mxu0 %v300_v38  ;;  %422 = vmatprep.subr.mxu1 %v302_v39  ;;  %v277_v2 = vld [vmem:[#allocation12 + $0x30] sm:$0xff]  ;;  %v272_v3 = vld [vmem:[#allocation12 + $0x8] sm:$0xff]  ;;  %v274_v4 = vld [vmem:[#allocation12 + $0x18] sm:$0xff]  ;;  %v485_v35 = vunpack.c.0.s8 %v484_v34 }
  0x75   :  { %352 = vmatpush1.msra.mxu0 %v299_v40  ;;  %423 = vmatpush1.msra.mxu1 %v301_v41  ;;  %v271_v5 = vld [vmem:[#allocation12] sm:$0xff]  ;;  %v273_v6 = vld [vmem:[#allocation12 + $0x10] sm:$0xff]  ;;  %v133_v14 = vld [vmem:[#allocation11] sm:$0xf] }
  0x76   :  { %353 = vmatprep.subr.mxu0 %v296_v42  ;;  %424 = vmatprep.subr.mxu1 %v298_v43  ;;  %v270_v7 = vld [vmem:[#allocation3] sm:$0x1]  ;;  %v138_v17 = vrot.slane %v133_v14, %v3293_v12  ;;  %v146_v18 = vrot.slane %v133_v14, %v145_v13  ;;  %v142_v19 = vrot.slane %v133_v14, %v141_v15 }
  0x77   :  { %354 = vmatpush1.msra.mxu0 %v295_v44  ;;  %425 = vmatpush1.msra.mxu1 %v297_v45  ;;  %v267_v9 = vld [vmem:[%s3436_s4] sm:$0x1]  ;;  %v150_v20 = vrot.slane %v133_v14, %v149_v16  ;;  %v3300_v38 = vsub.s32 %v485_v35, %v3290_v11 }
  0x78   :  { %355 = vmatprep.subr.mxu0 %v292_v46  ;;  %426 = vmatprep.subr.mxu1 %v294_v47  ;;  %268 = vst [vmem:[#allocation4] sm:$0x1] %v267_v9 }
  0x79   :  { %356 = vmatpush1.msra.mxu0 %v291_v49  ;;  %427 = vmatpush1.msra.mxu1 %v293_v50 }
  0x7a   :  { %357 = vmatprep.subr.mxu0 %v288_v51  ;;  %428 = vmatprep.subr.mxu1 %v290_v52 }
  0x7b   :  { %358 = vmatpush1.msra.mxu0 %v287_v53  ;;  %429 = vmatpush1.msra.mxu1 %v289_v54 }
  0x7c   :  { %359 = vmatprep.subr.mxu0 %v284_v55  ;;  %430 = vmatprep.subr.mxu1 %v286_v56 }
  0x7d   :  { %360 = vmatpush1.msra.mxu0 %v283_v57  ;;  %431 = vmatpush1.msra.mxu1 %v285_v58 }
  0x7e   :  { %361 = vmatprep.subr.mxu0 %v280_v59  ;;  %432 = vmatprep.subr.mxu1 %v282_v60 }
  0x7f   :  { %362 = vmatpush1.msra.mxu0 %v279_v61  ;;  %433 = vmatpush1.msra.mxu1 %v281_v62  ;;  %v517_v54 = vld [vmem:[#allocation4] sm:$0x1] }
  0x80   :  { %363 = vmatprep.subr.mxu0 %v276_v63  ;;  %434 = vmatprep.subr.mxu1 %v278_v0 }
  0x81   :  { %364 = vmatpush1.msra.mxu0 %v275_v1  ;;  %435 = vmatpush1.msra.mxu1 %v277_v2 }
  0x82   :  { %365 = vmatprep.subr.mxu0 %v272_v3  ;;  %436 = vmatprep.subr.mxu1 %v274_v4 }
  0x83   :  { %366 = vmatpush1.msra.mxu0 %v271_v5  ;;  %399 = vmatprep.mubr.f32.mxu0 %v3200_v8 }
  0x84   :  { %437 = vmatpush1.msra.mxu1 %v273_v6  ;;  %470 = vmatprep.mubr.f32.mxu1 %v3200_v8 }
  0x85   :  { %400 = vmatmul.mubr.f32.vlgmr.msra.gmra.mxu0 %v270_v7  ;;  %471 = vmatmul.mubr.f32.vlgmr.msra.gmra.mxu1 %v270_v7 }
 0x124   :  { %v213_v21 = vpop.f32.mrf.mxu0  ;;  %v254_v22 = vpop.f32.mrf.mxu1 }
 0x125   :  { %v214_v23 = vadd.f32 %v213_v21, %v138_v17  ;;  %v255_v24 = vadd.f32 %v254_v22, %v146_v18 }
 0x126   :  { %v215_v25 = vpop.f32.mrf.mxu0  ;;  %v256_v26 = vpop.f32.mrf.mxu1 }
 0x127   :  { %261 = vst [vmem:[#allocation2] sm:$0xff] %v214_v23  ;;  %263 = vst [vmem:[#allocation2 + $0x10] sm:$0xff] %v255_v24  ;;  %v216_v27 = vadd.f32 %v215_v25, %v142_v19  ;;  %v257_v28 = vadd.f32 %v256_v26, %v150_v20 }
 0x128   :  { %v217_v29 = vpop.f32.mrf.mxu0  ;;  %v258_v30 = vpop.f32.mrf.mxu1 }
 0x129   :  { %262 = vst [vmem:[#allocation2 + $0x8] sm:$0xff] %v216_v27  ;;  %264 = vst [vmem:[#allocation2 + $0x18] sm:$0xff] %v257_v28 }
 0x12a   :  { %v218_v31 = vpop.f32.mrf.mxu0  ;;  %v259_v32 = vpop.f32.mrf.mxu1 }
 0x130   :  { %v269_v47 = vld [vmem:[#allocation2] ss:$8 sm:$0xf] }
 0x145   :  { %v401_v36 = vpop.f32.mrf.mxu0  ;;  %v472_v37 = vpop.f32.mrf.mxu1 }
 0x147   :  { %v403_v39 = vpop.f32.mrf.mxu0  ;;  %v474_v40 = vpop.f32.mrf.mxu1 }
 0x148   :  { %v481_v41 = vcombine.low %v401_v36, %v403_v39  ;;  %v482_v42 = vcombine.low %v472_v37, %v474_v40 }
 0x14a   :  { %v489_v43 = vrot.slane %v481_v41, %v3300_v38  ;;  %v496_v44 = vrot.slane %v482_v42, %v3300_v38 }
 0x14c   :  { %v497_v45 = vcombine.low %v489_v43, %v496_v44 }
 0x14e   :  { %v504_v46 = vrot.slane %v497_v45, %v3300_v38 }
 0x150   :  { %v506_v48 = vadd.f32 %v504_v46, %v269_v47 }
 0x152   :  { %v2841_v49 = vmul.f32 -1.442695, %v506_v48  ;;  %v514_v52 = vrot.slane %v506_v48, 3 }
 0x154   :  { %2888 = vpow2.f32 %v2841_v49 }
 0x161   :  { %v2889_v50 = vpop.eup %2888 }
 0x162   :  { %v510_v51 = vadd.f32 1.0, %v2889_v50 }
 0x164   :  { %2890 = vrcp.f32 %v510_v51 }
 0x165   :  { %2892 = vtanh.f32 %v514_v52 }
 0x171   :  { %v3305_v53 = vpop.eup %2890 }
 0x172   :  { %v520_v55 = vrot.slane %v3305_v53, 1  ;;  %v2893_v56 = vpop.eup %2892  ;;  %v518_v57 = vmul.f32 %v3305_v53, %v517_v54 }
 0x174   :  { %v522_v58 = vmul.f32 %v2893_v56, %v520_v55  ;;  %529 = sbr.rel (%p2842_p7) target bundleno = 445 (0x1bd), region = 69 }
 0x176   :  { %v523_v59 = vadd.f32 %v522_v58, %v518_v57 }
 0x178   :  { %524 = vst [vmem:[#allocation4] sm:$0x1] %v523_v59 }
 0x179   :  { %v530_v60 = vld [vmem:[#allocation15] sm:$0xff]  ;;  %v534_v61 = vstv %s3288_s1 }
 0x17a   :  { %vm535_vm1 = vcmp.lt.s32.totalorder %v3290_v11, %v534_v61  ;;  %v531_v14 = vld [vmem:[#allocation14] sm:$0xff] }
 0x17b   :  { %v536_v62 = vsel %vm535_vm1, %v530_v60, -inf }
 0x17c   :  { %v537_v63 = vrot.slane %v536_v62, 4 }
 0x17e   :  { %v538_v0 = vmax.f32 %v536_v62, %v537_v63 }
 0x180   :  { %v539_v1 = vrot.slane %v538_v0, 2 }
 0x182   :  { %v540_v2 = vmax.f32 %v538_v0, %v539_v1 }
 0x184   :  { %v541_v3 = vrot.slane %v540_v2, 1 }
 0x186   :  { %v542_v4 = vmax.f32 %v540_v2, %v541_v3 }
 0x188   :  { %v543_v5 = vmax.f32 %v520_v55, %v542_v4 }
 0x18a   :  { %v551_v6 = vrot.slane %v543_v5, %v3293_v12  ;;  %v544_v10 = vsub.f32 %v520_v55, %v543_v5 }
 0x18c   :  { %v553_v7 = vsub.f32 %v536_v62, %v551_v6  ;;  %v545_v13 = vmul.f32 1.442695, %v544_v10 }
 0x18e   :  { %v554_v9 = vmul.f32 1.442695, %v553_v7 }
 0x190   :  { %2894 = vpow2.f32 %v554_v9 }
 0x191   :  { %2896 = vpow2.f32 %v545_v13 }
 0x19d   :  { %v2895_v15 = vpop.eup %2894 }
 0x19e   :  { %v556_v16 = vrot.slane %v2895_v15, 4  ;;  %v564_v17 = vmul.f32 %v2895_v15, %v531_v14  ;;  %v2897_v25 = vpop.eup %2896 }
 0x19f   :  { %v563_v30 = vmul.f32 %v2897_v25, %v2893_v56 }
 0x1a0   :  { %v557_v18 = vadd.f32 %v2895_v15, %v556_v16  ;;  %v565_v19 = vrot.slane %v564_v17, 4 }
 0x1a2   :  { %v558_v20 = vrot.slane %v557_v18, 2  ;;  %v566_v21 = vadd.f32 %v565_v19, %v564_v17 }
 0x1a4   :  { %v559_v22 = vadd.f32 %v558_v20, %v557_v18  ;;  %v567_v24 = vrot.slane %v566_v21, 2 }
 0x1a6   :  { %v560_v23 = vrot.slane %v559_v22, 1  ;;  %v568_v28 = vadd.f32 %v567_v24, %v566_v21 }
 0x1a8   :  { %v561_v26 = vadd.f32 %v560_v23, %v559_v22  ;;  %v569_v29 = vrot.slane %v568_v28, 1 }
 0x1aa   :  { %v562_v27 = vadd.f32 %v2897_v25, %v561_v26  ;;  %v570_v31 = vadd.f32 %v569_v29, %v568_v28 }
 0x1ac   :  { %2898 = vrcp.f32 %v562_v27  ;;  %v571_v32 = vadd.f32 %v570_v31, %v563_v30 }
 0x1b9   :  { %v2899_v33 = vpop.eup %2898 }
 0x1ba   :  { %v573_v34 = vmul.f32 %v2899_v33, %v571_v32 }
 0x1bc   :  { %574 = vst [vmem:[#allocation4] sm:$0x1] %v573_v34 }
 0x1bd PF:  { %v647_v35 = vld [vmem:[#allocation12 + $0x1e8] sm:$0xff]  ;;  %v649_v36 = vld [vmem:[#allocation12 + $0x1f8] sm:$0xff]  ;;  %v646_v37 = vld [vmem:[#allocation12 + $0x1e0] sm:$0xff]  ;;  %714 = vmatprep.mubr.f32.mxu0 %v3200_v8  ;;  %785 = vmatprep.mubr.f32.mxu1 %v3200_v8  ;;  %s3316_s4 = sld [smem:[#allocation17 + $0x1]] }
 0x1be   :  { %650 = vmatprep.subr.mxu0 %v647_v35  ;;  %721 = vmatprep.subr.mxu1 %v649_v36  ;;  %v648_v39 = vld [vmem:[#allocation12 + $0x1f0] sm:$0xff]  ;;  %v643_v40 = vld [vmem:[#allocation12 + $0x1c8] sm:$0xff]  ;;  %v645_v41 = vld [vmem:[#allocation12 + $0x1d8] sm:$0xff] }
 0x1bf   :  { %651 = vmatpush1.msra.mxu0 %v646_v37  ;;  %722 = vmatpush1.msra.mxu1 %v648_v39  ;;  %v642_v42 = vld [vmem:[#allocation12 + $0x1c0] sm:$0xff]  ;;  %v644_v43 = vld [vmem:[#allocation12 + $0x1d0] sm:$0xff]  ;;  %v639_v44 = vld [vmem:[#allocation12 + $0x1a8] sm:$0xff] }
 0x1c0   :  { %652 = vmatprep.subr.mxu0 %v643_v40  ;;  %723 = vmatprep.subr.mxu1 %v645_v41  ;;  %v641_v45 = vld [vmem:[#allocation12 + $0x1b8] sm:$0xff]  ;;  %v638_v46 = vld [vmem:[#allocation12 + $0x1a0] sm:$0xff]  ;;  %v640_v47 = vld [vmem:[#allocation12 + $0x1b0] sm:$0xff] }
 0x1c1   :  { %653 = vmatpush1.msra.mxu0 %v642_v42  ;;  %724 = vmatpush1.msra.mxu1 %v644_v43  ;;  %v635_v48 = vld [vmem:[#allocation12 + $0x188] sm:$0xff]  ;;  %v637_v49 = vld [vmem:[#allocation12 + $0x198] sm:$0xff]  ;;  %v634_v50 = vld [vmem:[#allocation12 + $0x180] sm:$0xff]  ;;  %v577_v42 = vrot.slane %v3305_v53, 2 }
 0x1c2   :  { %654 = vmatprep.subr.mxu0 %v639_v44  ;;  %725 = vmatprep.subr.mxu1 %v641_v45  ;;  %v636_v51 = vld [vmem:[#allocation12 + $0x190] sm:$0xff]  ;;  %v631_v52 = vld [vmem:[#allocation12 + $0x168] sm:$0xff]  ;;  %v633_v54 = vld [vmem:[#allocation12 + $0x178] sm:$0xff] }
 0x1c3   :  { %655 = vmatpush1.msra.mxu0 %v638_v46  ;;  %726 = vmatpush1.msra.mxu1 %v640_v47  ;;  %v630_v55 = vld [vmem:[#allocation12 + $0x160] sm:$0xff]  ;;  %v632_v56 = vld [vmem:[#allocation12 + $0x170] sm:$0xff]  ;;  %v627_v57 = vld [vmem:[#allocation12 + $0x148] sm:$0xff]  ;;  %p2845_p8 = scmp.le.s32.totalorder %s3316_s4, 0 }
 0x1c4   :  { %656 = vmatprep.subr.mxu0 %v635_v48  ;;  %727 = vmatprep.subr.mxu1 %v637_v49  ;;  %v629_v58 = vld [vmem:[#allocation12 + $0x158] sm:$0xff]  ;;  %v626_v59 = vld [vmem:[#allocation12 + $0x140] sm:$0xff]  ;;  %v628_v60 = vld [vmem:[#allocation12 + $0x150] sm:$0xff] }
 0x1c5   :  { %657 = vmatpush1.msra.mxu0 %v634_v50  ;;  %728 = vmatpush1.msra.mxu1 %v636_v51  ;;  %v623_v61 = vld [vmem:[#allocation12 + $0x128] sm:$0xff]  ;;  %v625_v62 = vld [vmem:[#allocation12 + $0x138] sm:$0xff]  ;;  %v622_v63 = vld [vmem:[#allocation12 + $0x120] sm:$0xff] }
 0x1c6   :  { %658 = vmatprep.subr.mxu0 %v631_v52  ;;  %729 = vmatprep.subr.mxu1 %v633_v54  ;;  %v624_v0 = vld [vmem:[#allocation12 + $0x130] sm:$0xff]  ;;  %v619_v1 = vld [vmem:[#allocation12 + $0x108] sm:$0xff]  ;;  %v621_v2 = vld [vmem:[#allocation12 + $0x118] sm:$0xff] }
 0x1c7   :  { %659 = vmatpush1.msra.mxu0 %v630_v55  ;;  %730 = vmatpush1.msra.mxu1 %v632_v56  ;;  %v618_v3 = vld [vmem:[#allocation12 + $0x100] sm:$0xff]  ;;  %v620_v4 = vld [vmem:[#allocation12 + $0x110] sm:$0xff]  ;;  %v615_v5 = vld [vmem:[#allocation12 + $0xe8] sm:$0xff] }
 0x1c8   :  { %660 = vmatprep.subr.mxu0 %v627_v57  ;;  %731 = vmatprep.subr.mxu1 %v629_v58  ;;  %v617_v6 = vld [vmem:[#allocation12 + $0xf8] sm:$0xff]  ;;  %v614_v7 = vld [vmem:[#allocation12 + $0xe0] sm:$0xff]  ;;  %v616_v9 = vld [vmem:[#allocation12 + $0xf0] sm:$0xff] }
 0x1c9   :  { %661 = vmatpush1.msra.mxu0 %v626_v59  ;;  %732 = vmatpush1.msra.mxu1 %v628_v60  ;;  %v611_v10 = vld [vmem:[#allocation12 + $0xc8] sm:$0xff]  ;;  %v613_v13 = vld [vmem:[#allocation12 + $0xd8] sm:$0xff]  ;;  %v610_v14 = vld [vmem:[#allocation12 + $0xc0] sm:$0xff] }
 0x1ca   :  { %662 = vmatprep.subr.mxu0 %v623_v61  ;;  %733 = vmatprep.subr.mxu1 %v625_v62  ;;  %v612_v15 = vld [vmem:[#allocation12 + $0xd0] sm:$0xff]  ;;  %v607_v16 = vld [vmem:[#allocation12 + $0xa8] sm:$0xff]  ;;  %v609_v17 = vld [vmem:[#allocation12 + $0xb8] sm:$0xff] }
 0x1cb   :  { %663 = vmatpush1.msra.mxu0 %v622_v63  ;;  %734 = vmatpush1.msra.mxu1 %v624_v0  ;;  %v606_v18 = vld [vmem:[#allocation12 + $0xa0] sm:$0xff]  ;;  %v608_v19 = vld [vmem:[#allocation12 + $0xb0] sm:$0xff]  ;;  %v603_v20 = vld [vmem:[#allocation12 + $0x88] sm:$0xff] }
 0x1cc   :  { %664 = vmatprep.subr.mxu0 %v619_v1  ;;  %735 = vmatprep.subr.mxu1 %v621_v2  ;;  %v605_v21 = vld [vmem:[#allocation12 + $0x98] sm:$0xff]  ;;  %v602_v22 = vld [vmem:[#allocation12 + $0x80] sm:$0xff]  ;;  %v604_v23 = vld [vmem:[#allocation12 + $0x90] sm:$0xff] }
 0x1cd   :  { %665 = vmatpush1.msra.mxu0 %v618_v3  ;;  %736 = vmatpush1.msra.mxu1 %v620_v4  ;;  %v575_v24 = vld [vmem:[#allocation4] sm:$0x1]  ;;  %v599_v25 = vld [vmem:[#allocation12 + $0x68] sm:$0xff]  ;;  %v601_v26 = vld [vmem:[#allocation12 + $0x78] sm:$0xff] }
 0x1ce   :  { %666 = vmatprep.subr.mxu0 %v615_v5  ;;  %737 = vmatprep.subr.mxu1 %v617_v6  ;;  %2900 = vtanh.f32 %v575_v24  ;;  %582 = vst [vmem:[#allocation19] sm:$0x1] %v575_v24  ;;  %v598_v27 = vld [vmem:[#allocation12 + $0x60] sm:$0xff]  ;;  %v600_v28 = vld [vmem:[#allocation12 + $0x70] sm:$0xff]  ;;  %v595_v29 = vld [vmem:[#allocation12 + $0x48] sm:$0xff] }
 0x1cf   :  { %667 = vmatpush1.msra.mxu0 %v614_v7  ;;  %738 = vmatpush1.msra.mxu1 %v616_v9  ;;  %v597_v30 = vld [vmem:[#allocation12 + $0x58] sm:$0xff]  ;;  %v594_v31 = vld [vmem:[#allocation12 + $0x40] sm:$0xff]  ;;  %v596_v32 = vld [vmem:[#allocation12 + $0x50] sm:$0xff] }
 0x1d0   :  { %668 = vmatprep.subr.mxu0 %v611_v10  ;;  %739 = vmatprep.subr.mxu1 %v613_v13  ;;  %v591_v33 = vld [vmem:[#allocation12 + $0x28] sm:$0xff]  ;;  %v593_v34 = vld [vmem:[#allocation12 + $0x38] sm:$0xff]  ;;  %v590_v35 = vld [vmem:[#allocation12 + $0x20] sm:$0xff] }
 0x1d1   :  { %669 = vmatpush1.msra.mxu0 %v610_v14  ;;  %740 = vmatpush1.msra.mxu1 %v612_v15  ;;  %v592_v36 = vld [vmem:[#allocation12 + $0x30] sm:$0xff]  ;;  %v587_v37 = vld [vmem:[#allocation12 + $0x8] sm:$0xff]  ;;  %v589_v39 = vld [vmem:[#allocation12 + $0x18] sm:$0xff] }
 0x1d2   :  { %670 = vmatprep.subr.mxu0 %v607_v16  ;;  %741 = vmatprep.subr.mxu1 %v609_v17  ;;  %v586_v40 = vld [vmem:[#allocation12] sm:$0xff]  ;;  %v588_v41 = vld [vmem:[#allocation12 + $0x10] sm:$0xff] }
 0x1d3   :  { %671 = vmatpush1.msra.mxu0 %v606_v18  ;;  %742 = vmatpush1.msra.mxu1 %v608_v19  ;;  %v584_v55 = vld [vmem:[#allocation2 + $0x1] ss:$8 sm:$0xf] }
 0x1d4   :  { %672 = vmatprep.subr.mxu0 %v603_v20  ;;  %743 = vmatprep.subr.mxu1 %v605_v21  ;;  %v832_v63 = vld [vmem:[#allocation4] sm:$0x1] }
 0x1d5   :  { %673 = vmatpush1.msra.mxu0 %v602_v22  ;;  %744 = vmatpush1.msra.mxu1 %v604_v23 }
 0x1d6   :  { %674 = vmatprep.subr.mxu0 %v599_v25  ;;  %745 = vmatprep.subr.mxu1 %v601_v26 }
 0x1d7   :  { %675 = vmatpush1.msra.mxu0 %v598_v27  ;;  %746 = vmatpush1.msra.mxu1 %v600_v28 }
 0x1d8   :  { %676 = vmatprep.subr.mxu0 %v595_v29  ;;  %747 = vmatprep.subr.mxu1 %v597_v30 }
 0x1d9   :  { %677 = vmatpush1.msra.mxu0 %v594_v31  ;;  %748 = vmatpush1.msra.mxu1 %v596_v32 }
 0x1da   :  { %678 = vmatprep.subr.mxu0 %v591_v33  ;;  %749 = vmatprep.subr.mxu1 %v593_v34 }
 0x1db   :  { %679 = vmatpush1.msra.mxu0 %v590_v35  ;;  %750 = vmatpush1.msra.mxu1 %v592_v36  ;;  %v2901_v43 = vpop.eup %2900 }
 0x1dc   :  { %680 = vmatprep.subr.mxu0 %v587_v37  ;;  %751 = vmatprep.subr.mxu1 %v589_v39  ;;  %v579_v44 = vmul.f32 %v2901_v43, %v577_v42 }
 0x1dd   :  { %681 = vmatpush1.msra.mxu0 %v586_v40  ;;  %752 = vmatpush1.msra.mxu1 %v588_v41 }
 0x1de   :  { %580 = vst [vmem:[#allocation3] sm:$0x1] %v579_v44  ;;  %581 = vst [vmem:[#allocation18] sm:$0x1] %v579_v44 }
 0x1e5   :  { %v585_v45 = vld [vmem:[#allocation3] sm:$0x1] }
 0x1e6   :  { %715 = vmatmul.mubr.f32.vlgmr.msra.gmra.mxu0 %v585_v45  ;;  %786 = vmatmul.mubr.f32.vlgmr.msra.gmra.mxu1 %v585_v45 }
 0x2a6   :  { %v716_v46 = vpop.f32.mrf.mxu0  ;;  %v787_v47 = vpop.f32.mrf.mxu1 }
 0x2a8   :  { %v718_v48 = vpop.f32.mrf.mxu0  ;;  %v789_v49 = vpop.f32.mrf.mxu1 }
 0x2a9   :  { %v796_v50 = vcombine.low %v716_v46, %v718_v48  ;;  %v797_v51 = vcombine.low %v787_v47, %v789_v49 }
 0x2ab   :  { %v804_v52 = vrot.slane %v796_v50, %v3300_v38  ;;  %v811_v54 = vrot.slane %v797_v51, %v3300_v38 }
 0x2ad   :  { %v812_v53 = vcombine.low %v804_v52, %v811_v54 }
 0x2af   :  { %v819_v56 = vrot.slane %v812_v53, %v3300_v38 }
 0x2b1   :  { %v821_v57 = vadd.f32 %v819_v56, %v584_v55 }
 0x2b3   :  { %v2843_v58 = vmul.f32 -1.442695, %v821_v57  ;;  %v829_v61 = vrot.slane %v821_v57, 3 }
 0x2b5   :  { %2902 = vpow2.f32 %v2843_v58 }
 0x2c2   :  { %v2903_v59 = vpop.eup %2902 }
 0x2c3   :  { %v825_v60 = vadd.f32 1.0, %v2903_v59 }
 0x2c5   :  { %2904 = vrcp.f32 %v825_v60 }
 0x2c6   :  { %2906 = vtanh.f32 %v829_v61 }
 0x2d2   :  { %v3321_v62 = vpop.eup %2904 }
 0x2d3   :  { %v835_v0 = vrot.slane %v3321_v62, 1  ;;  %v2907_v1 = vpop.eup %2906  ;;  %v833_v2 = vmul.f32 %v3321_v62, %v832_v63 }
 0x2d5   :  { %v837_v3 = vmul.f32 %v2907_v1, %v835_v0  ;;  %844 = sbr.rel (%p2845_p8) target bundleno = 798 (0x31e), region = 73 }
 0x2d7   :  { %v838_v4 = vadd.f32 %v837_v3, %v833_v2 }
 0x2d9   :  { %839 = vst [vmem:[#allocation4] sm:$0x1] %v838_v4 }
 0x2da   :  { %v846_v5 = vld [vmem:[#allocation15 + $0x8] sm:$0xff]  ;;  %v851_v6 = vstv %s3316_s4 }
 0x2db   :  { %vm852_vm2 = vcmp.lt.s32.totalorder %v3290_v11, %v851_v6  ;;  %v848_v23 = vld [vmem:[#allocation14 + $0x8] sm:$0xff] }
 0x2dc   :  { %v853_v7 = vsel %vm852_vm2, %v846_v5, -inf }
 0x2dd   :  { %v854_v9 = vrot.slane %v853_v7, 4 }
 0x2df   :  { %v855_v10 = vmax.f32 %v853_v7, %v854_v9 }
 0x2e1   :  { %v856_v13 = vrot.slane %v855_v10, 2 }
 0x2e3   :  { %v857_v14 = vmax.f32 %v855_v10, %v856_v13 }
 0x2e5   :  { %v858_v15 = vrot.slane %v857_v14, 1 }
 0x2e7   :  { %v859_v16 = vmax.f32 %v857_v14, %v858_v15 }
 0x2e9   :  { %v860_v17 = vmax.f32 %v835_v0, %v859_v16 }
 0x2eb   :  { %v868_v18 = vrot.slane %v860_v17, %v3293_v12  ;;  %v861_v21 = vsub.f32 %v835_v0, %v860_v17 }
 0x2ed   :  { %v870_v19 = vsub.f32 %v853_v7, %v868_v18  ;;  %v862_v22 = vmul.f32 1.442695, %v861_v21 }
 0x2ef   :  { %v871_v20 = vmul.f32 1.442695, %v870_v19 }
 0x2f1   :  { %2908 = vpow2.f32 %v871_v20 }
 0x2f2   :  { %2910 = vpow2.f32 %v862_v22 }
 0x2fe   :  { %v2909_v24 = vpop.eup %2908 }
 0x2ff   :  { %v873_v25 = vrot.slane %v2909_v24, 4  ;;  %v881_v26 = vmul.f32 %v2909_v24, %v848_v23  ;;  %v2911_v34 = vpop.eup %2910 }
 0x300   :  { %v880_v40 = vmul.f32 %v2911_v34, %v2907_v1 }
 0x301   :  { %v874_v27 = vadd.f32 %v2909_v24, %v873_v25  ;;  %v882_v28 = vrot.slane %v881_v26, 4 }
 0x303   :  { %v875_v29 = vrot.slane %v874_v27, 2  ;;  %v883_v30 = vadd.f32 %v882_v28, %v881_v26 }
 0x305   :  { %v876_v31 = vadd.f32 %v875_v29, %v874_v27  ;;  %v884_v33 = vrot.slane %v883_v30, 2 }
 0x307   :  { %v877_v32 = vrot.slane %v876_v31, 1  ;;  %v885_v37 = vadd.f32 %v884_v33, %v883_v30 }
 0x309   :  { %v878_v35 = vadd.f32 %v877_v32, %v876_v31  ;;  %v886_v39 = vrot.slane %v885_v37, 1 }
 0x30b   :  { %v879_v36 = vadd.f32 %v2911_v34, %v878_v35  ;;  %v887_v41 = vadd.f32 %v886_v39, %v885_v37 }
 0x30d   :  { %2912 = vrcp.f32 %v879_v36  ;;  %v888_v42 = vadd.f32 %v887_v41, %v880_v40 }
 0x31a   :  { %v2913_v43 = vpop.eup %2912 }
 0x31b   :  { %v890_v44 = vmul.f32 %v2913_v43, %v888_v42 }
 0x31d   :  { %891 = vst [vmem:[#allocation4] sm:$0x1] %v890_v44 }
 0x31e PF:  { %v964_v45 = vld [vmem:[#allocation12 + $0x1e8] sm:$0xff]  ;;  %v966_v46 = vld [vmem:[#allocation12 + $0x1f8] sm:$0xff]  ;;  %v963_v47 = vld [vmem:[#allocation12 + $0x1e0] sm:$0xff]  ;;  %1031 = vmatprep.mubr.f32.mxu0 %v3200_v8  ;;  %1102 = vmatprep.mubr.f32.mxu1 %v3200_v8  ;;  %s3332_s30 = sld [smem:[#allocation17 + $0x2]] }
 0x31f   :  { %967 = vmatprep.subr.mxu0 %v964_v45  ;;  %1038 = vmatprep.subr.mxu1 %v966_v46  ;;  %v965_v48 = vld [vmem:[#allocation12 + $0x1f0] sm:$0xff]  ;;  %v960_v49 = vld [vmem:[#allocation12 + $0x1c8] sm:$0xff]  ;;  %v962_v50 = vld [vmem:[#allocation12 + $0x1d8] sm:$0xff] }
 0x320   :  { %968 = vmatpush1.msra.mxu0 %v963_v47  ;;  %1039 = vmatpush1.msra.mxu1 %v965_v48  ;;  %v959_v51 = vld [vmem:[#allocation12 + $0x1c0] sm:$0xff]  ;;  %v961_v52 = vld [vmem:[#allocation12 + $0x1d0] sm:$0xff]  ;;  %v956_v54 = vld [vmem:[#allocation12 + $0x1a8] sm:$0xff] }
 0x321   :  { %969 = vmatprep.subr.mxu0 %v960_v49  ;;  %1040 = vmatprep.subr.mxu1 %v962_v50  ;;  %v958_v53 = vld [vmem:[#allocation12 + $0x1b8] sm:$0xff]  ;;  %v955_v55 = vld [vmem:[#allocation12 + $0x1a0] sm:$0xff]  ;;  %v957_v56 = vld [vmem:[#allocation12 + $0x1b0] sm:$0xff] }
 0x322   :  { %970 = vmatpush1.msra.mxu0 %v959_v51  ;;  %1041 = vmatpush1.msra.mxu1 %v961_v52  ;;  %v952_v57 = vld [vmem:[#allocation12 + $0x188] sm:$0xff]  ;;  %v954_v58 = vld [vmem:[#allocation12 + $0x198] sm:$0xff]  ;;  %v951_v59 = vld [vmem:[#allocation12 + $0x180] sm:$0xff]  ;;  %v894_v51 = vrot.slane %v3321_v62, 2 }
 0x323   :  { %971 = vmatprep.subr.mxu0 %v956_v54  ;;  %1042 = vmatprep.subr.mxu1 %v958_v53  ;;  %v953_v60 = vld [vmem:[#allocation12 + $0x190] sm:$0xff]  ;;  %v948_v61 = vld [vmem:[#allocation12 + $0x168] sm:$0xff]  ;;  %v950_v63 = vld [vmem:[#allocation12 + $0x178] sm:$0xff] }
 0x324   :  { %972 = vmatpush1.msra.mxu0 %v955_v55  ;;  %1043 = vmatpush1.msra.mxu1 %v957_v56  ;;  %v947_v0 = vld [vmem:[#allocation12 + $0x160] sm:$0xff]  ;;  %v949_v1 = vld [vmem:[#allocation12 + $0x170] sm:$0xff]  ;;  %v944_v2 = vld [vmem:[#allocation12 + $0x148] sm:$0xff]  ;;  %p2848_p9 = scmp.le.s32.totalorder %s3332_s30, 0 }
 0x325   :  { %973 = vmatprep.subr.mxu0 %v952_v57  ;;  %1044 = vmatprep.subr.mxu1 %v954_v58  ;;  %v946_v3 = vld [vmem:[#allocation12 + $0x158] sm:$0xff]  ;;  %v943_v4 = vld [vmem:[#allocation12 + $0x140] sm:$0xff]  ;;  %v945_v5 = vld [vmem:[#allocation12 + $0x150] sm:$0xff] }
 0x326   :  { %974 = vmatpush1.msra.mxu0 %v951_v59  ;;  %1045 = vmatpush1.msra.mxu1 %v953_v60  ;;  %v940_v6 = vld [vmem:[#allocation12 + $0x128] sm:$0xff]  ;;  %v942_v7 = vld [vmem:[#allocation12 + $0x138] sm:$0xff]  ;;  %v939_v9 = vld [vmem:[#allocation12 + $0x120] sm:$0xff] }
 0x327   :  { %975 = vmatprep.subr.mxu0 %v948_v61  ;;  %1046 = vmatprep.subr.mxu1 %v950_v63  ;;  %v941_v10 = vld [vmem:[#allocation12 + $0x130] sm:$0xff]  ;;  %v936_v13 = vld [vmem:[#allocation12 + $0x108] sm:$0xff]  ;;  %v938_v14 = vld [vmem:[#allocation12 + $0x118] sm:$0xff] }
 0x328   :  { %976 = vmatpush1.msra.mxu0 %v947_v0  ;;  %1047 = vmatpush1.msra.mxu1 %v949_v1  ;;  %v935_v15 = vld [vmem:[#allocation12 + $0x100] sm:$0xff]  ;;  %v937_v16 = vld [vmem:[#allocation12 + $0x110] sm:$0xff]  ;;  %v932_v17 = vld [vmem:[#allocation12 + $0xe8] sm:$0xff] }
 0x329   :  { %977 = vmatprep.subr.mxu0 %v944_v2  ;;  %1048 = vmatprep.subr.mxu1 %v946_v3  ;;  %v934_v18 = vld [vmem:[#allocation12 + $0xf8] sm:$0xff]  ;;  %v931_v19 = vld [vmem:[#allocation12 + $0xe0] sm:$0xff]  ;;  %v933_v20 = vld [vmem:[#allocation12 + $0xf0] sm:$0xff] }
 0x32a   :  { %978 = vmatpush1.msra.mxu0 %v943_v4  ;;  %1049 = vmatpush1.msra.mxu1 %v945_v5  ;;  %v928_v21 = vld [vmem:[#allocation12 + $0xc8] sm:$0xff]  ;;  %v930_v22 = vld [vmem:[#allocation12 + $0xd8] sm:$0xff]  ;;  %v927_v23 = vld [vmem:[#allocation12 + $0xc0] sm:$0xff] }
 0x32b   :  { %979 = vmatprep.subr.mxu0 %v940_v6  ;;  %1050 = vmatprep.subr.mxu1 %v942_v7  ;;  %v929_v24 = vld [vmem:[#allocation12 + $0xd0] sm:$0xff]  ;;  %v924_v25 = vld [vmem:[#allocation12 + $0xa8] sm:$0xff]  ;;  %v926_v26 = vld [vmem:[#allocation12 + $0xb8] sm:$0xff] }
 0x32c   :  { %980 = vmatpush1.msra.mxu0 %v939_v9  ;;  %1051 = vmatpush1.msra.mxu1 %v941_v10  ;;  %v923_v27 = vld [vmem:[#allocation12 + $0xa0] sm:$0xff]  ;;  %v925_v28 = vld [vmem:[#allocation12 + $0xb0] sm:$0xff]  ;;  %v920_v29 = vld [vmem:[#allocation12 + $0x88] sm:$0xff] }
 0x32d   :  { %981 = vmatprep.subr.mxu0 %v936_v13  ;;  %1052 = vmatprep.subr.mxu1 %v938_v14  ;;  %v922_v30 = vld [vmem:[#allocation12 + $0x98] sm:$0xff]  ;;  %v919_v31 = vld [vmem:[#allocation12 + $0x80] sm:$0xff]  ;;  %v921_v32 = vld [vmem:[#allocation12 + $0x90] sm:$0xff] }
 0x32e   :  { %982 = vmatpush1.msra.mxu0 %v935_v15  ;;  %1053 = vmatpush1.msra.mxu1 %v937_v16  ;;  %v892_v33 = vld [vmem:[#allocation4] sm:$0x1]  ;;  %v916_v34 = vld [vmem:[#allocation12 + $0x68] sm:$0xff]  ;;  %v918_v35 = vld [vmem:[#allocation12 + $0x78] sm:$0xff] }
 0x32f   :  { %983 = vmatprep.subr.mxu0 %v932_v17  ;;  %1054 = vmatprep.subr.mxu1 %v934_v18  ;;  %2914 = vtanh.f32 %v892_v33  ;;  %899 = vst [vmem:[#allocation19 + $0x1] sm:$0x1] %v892_v33  ;;  %v915_v36 = vld [vmem:[#allocation12 + $0x60] sm:$0xff]  ;;  %v917_v37 = vld [vmem:[#allocation12 + $0x70] sm:$0xff]  ;;  %v912_v39 = vld [vmem:[#allocation12 + $0x48] sm:$0xff] }
 0x330   :  { %984 = vmatpush1.msra.mxu0 %v931_v19  ;;  %1055 = vmatpush1.msra.mxu1 %v933_v20  ;;  %v914_v40 = vld [vmem:[#allocation12 + $0x58] sm:$0xff]  ;;  %v911_v41 = vld [vmem:[#allocation12 + $0x40] sm:$0xff]  ;;  %v913_v42 = vld [vmem:[#allocation12 + $0x50] sm:$0xff] }
 0x331   :  { %985 = vmatprep.subr.mxu0 %v928_v21  ;;  %1056 = vmatprep.subr.mxu1 %v930_v22  ;;  %v908_v43 = vld [vmem:[#allocation12 + $0x28] sm:$0xff]  ;;  %v910_v44 = vld [vmem:[#allocation12 + $0x38] sm:$0xff]  ;;  %v907_v45 = vld [vmem:[#allocation12 + $0x20] sm:$0xff] }
 0x332   :  { %986 = vmatpush1.msra.mxu0 %v927_v23  ;;  %1057 = vmatpush1.msra.mxu1 %v929_v24  ;;  %v909_v46 = vld [vmem:[#allocation12 + $0x30] sm:$0xff]  ;;  %v904_v47 = vld [vmem:[#allocation12 + $0x8] sm:$0xff]  ;;  %v906_v48 = vld [vmem:[#allocation12 + $0x18] sm:$0xff] }
 0x333   :  { %987 = vmatprep.subr.mxu0 %v924_v25  ;;  %1058 = vmatprep.subr.mxu1 %v926_v26  ;;  %v903_v49 = vld [vmem:[#allocation12] sm:$0xff]  ;;  %v905_v50 = vld [vmem:[#allocation12 + $0x10] sm:$0xff] }
 0x334   :  { %988 = vmatpush1.msra.mxu0 %v923_v27  ;;  %1059 = vmatpush1.msra.mxu1 %v925_v28  ;;  %v901_v0 = vld [vmem:[#allocation2 + $0x2] ss:$8 sm:$0xf]  ;;  %v1149_v9 = vld [vmem:[#allocation4] sm:$0x1] }
 0x335   :  { %989 = vmatprep.subr.mxu0 %v920_v29  ;;  %1060 = vmatprep.subr.mxu1 %v922_v30 }
 0x336   :  { %990 = vmatpush1.msra.mxu0 %v919_v31  ;;  %1061 = vmatpush1.msra.mxu1 %v921_v32 }
 0x337   :  { %991 = vmatprep.subr.mxu0 %v916_v34  ;;  %1062 = vmatprep.subr.mxu1 %v918_v35 }
 0x338   :  { %992 = vmatpush1.msra.mxu0 %v915_v36  ;;  %1063 = vmatpush1.msra.mxu1 %v917_v37 }
 0x339   :  { %993 = vmatprep.subr.mxu0 %v912_v39  ;;  %1064 = vmatprep.subr.mxu1 %v914_v40 }
 0x33a   :  { %994 = vmatpush1.msra.mxu0 %v911_v41  ;;  %1065 = vmatpush1.msra.mxu1 %v913_v42 }
 0x33b   :  { %995 = vmatprep.subr.mxu0 %v908_v43  ;;  %1066 = vmatprep.subr.mxu1 %v910_v44 }
 0x33c   :  { %996 = vmatpush1.msra.mxu0 %v907_v45  ;;  %1067 = vmatpush1.msra.mxu1 %v909_v46  ;;  %v2915_v52 = vpop.eup %2914 }
 0x33d   :  { %997 = vmatprep.subr.mxu0 %v904_v47  ;;  %1068 = vmatprep.subr.mxu1 %v906_v48  ;;  %v896_v54 = vmul.f32 %v2915_v52, %v894_v51 }
 0x33e   :  { %998 = vmatpush1.msra.mxu0 %v903_v49  ;;  %1069 = vmatpush1.msra.mxu1 %v905_v50 }
 0x33f   :  { %897 = vst [vmem:[#allocation3] sm:$0x1] %v896_v54  ;;  %898 = vst [vmem:[#allocation18 + $0x1] sm:$0x1] %v896_v54 }
 0x346   :  { %v902_v53 = vld [vmem:[#allocation3] sm:$0x1] }
 0x347   :  { %1032 = vmatmul.mubr.f32.vlgmr.msra.gmra.mxu0 %v902_v53  ;;  %1103 = vmatmul.mubr.f32.vlgmr.msra.gmra.mxu1 %v902_v53 }
 0x407   :  { %v1033_v55 = vpop.f32.mrf.mxu0  ;;  %v1104_v56 = vpop.f32.mrf.mxu1 }
 0x409   :  { %v1035_v57 = vpop.f32.mrf.mxu0  ;;  %v1106_v58 = vpop.f32.mrf.mxu1 }
 0x40a   :  { %v1113_v59 = vcombine.low %v1033_v55, %v1035_v57  ;;  %v1114_v60 = vcombine.low %v1104_v56, %v1106_v58 }
 0x40c   :  { %v1121_v61 = vrot.slane %v1113_v59, %v3300_v38  ;;  %v1128_v63 = vrot.slane %v1114_v60, %v3300_v38 }
 0x40e   :  { %v1129_v62 = vcombine.low %v1121_v61, %v1128_v63 }
 0x410   :  { %v1136_v1 = vrot.slane %v1129_v62, %v3300_v38 }
 0x412   :  { %v1138_v2 = vadd.f32 %v1136_v1, %v901_v0 }
 0x414   :  { %v2846_v3 = vmul.f32 -1.442695, %v1138_v2  ;;  %v1146_v6 = vrot.slane %v1138_v2, 3 }
 0x416   :  { %2916 = vpow2.f32 %v2846_v3 }
 0x423   :  { %v2917_v4 = vpop.eup %2916 }
 0x424   :  { %v1142_v5 = vadd.f32 1.0, %v2917_v4 }
 0x426   :  { %2918 = vrcp.f32 %v1142_v5 }
 0x427   :  { %2920 = vtanh.f32 %v1146_v6 }
 0x433   :  { %v3337_v7 = vpop.eup %2918 }
 0x434   :  { %v1152_v10 = vrot.slane %v3337_v7, 1  ;;  %v2921_v13 = vpop.eup %2920  ;;  %v1150_v14 = vmul.f32 %v3337_v7, %v1149_v9 }
 0x436   :  { %v1154_v15 = vmul.f32 %v2921_v13, %v1152_v10  ;;  %1161 = sbr.rel (%p2848_p9) target bundleno = 1151 (0x47f), region = 77 }
 0x438   :  { %v1155_v16 = vadd.f32 %v1154_v15, %v1150_v14 }
 0x43a   :  { %1156 = vst [vmem:[#allocation4] sm:$0x1] %v1155_v16 }
 0x43b   :  { %v1163_v17 = vld [vmem:[#allocation15 + $0x10] sm:$0xff]  ;;  %v1168_v18 = vstv %s3332_s30 }
 0x43c   :  { %vm1169_vm3 = vcmp.lt.s32.totalorder %v3290_v11, %v1168_v18  ;;  %v1165_v32 = vld [vmem:[#allocation14 + $0x10] sm:$0xff] }
 0x43d   :  { %v1170_v19 = vsel %vm1169_vm3, %v1163_v17, -inf }
 0x43e   :  { %v1171_v20 = vrot.slane %v1170_v19, 4 }
 0x440   :  { %v1172_v21 = vmax.f32 %v1170_v19, %v1171_v20 }
 0x442   :  { %v1173_v22 = vrot.slane %v1172_v21, 2 }
 0x444   :  { %v1174_v23 = vmax.f32 %v1172_v21, %v1173_v22 }
 0x446   :  { %v1175_v24 = vrot.slane %v1174_v23, 1 }
 0x448   :  { %v1176_v25 = vmax.f32 %v1174_v23, %v1175_v24 }
 0x44a   :  { %v1177_v26 = vmax.f32 %v1152_v10, %v1176_v25 }
 0x44c   :  { %v1185_v27 = vrot.slane %v1177_v26, %v3293_v12  ;;  %v1178_v30 = vsub.f32 %v1152_v10, %v1177_v26 }
 0x44e   :  { %v1187_v28 = vsub.f32 %v1170_v19, %v1185_v27  ;;  %v1179_v31 = vmul.f32 1.442695, %v1178_v30 }
 0x450   :  { %v1188_v29 = vmul.f32 1.442695, %v1187_v28 }
 0x452   :  { %2922 = vpow2.f32 %v1188_v29 }
 0x453   :  { %2924 = vpow2.f32 %v1179_v31 }
 0x45f   :  { %v2923_v33 = vpop.eup %2922 }
 0x460   :  { %v1190_v34 = vrot.slane %v2923_v33, 4  ;;  %v1198_v35 = vmul.f32 %v2923_v33, %v1165_v32  ;;  %v2925_v44 = vpop.eup %2924 }
 0x461   :  { %v1197_v49 = vmul.f32 %v2925_v44, %v2921_v13 }
 0x462   :  { %v1191_v36 = vadd.f32 %v2923_v33, %v1190_v34  ;;  %v1199_v37 = vrot.slane %v1198_v35, 4 }
 0x464   :  { %v1192_v39 = vrot.slane %v1191_v36, 2  ;;  %v1200_v40 = vadd.f32 %v1199_v37, %v1198_v35 }
 0x466   :  { %v1193_v41 = vadd.f32 %v1192_v39, %v1191_v36  ;;  %v1201_v43 = vrot.slane %v1200_v40, 2 }
 0x468   :  { %v1194_v42 = vrot.slane %v1193_v41, 1  ;;  %v1202_v47 = vadd.f32 %v1201_v43, %v1200_v40 }
 0x46a   :  { %v1195_v45 = vadd.f32 %v1194_v42, %v1193_v41  ;;  %v1203_v48 = vrot.slane %v1202_v47, 1 }
 0x46c   :  { %v1196_v46 = vadd.f32 %v2925_v44, %v1195_v45  ;;  %v1204_v50 = vadd.f32 %v1203_v48, %v1202_v47 }
 0x46e   :  { %2926 = vrcp.f32 %v1196_v46  ;;  %v1205_v51 = vadd.f32 %v1204_v50, %v1197_v49 }
 0x47b   :  { %v2927_v52 = vpop.eup %2926 }
 0x47c   :  { %v1207_v54 = vmul.f32 %v2927_v52, %v1205_v51 }
 0x47e   :  { %1208 = vst [vmem:[#allocation4] sm:$0x1] %v1207_v54 }
 0x47f PF:  { %v1281_v53 = vld [vmem:[#allocation12 + $0x1e8] sm:$0xff]  ;;  %v1283_v55 = vld [vmem:[#allocation12 + $0x1f8] sm:$0xff]  ;;  %v1280_v56 = vld [vmem:[#allocation12 + $0x1e0] sm:$0xff]  ;;  %1348 = vmatprep.mubr.f32.mxu0 %v3200_v8  ;;  %1419 = vmatprep.mubr.f32.mxu1 %v3200_v8  ;;  %s3348_s11 = sld [smem:[#allocation17 + $0x3]] }
 0x480   :  { %1284 = vmatprep.subr.mxu0 %v1281_v53  ;;  %1355 = vmatprep.subr.mxu1 %v1283_v55  ;;  %v1282_v57 = vld [vmem:[#allocation12 + $0x1f0] sm:$0xff]  ;;  %v1277_v58 = vld [vmem:[#allocation12 + $0x1c8] sm:$0xff]  ;;  %v1279_v59 = vld [vmem:[#allocation12 + $0x1d8] sm:$0xff] }
 0x481   :  { %1285 = vmatpush1.msra.mxu0 %v1280_v56  ;;  %1356 = vmatpush1.msra.mxu1 %v1282_v57  ;;  %v1276_v60 = vld [vmem:[#allocation12 + $0x1c0] sm:$0xff]  ;;  %v1278_v61 = vld [vmem:[#allocation12 + $0x1d0] sm:$0xff]  ;;  %v1273_v63 = vld [vmem:[#allocation12 + $0x1a8] sm:$0xff] }
 0x482   :  { %1286 = vmatprep.subr.mxu0 %v1277_v58  ;;  %1357 = vmatprep.subr.mxu1 %v1279_v59  ;;  %v1275_v62 = vld [vmem:[#allocation12 + $0x1b8] sm:$0xff]  ;;  %v1272_v0 = vld [vmem:[#allocation12 + $0x1a0] sm:$0xff]  ;;  %v1274_v1 = vld [vmem:[#allocation12 + $0x1b0] sm:$0xff] }
 0x483   :  { %1287 = vmatpush1.msra.mxu0 %v1276_v60  ;;  %1358 = vmatpush1.msra.mxu1 %v1278_v61  ;;  %v1269_v2 = vld [vmem:[#allocation12 + $0x188] sm:$0xff]  ;;  %v1271_v3 = vld [vmem:[#allocation12 + $0x198] sm:$0xff]  ;;  %v1268_v4 = vld [vmem:[#allocation12 + $0x180] sm:$0xff]  ;;  %v1211_v60 = vrot.slane %v3337_v7, 2 }
 0x484   :  { %1288 = vmatprep.subr.mxu0 %v1273_v63  ;;  %1359 = vmatprep.subr.mxu1 %v1275_v62  ;;  %v1270_v5 = vld [vmem:[#allocation12 + $0x190] sm:$0xff]  ;;  %v1265_v6 = vld [vmem:[#allocation12 + $0x168] sm:$0xff]  ;;  %v1267_v9 = vld [vmem:[#allocation12 + $0x178] sm:$0xff] }
 0x485   :  { %1289 = vmatpush1.msra.mxu0 %v1272_v0  ;;  %1360 = vmatpush1.msra.mxu1 %v1274_v1  ;;  %v1264_v10 = vld [vmem:[#allocation12 + $0x160] sm:$0xff]  ;;  %v1266_v13 = vld [vmem:[#allocation12 + $0x170] sm:$0xff]  ;;  %v1261_v14 = vld [vmem:[#allocation12 + $0x148] sm:$0xff]  ;;  %p2851_p10 = scmp.le.s32.totalorder %s3348_s11, 0 }
 0x486   :  { %1290 = vmatprep.subr.mxu0 %v1269_v2  ;;  %1361 = vmatprep.subr.mxu1 %v1271_v3  ;;  %v1263_v15 = vld [vmem:[#allocation12 + $0x158] sm:$0xff]  ;;  %v1260_v16 = vld [vmem:[#allocation12 + $0x140] sm:$0xff]  ;;  %v1262_v17 = vld [vmem:[#allocation12 + $0x150] sm:$0xff] }
 0x487   :  { %1291 = vmatpush1.msra.mxu0 %v1268_v4  ;;  %1362 = vmatpush1.msra.mxu1 %v1270_v5  ;;  %v1257_v18 = vld [vmem:[#allocation12 + $0x128] sm:$0xff]  ;;  %v1259_v19 = vld [vmem:[#allocation12 + $0x138] sm:$0xff]  ;;  %v1256_v20 = vld [vmem:[#allocation12 + $0x120] sm:$0xff] }
 0x488   :  { %1292 = vmatprep.subr.mxu0 %v1265_v6  ;;  %1363 = vmatprep.subr.mxu1 %v1267_v9  ;;  %v1258_v21 = vld [vmem:[#allocation12 + $0x130] sm:$0xff]  ;;  %v1253_v22 = vld [vmem:[#allocation12 + $0x108] sm:$0xff]  ;;  %v1255_v23 = vld [vmem:[#allocation12 + $0x118] sm:$0xff] }
 0x489   :  { %1293 = vmatpush1.msra.mxu0 %v1264_v10  ;;  %1364 = vmatpush1.msra.mxu1 %v1266_v13  ;;  %v1252_v24 = vld [vmem:[#allocation12 + $0x100] sm:$0xff]  ;;  %v1254_v25 = vld [vmem:[#allocation12 + $0x110] sm:$0xff]  ;;  %v1249_v26 = vld [vmem:[#allocation12 + $0xe8] sm:$0xff] }
 0x48a   :  { %1294 = vmatprep.subr.mxu0 %v1261_v14  ;;  %1365 = vmatprep.subr.mxu1 %v1263_v15  ;;  %v1251_v27 = vld [vmem:[#allocation12 + $0xf8] sm:$0xff]  ;;  %v1248_v28 = vld [vmem:[#allocation12 + $0xe0] sm:$0xff]  ;;  %v1250_v29 = vld [vmem:[#allocation12 + $0xf0] sm:$0xff] }
 0x48b   :  { %1295 = vmatpush1.msra.mxu0 %v1260_v16  ;;  %1366 = vmatpush1.msra.mxu1 %v1262_v17  ;;  %v1245_v30 = vld [vmem:[#allocation12 + $0xc8] sm:$0xff]  ;;  %v1247_v31 = vld [vmem:[#allocation12 + $0xd8] sm:$0xff]  ;;  %v1244_v32 = vld [vmem:[#allocation12 + $0xc0] sm:$0xff] }
 0x48c   :  { %1296 = vmatprep.subr.mxu0 %v1257_v18  ;;  %1367 = vmatprep.subr.mxu1 %v1259_v19  ;;  %v1246_v33 = vld [vmem:[#allocation12 + $0xd0] sm:$0xff]  ;;  %v1241_v34 = vld [vmem:[#allocation12 + $0xa8] sm:$0xff]  ;;  %v1243_v35 = vld [vmem:[#allocation12 + $0xb8] sm:$0xff] }
 0x48d   :  { %1297 = vmatpush1.msra.mxu0 %v1256_v20  ;;  %1368 = vmatpush1.msra.mxu1 %v1258_v21  ;;  %v1240_v36 = vld [vmem:[#allocation12 + $0xa0] sm:$0xff]  ;;  %v1242_v37 = vld [vmem:[#allocation12 + $0xb0] sm:$0xff]  ;;  %v1237_v39 = vld [vmem:[#allocation12 + $0x88] sm:$0xff] }
 0x48e   :  { %1298 = vmatprep.subr.mxu0 %v1253_v22  ;;  %1369 = vmatprep.subr.mxu1 %v1255_v23  ;;  %v1239_v40 = vld [vmem:[#allocation12 + $0x98] sm:$0xff]  ;;  %v1236_v41 = vld [vmem:[#allocation12 + $0x80] sm:$0xff]  ;;  %v1238_v42 = vld [vmem:[#allocation12 + $0x90] sm:$0xff] }
 0x48f   :  { %1299 = vmatpush1.msra.mxu0 %v1252_v24  ;;  %1370 = vmatpush1.msra.mxu1 %v1254_v25  ;;  %v1209_v43 = vld [vmem:[#allocation4] sm:$0x1]  ;;  %v1233_v44 = vld [vmem:[#allocation12 + $0x68] sm:$0xff]  ;;  %v1235_v45 = vld [vmem:[#allocation12 + $0x78] sm:$0xff] }
 0x490   :  { %1300 = vmatprep.subr.mxu0 %v1249_v26  ;;  %1371 = vmatprep.subr.mxu1 %v1251_v27  ;;  %2928 = vtanh.f32 %v1209_v43  ;;  %1216 = vst [vmem:[#allocation19 + $0x2] sm:$0x1] %v1209_v43  ;;  %v1232_v46 = vld [vmem:[#allocation12 + $0x60] sm:$0xff]  ;;  %v1234_v47 = vld [vmem:[#allocation12 + $0x70] sm:$0xff]  ;;  %v1229_v48 = vld [vmem:[#allocation12 + $0x48] sm:$0xff] }
 0x491   :  { %1301 = vmatpush1.msra.mxu0 %v1248_v28  ;;  %1372 = vmatpush1.msra.mxu1 %v1250_v29  ;;  %v1231_v49 = vld [vmem:[#allocation12 + $0x58] sm:$0xff]  ;;  %v1228_v50 = vld [vmem:[#allocation12 + $0x40] sm:$0xff]  ;;  %v1230_v51 = vld [vmem:[#allocation12 + $0x50] sm:$0xff] }
 0x492   :  { %1302 = vmatprep.subr.mxu0 %v1245_v30  ;;  %1373 = vmatprep.subr.mxu1 %v1247_v31  ;;  %v1225_v52 = vld [vmem:[#allocation12 + $0x28] sm:$0xff]  ;;  %v1227_v54 = vld [vmem:[#allocation12 + $0x38] sm:$0xff]  ;;  %v1224_v53 = vld [vmem:[#allocation12 + $0x20] sm:$0xff] }
 0x493   :  { %1303 = vmatpush1.msra.mxu0 %v1244_v32  ;;  %1374 = vmatpush1.msra.mxu1 %v1246_v33  ;;  %v1226_v55 = vld [vmem:[#allocation12 + $0x30] sm:$0xff]  ;;  %v1221_v56 = vld [vmem:[#allocation12 + $0x8] sm:$0xff]  ;;  %v1223_v57 = vld [vmem:[#allocation12 + $0x18] sm:$0xff] }
 0x494   :  { %1304 = vmatprep.subr.mxu0 %v1241_v34  ;;  %1375 = vmatprep.subr.mxu1 %v1243_v35  ;;  %v1220_v58 = vld [vmem:[#allocation12] sm:$0xff]  ;;  %v1222_v59 = vld [vmem:[#allocation12 + $0x10] sm:$0xff] }
 0x495   :  { %1305 = vmatpush1.msra.mxu0 %v1240_v36  ;;  %1376 = vmatpush1.msra.mxu1 %v1242_v37  ;;  %v1218_v10 = vld [vmem:[#allocation2 + $0x3] ss:$8 sm:$0xf]  ;;  %v1466_v20 = vld [vmem:[#allocation4] sm:$0x1] }
 0x496   :  { %1306 = vmatprep.subr.mxu0 %v1237_v39  ;;  %1377 = vmatprep.subr.mxu1 %v1239_v40 }
 0x497   :  { %1307 = vmatpush1.msra.mxu0 %v1236_v41  ;;  %1378 = vmatpush1.msra.mxu1 %v1238_v42 }
 0x498   :  { %1308 = vmatprep.subr.mxu0 %v1233_v44  ;;  %1379 = vmatprep.subr.mxu1 %v1235_v45 }
 0x499   :  { %1309 = vmatpush1.msra.mxu0 %v1232_v46  ;;  %1380 = vmatpush1.msra.mxu1 %v1234_v47 }
 0x49a   :  { %1310 = vmatprep.subr.mxu0 %v1229_v48  ;;  %1381 = vmatprep.subr.mxu1 %v1231_v49 }
 0x49b   :  { %1311 = vmatpush1.msra.mxu0 %v1228_v50  ;;  %1382 = vmatpush1.msra.mxu1 %v1230_v51 }
 0x49c   :  { %1312 = vmatprep.subr.mxu0 %v1225_v52  ;;  %1383 = vmatprep.subr.mxu1 %v1227_v54 }
 0x49d   :  { %1313 = vmatpush1.msra.mxu0 %v1224_v53  ;;  %1384 = vmatpush1.msra.mxu1 %v1226_v55  ;;  %v2929_v61 = vpop.eup %2928 }
 0x49e   :  { %1314 = vmatprep.subr.mxu0 %v1221_v56  ;;  %1385 = vmatprep.subr.mxu1 %v1223_v57  ;;  %v1213_v63 = vmul.f32 %v2929_v61, %v1211_v60 }
 0x49f   :  { %1315 = vmatpush1.msra.mxu0 %v1220_v58  ;;  %1386 = vmatpush1.msra.mxu1 %v1222_v59 }
 0x4a0   :  { %1214 = vst [vmem:[#allocation3] sm:$0x1] %v1213_v63  ;;  %1215 = vst [vmem:[#allocation18 + $0x2] sm:$0x1] %v1213_v63 }
 0x4a7   :  { %v1219_v62 = vld [vmem:[#allocation3] sm:$0x1] }
 0x4a8   :  { %1349 = vmatmul.mubr.f32.vlgmr.msra.gmra.mxu0 %v1219_v62  ;;  %1420 = vmatmul.mubr.f32.vlgmr.msra.gmra.mxu1 %v1219_v62 }
 0x568   :  { %v1350_v0 = vpop.f32.mrf.mxu0  ;;  %v1421_v1 = vpop.f32.mrf.mxu1 }
 0x56a   :  { %v1352_v2 = vpop.f32.mrf.mxu0  ;;  %v1423_v3 = vpop.f32.mrf.mxu1 }
 0x56b   :  { %v1430_v4 = vcombine.low %v1350_v0, %v1352_v2  ;;  %v1431_v5 = vcombine.low %v1421_v1, %v1423_v3 }
 0x56d   :  { %v1438_v6 = vrot.slane %v1430_v4, %v3300_v38  ;;  %v1445_v9 = vrot.slane %v1431_v5, %v3300_v38 }
 0x56f   :  { %v1446_v7 = vcombine.low %v1438_v6, %v1445_v9 }
 0x571   :  { %v1453_v13 = vrot.slane %v1446_v7, %v3300_v38 }
 0x573   :  { %v1455_v14 = vadd.f32 %v1453_v13, %v1218_v10 }
 0x575   :  { %v2849_v15 = vmul.f32 -1.442695, %v1455_v14  ;;  %v1463_v18 = vrot.slane %v1455_v14, 3 }
 0x577   :  { %2930 = vpow2.f32 %v2849_v15 }
 0x584   :  { %v2931_v16 = vpop.eup %2930 }
 0x585   :  { %v1459_v17 = vadd.f32 1.0, %v2931_v16 }
 0x587   :  { %2932 = vrcp.f32 %v1459_v17 }
 0x588   :  { %2934 = vtanh.f32 %v1463_v18 }
 0x594   :  { %v3353_v19 = vpop.eup %2932 }
 0x595   :  { %v1469_v21 = vrot.slane %v3353_v19, 1  ;;  %v2935_v22 = vpop.eup %2934  ;;  %v1467_v23 = vmul.f32 %v3353_v19, %v1466_v20 }
 0x597   :  { %v1471_v24 = vmul.f32 %v2935_v22, %v1469_v21  ;;  %1478 = sbr.rel (%p2851_p10) target bundleno = 1504 (0x5e0), region = 81 }
 0x599   :  { %v1472_v25 = vadd.f32 %v1471_v24, %v1467_v23 }
 0x59b   :  { %1473 = vst [vmem:[#allocation4] sm:$0x1] %v1472_v25 }
 0x59c   :  { %v1480_v26 = vld [vmem:[#allocation15 + $0x18] sm:$0xff]  ;;  %v1485_v27 = vstv %s3348_s11 }
 0x59d   :  { %vm1486_vm4 = vcmp.lt.s32.totalorder %v3290_v11, %v1485_v27  ;;  %v1482_v42 = vld [vmem:[#allocation14 + $0x18] sm:$0xff] }
 0x59e   :  { %v1487_v28 = vsel %vm1486_vm4, %v1480_v26, -inf }
 0x59f   :  { %v1488_v29 = vrot.slane %v1487_v28, 4 }
 0x5a1   :  { %v1489_v30 = vmax.f32 %v1487_v28, %v1488_v29 }
 0x5a3   :  { %v1490_v31 = vrot.slane %v1489_v30, 2 }
 0x5a5   :  { %v1491_v32 = vmax.f32 %v1489_v30, %v1490_v31 }
 0x5a7   :  { %v1492_v33 = vrot.slane %v1491_v32, 1 }
 0x5a9   :  { %v1493_v34 = vmax.f32 %v1491_v32, %v1492_v33 }
 0x5ab   :  { %v1494_v35 = vmax.f32 %v1469_v21, %v1493_v34 }
 0x5ad   :  { %v1502_v36 = vrot.slane %v1494_v35, %v3293_v12  ;;  %v1495_v40 = vsub.f32 %v1469_v21, %v1494_v35 }
 0x5af   :  { %v1504_v37 = vsub.f32 %v1487_v28, %v1502_v36  ;;  %v1496_v41 = vmul.f32 1.442695, %v1495_v40 }
 0x5b1   :  { %v1505_v39 = vmul.f32 1.442695, %v1504_v37 }
 0x5b3   :  { %2936 = vpow2.f32 %v1505_v39 }
 0x5b4   :  { %2938 = vpow2.f32 %v1496_v41 }
 0x5c0   :  { %v2937_v43 = vpop.eup %2936 }
 0x5c1   :  { %v1507_v44 = vrot.slane %v2937_v43, 4  ;;  %v1515_v45 = vmul.f32 %v2937_v43, %v1482_v42  ;;  %v2939_v54 = vpop.eup %2938 }
 0x5c2   :  { %v1514_v58 = vmul.f32 %v2939_v54, %v2935_v22 }
 0x5c3   :  { %v1508_v46 = vadd.f32 %v2937_v43, %v1507_v44  ;;  %v1516_v47 = vrot.slane %v1515_v45, 4 }
 0x5c5   :  { %v1509_v48 = vrot.slane %v1508_v46, 2  ;;  %v1517_v49 = vadd.f32 %v1516_v47, %v1515_v45 }
 0x5c7   :  { %v1510_v50 = vadd.f32 %v1509_v48, %v1508_v46  ;;  %v1518_v52 = vrot.slane %v1517_v49, 2 }
 0x5c9   :  { %v1511_v51 = vrot.slane %v1510_v50, 1  ;;  %v1519_v56 = vadd.f32 %v1518_v52, %v1517_v49 }
 0x5cb   :  { %v1512_v53 = vadd.f32 %v1511_v51, %v1510_v50  ;;  %v1520_v57 = vrot.slane %v1519_v56, 1 }
 0x5cd   :  { %v1513_v55 = vadd.f32 %v2939_v54, %v1512_v53  ;;  %v1521_v59 = vadd.f32 %v1520_v57, %v1519_v56 }
 0x5cf   :  { %2940 = vrcp.f32 %v1513_v55  ;;  %v1522_v60 = vadd.f32 %v1521_v59, %v1514_v58 }
 0x5dc   :  { %v2941_v61 = vpop.eup %2940 }
 0x5dd   :  { %v1524_v63 = vmul.f32 %v2941_v61, %v1522_v60 }
 0x5df   :  { %1525 = vst [vmem:[#allocation4] sm:$0x1] %v1524_v63 }
 0x5e0 PF:  { %v1598_v62 = vld [vmem:[#allocation12 + $0x1e8] sm:$0xff]  ;;  %v1600_v0 = vld [vmem:[#allocation12 + $0x1f8] sm:$0xff]  ;;  %v1597_v1 = vld [vmem:[#allocation12 + $0x1e0] sm:$0xff]  ;;  %1665 = vmatprep.mubr.f32.mxu0 %v3200_v8  ;;  %1736 = vmatprep.mubr.f32.mxu1 %v3200_v8  ;;  %s3364_s12 = sld [smem:[#allocation17 + $0x4]] }
 0x5e1   :  { %1601 = vmatprep.subr.mxu0 %v1598_v62  ;;  %1672 = vmatprep.subr.mxu1 %v1600_v0  ;;  %v1599_v2 = vld [vmem:[#allocation12 + $0x1f0] sm:$0xff]  ;;  %v1594_v3 = vld [vmem:[#allocation12 + $0x1c8] sm:$0xff]  ;;  %v1596_v4 = vld [vmem:[#allocation12 + $0x1d8] sm:$0xff] }
 0x5e2   :  { %1602 = vmatpush1.msra.mxu0 %v1597_v1  ;;  %1673 = vmatpush1.msra.mxu1 %v1599_v2  ;;  %v1593_v5 = vld [vmem:[#allocation12 + $0x1c0] sm:$0xff]  ;;  %v1595_v6 = vld [vmem:[#allocation12 + $0x1d0] sm:$0xff]  ;;  %v1590_v9 = vld [vmem:[#allocation12 + $0x1a8] sm:$0xff] }
 0x5e3   :  { %1603 = vmatprep.subr.mxu0 %v1594_v3  ;;  %1674 = vmatprep.subr.mxu1 %v1596_v4  ;;  %v1592_v7 = vld [vmem:[#allocation12 + $0x1b8] sm:$0xff]  ;;  %v1589_v10 = vld [vmem:[#allocation12 + $0x1a0] sm:$0xff]  ;;  %v1591_v13 = vld [vmem:[#allocation12 + $0x1b0] sm:$0xff] }
 0x5e4   :  { %1604 = vmatpush1.msra.mxu0 %v1593_v5  ;;  %1675 = vmatpush1.msra.mxu1 %v1595_v6  ;;  %v1586_v14 = vld [vmem:[#allocation12 + $0x188] sm:$0xff]  ;;  %v1588_v15 = vld [vmem:[#allocation12 + $0x198] sm:$0xff]  ;;  %v1585_v16 = vld [vmem:[#allocation12 + $0x180] sm:$0xff]  ;;  %v1528_v5 = vrot.slane %v3353_v19, 2 }
 0x5e5   :  { %1605 = vmatprep.subr.mxu0 %v1590_v9  ;;  %1676 = vmatprep.subr.mxu1 %v1592_v7  ;;  %v1587_v17 = vld [vmem:[#allocation12 + $0x190] sm:$0xff]  ;;  %v1582_v18 = vld [vmem:[#allocation12 + $0x168] sm:$0xff]  ;;  %v1584_v20 = vld [vmem:[#allocation12 + $0x178] sm:$0xff] }
 0x5e6   :  { %1606 = vmatpush1.msra.mxu0 %v1589_v10  ;;  %1677 = vmatpush1.msra.mxu1 %v1591_v13  ;;  %v1581_v21 = vld [vmem:[#allocation12 + $0x160] sm:$0xff]  ;;  %v1583_v22 = vld [vmem:[#allocation12 + $0x170] sm:$0xff]  ;;  %v1578_v23 = vld [vmem:[#allocation12 + $0x148] sm:$0xff]  ;;  %p2854_p11 = scmp.le.s32.totalorder %s3364_s12, 0 }
 0x5e7   :  { %1607 = vmatprep.subr.mxu0 %v1586_v14  ;;  %1678 = vmatprep.subr.mxu1 %v1588_v15  ;;  %v1580_v24 = vld [vmem:[#allocation12 + $0x158] sm:$0xff]  ;;  %v1577_v25 = vld [vmem:[#allocation12 + $0x140] sm:$0xff]  ;;  %v1579_v26 = vld [vmem:[#allocation12 + $0x150] sm:$0xff] }
 0x5e8   :  { %1608 = vmatpush1.msra.mxu0 %v1585_v16  ;;  %1679 = vmatpush1.msra.mxu1 %v1587_v17  ;;  %v1574_v27 = vld [vmem:[#allocation12 + $0x128] sm:$0xff]  ;;  %v1576_v28 = vld [vmem:[#allocation12 + $0x138] sm:$0xff]  ;;  %v1573_v29 = vld [vmem:[#allocation12 + $0x120] sm:$0xff] }
 0x5e9   :  { %1609 = vmatprep.subr.mxu0 %v1582_v18  ;;  %1680 = vmatprep.subr.mxu1 %v1584_v20  ;;  %v1575_v30 = vld [vmem:[#allocation12 + $0x130] sm:$0xff]  ;;  %v1570_v31 = vld [vmem:[#allocation12 + $0x108] sm:$0xff]  ;;  %v1572_v32 = vld [vmem:[#allocation12 + $0x118] sm:$0xff] }
 0x5ea   :  { %1610 = vmatpush1.msra.mxu0 %v1581_v21  ;;  %1681 = vmatpush1.msra.mxu1 %v1583_v22  ;;  %v1569_v33 = vld [vmem:[#allocation12 + $0x100] sm:$0xff]  ;;  %v1571_v34 = vld [vmem:[#allocation12 + $0x110] sm:$0xff]  ;;  %v1566_v35 = vld [vmem:[#allocation12 + $0xe8] sm:$0xff] }
 0x5eb   :  { %1611 = vmatprep.subr.mxu0 %v1578_v23  ;;  %1682 = vmatprep.subr.mxu1 %v1580_v24  ;;  %v1568_v36 = vld [vmem:[#allocation12 + $0xf8] sm:$0xff]  ;;  %v1565_v37 = vld [vmem:[#allocation12 + $0xe0] sm:$0xff]  ;;  %v1567_v39 = vld [vmem:[#allocation12 + $0xf0] sm:$0xff] }
 0x5ec   :  { %1612 = vmatpush1.msra.mxu0 %v1577_v25  ;;  %1683 = vmatpush1.msra.mxu1 %v1579_v26  ;;  %v1562_v40 = vld [vmem:[#allocation12 + $0xc8] sm:$0xff]  ;;  %v1564_v41 = vld [vmem:[#allocation12 + $0xd8] sm:$0xff]  ;;  %v1561_v42 = vld [vmem:[#allocation12 + $0xc0] sm:$0xff] }
 0x5ed   :  { %1613 = vmatprep.subr.mxu0 %v1574_v27  ;;  %1684 = vmatprep.subr.mxu1 %v1576_v28  ;;  %v1563_v43 = vld [vmem:[#allocation12 + $0xd0] sm:$0xff]  ;;  %v1558_v44 = vld [vmem:[#allocation12 + $0xa8] sm:$0xff]  ;;  %v1560_v45 = vld [vmem:[#allocation12 + $0xb8] sm:$0xff] }
 0x5ee   :  { %1614 = vmatpush1.msra.mxu0 %v1573_v29  ;;  %1685 = vmatpush1.msra.mxu1 %v1575_v30  ;;  %v1557_v46 = vld [vmem:[#allocation12 + $0xa0] sm:$0xff]  ;;  %v1559_v47 = vld [vmem:[#allocation12 + $0xb0] sm:$0xff]  ;;  %v1554_v48 = vld [vmem:[#allocation12 + $0x88] sm:$0xff] }
 0x5ef   :  { %1615 = vmatprep.subr.mxu0 %v1570_v31  ;;  %1686 = vmatprep.subr.mxu1 %v1572_v32  ;;  %v1556_v49 = vld [vmem:[#allocation12 + $0x98] sm:$0xff]  ;;  %v1553_v50 = vld [vmem:[#allocation12 + $0x80] sm:$0xff]  ;;  %v1555_v51 = vld [vmem:[#allocation12 + $0x90] sm:$0xff] }
 0x5f0   :  { %1616 = vmatpush1.msra.mxu0 %v1569_v33  ;;  %1687 = vmatpush1.msra.mxu1 %v1571_v34  ;;  %v1526_v52 = vld [vmem:[#allocation4] sm:$0x1]  ;;  %v1550_v54 = vld [vmem:[#allocation12 + $0x68] sm:$0xff]  ;;  %v1552_v53 = vld [vmem:[#allocation12 + $0x78] sm:$0xff] }
 0x5f1   :  { %1617 = vmatprep.subr.mxu0 %v1566_v35  ;;  %1688 = vmatprep.subr.mxu1 %v1568_v36  ;;  %2942 = vtanh.f32 %v1526_v52  ;;  %1533 = vst [vmem:[#allocation19 + $0x3] sm:$0x1] %v1526_v52  ;;  %v1549_v55 = vld [vmem:[#allocation12 + $0x60] sm:$0xff]  ;;  %v1551_v56 = vld [vmem:[#allocation12 + $0x70] sm:$0xff]  ;;  %v1546_v57 = vld [vmem:[#allocation12 + $0x48] sm:$0xff] }
 0x5f2   :  { %1618 = vmatpush1.msra.mxu0 %v1565_v37  ;;  %1689 = vmatpush1.msra.mxu1 %v1567_v39  ;;  %v1548_v58 = vld [vmem:[#allocation12 + $0x58] sm:$0xff]  ;;  %v1545_v59 = vld [vmem:[#allocation12 + $0x40] sm:$0xff]  ;;  %v1547_v60 = vld [vmem:[#allocation12 + $0x50] sm:$0xff] }
 0x5f3   :  { %1619 = vmatprep.subr.mxu0 %v1562_v40  ;;  %1690 = vmatprep.subr.mxu1 %v1564_v41  ;;  %v1542_v61 = vld [vmem:[#allocation12 + $0x28] sm:$0xff]  ;;  %v1544_v63 = vld [vmem:[#allocation12 + $0x38] sm:$0xff]  ;;  %v1541_v62 = vld [vmem:[#allocation12 + $0x20] sm:$0xff] }
 0x5f4   :  { %1620 = vmatpush1.msra.mxu0 %v1561_v42  ;;  %1691 = vmatpush1.msra.mxu1 %v1563_v43  ;;  %v1543_v0 = vld [vmem:[#allocation12 + $0x30] sm:$0xff]  ;;  %v1538_v1 = vld [vmem:[#allocation12 + $0x8] sm:$0xff]  ;;  %v1540_v2 = vld [vmem:[#allocation12 + $0x18] sm:$0xff] }
 0x5f5   :  { %1621 = vmatprep.subr.mxu0 %v1558_v44  ;;  %1692 = vmatprep.subr.mxu1 %v1560_v45  ;;  %v1537_v3 = vld [vmem:[#allocation12] sm:$0xff]  ;;  %v1539_v4 = vld [vmem:[#allocation12 + $0x10] sm:$0xff] }
 0x5f6   :  { %1622 = vmatpush1.msra.mxu0 %v1557_v46  ;;  %1693 = vmatpush1.msra.mxu1 %v1559_v47  ;;  %v1535_v21 = vld [vmem:[#allocation2 + $0x4] ss:$8 sm:$0xf]  ;;  %v1783_v29 = vld [vmem:[#allocation4] sm:$0x1] }
 0x5f7   :  { %1623 = vmatprep.subr.mxu0 %v1554_v48  ;;  %1694 = vmatprep.subr.mxu1 %v1556_v49 }
 0x5f8   :  { %1624 = vmatpush1.msra.mxu0 %v1553_v50  ;;  %1695 = vmatpush1.msra.mxu1 %v1555_v51 }
 0x5f9   :  { %1625 = vmatprep.subr.mxu0 %v1550_v54  ;;  %1696 = vmatprep.subr.mxu1 %v1552_v53 }
 0x5fa   :  { %1626 = vmatpush1.msra.mxu0 %v1549_v55  ;;  %1697 = vmatpush1.msra.mxu1 %v1551_v56 }
 0x5fb   :  { %1627 = vmatprep.subr.mxu0 %v1546_v57  ;;  %1698 = vmatprep.subr.mxu1 %v1548_v58 }
 0x5fc   :  { %1628 = vmatpush1.msra.mxu0 %v1545_v59  ;;  %1699 = vmatpush1.msra.mxu1 %v1547_v60 }
 0x5fd   :  { %1629 = vmatprep.subr.mxu0 %v1542_v61  ;;  %1700 = vmatprep.subr.mxu1 %v1544_v63 }
 0x5fe   :  { %1630 = vmatpush1.msra.mxu0 %v1541_v62  ;;  %1701 = vmatpush1.msra.mxu1 %v1543_v0  ;;  %v2943_v6 = vpop.eup %2942 }
 0x5ff   :  { %1631 = vmatprep.subr.mxu0 %v1538_v1  ;;  %1702 = vmatprep.subr.mxu1 %v1540_v2  ;;  %v1530_v9 = vmul.f32 %v2943_v6, %v1528_v5 }
 0x600   :  { %1632 = vmatpush1.msra.mxu0 %v1537_v3  ;;  %1703 = vmatpush1.msra.mxu1 %v1539_v4 }
 0x601   :  { %1531 = vst [vmem:[#allocation3] sm:$0x1] %v1530_v9  ;;  %1532 = vst [vmem:[#allocation18 + $0x3] sm:$0x1] %v1530_v9 }
 0x608   :  { %v1536_v7 = vld [vmem:[#allocation3] sm:$0x1] }
 0x609   :  { %1666 = vmatmul.mubr.f32.vlgmr.msra.gmra.mxu0 %v1536_v7  ;;  %1737 = vmatmul.mubr.f32.vlgmr.msra.gmra.mxu1 %v1536_v7 }
 0x6c9   :  { %v1667_v10 = vpop.f32.mrf.mxu0  ;;  %v1738_v13 = vpop.f32.mrf.mxu1 }
 0x6cb   :  { %v1669_v14 = vpop.f32.mrf.mxu0  ;;  %v1740_v15 = vpop.f32.mrf.mxu1 }
 0x6cc   :  { %v1747_v16 = vcombine.low %v1667_v10, %v1669_v14  ;;  %v1748_v17 = vcombine.low %v1738_v13, %v1740_v15 }
 0x6ce   :  { %v1755_v18 = vrot.slane %v1747_v16, %v3300_v38  ;;  %v1762_v20 = vrot.slane %v1748_v17, %v3300_v38 }
 0x6d0   :  { %v1763_v19 = vcombine.low %v1755_v18, %v1762_v20 }
 0x6d2   :  { %v1770_v22 = vrot.slane %v1763_v19, %v3300_v38 }
 0x6d4   :  { %v1772_v23 = vadd.f32 %v1770_v22, %v1535_v21 }
 0x6d6   :  { %v2852_v24 = vmul.f32 -1.442695, %v1772_v23  ;;  %v1780_v27 = vrot.slane %v1772_v23, 3 }
 0x6d8   :  { %2944 = vpow2.f32 %v2852_v24 }
 0x6e5   :  { %v2945_v25 = vpop.eup %2944 }
 0x6e6   :  { %v1776_v26 = vadd.f32 1.0, %v2945_v25 }
 0x6e8   :  { %2946 = vrcp.f32 %v1776_v26 }
 0x6e9   :  { %2948 = vtanh.f32 %v1780_v27 }
 0x6f5   :  { %v3369_v28 = vpop.eup %2946 }
 0x6f6   :  { %v1786_v30 = vrot.slane %v3369_v28, 1  ;;  %v2949_v31 = vpop.eup %2948  ;;  %v1784_v32 = vmul.f32 %v3369_v28, %v1783_v29 }
 0x6f8   :  { %v1788_v33 = vmul.f32 %v2949_v31, %v1786_v30  ;;  %1795 = sbr.rel (%p2854_p11) target bundleno = 1857 (0x741), region = 85 }
 0x6fa   :  { %v1789_v34 = vadd.f32 %v1788_v33, %v1784_v32 }
 0x6fc   :  { %1790 = vst [vmem:[#allocation4] sm:$0x1] %v1789_v34 }
 0x6fd   :  { %v1797_v35 = vld [vmem:[#allocation15 + $0x20] sm:$0xff]  ;;  %v1802_v36 = vstv %s3364_s12 }
 0x6fe   :  { %vm1803_vm5 = vcmp.lt.s32.totalorder %v3290_v11, %v1802_v36  ;;  %v1799_v51 = vld [vmem:[#allocation14 + $0x20] sm:$0xff] }
 0x6ff   :  { %v1804_v37 = vsel %vm1803_vm5, %v1797_v35, -inf }
 0x700   :  { %v1805_v39 = vrot.slane %v1804_v37, 4 }
 0x702   :  { %v1806_v40 = vmax.f32 %v1804_v37, %v1805_v39 }
 0x704   :  { %v1807_v41 = vrot.slane %v1806_v40, 2 }
 0x706   :  { %v1808_v42 = vmax.f32 %v1806_v40, %v1807_v41 }
 0x708   :  { %v1809_v43 = vrot.slane %v1808_v42, 1 }
 0x70a   :  { %v1810_v44 = vmax.f32 %v1808_v42, %v1809_v43 }
 0x70c   :  { %v1811_v45 = vmax.f32 %v1786_v30, %v1810_v44 }
 0x70e   :  { %v1819_v46 = vrot.slane %v1811_v45, %v3293_v12  ;;  %v1812_v49 = vsub.f32 %v1786_v30, %v1811_v45 }
 0x710   :  { %v1821_v47 = vsub.f32 %v1804_v37, %v1819_v46  ;;  %v1813_v50 = vmul.f32 1.442695, %v1812_v49 }
 0x712   :  { %v1822_v48 = vmul.f32 1.442695, %v1821_v47 }
 0x714   :  { %2950 = vpow2.f32 %v1822_v48 }
 0x715   :  { %2952 = vpow2.f32 %v1813_v50 }
 0x721   :  { %v2951_v52 = vpop.eup %2950 }
 0x722   :  { %v1824_v54 = vrot.slane %v2951_v52, 4  ;;  %v1832_v53 = vmul.f32 %v2951_v52, %v1799_v51  ;;  %v2953_v63 = vpop.eup %2952 }
 0x723   :  { %v1831_v3 = vmul.f32 %v2953_v63, %v2949_v31 }
 0x724   :  { %v1825_v55 = vadd.f32 %v2951_v52, %v1824_v54  ;;  %v1833_v56 = vrot.slane %v1832_v53, 4 }
 0x726   :  { %v1826_v57 = vrot.slane %v1825_v55, 2  ;;  %v1834_v58 = vadd.f32 %v1833_v56, %v1832_v53 }
 0x728   :  { %v1827_v59 = vadd.f32 %v1826_v57, %v1825_v55  ;;  %v1835_v61 = vrot.slane %v1834_v58, 2 }
 0x72a   :  { %v1828_v60 = vrot.slane %v1827_v59, 1  ;;  %v1836_v1 = vadd.f32 %v1835_v61, %v1834_v58 }
 0x72c   :  { %v1829_v62 = vadd.f32 %v1828_v60, %v1827_v59  ;;  %v1837_v2 = vrot.slane %v1836_v1, 1 }
 0x72e   :  { %v1830_v0 = vadd.f32 %v2953_v63, %v1829_v62  ;;  %v1838_v4 = vadd.f32 %v1837_v2, %v1836_v1 }
 0x730   :  { %2954 = vrcp.f32 %v1830_v0  ;;  %v1839_v5 = vadd.f32 %v1838_v4, %v1831_v3 }
 0x73d   :  { %v2955_v6 = vpop.eup %2954 }
 0x73e   :  { %v1841_v9 = vmul.f32 %v2955_v6, %v1839_v5 }
 0x740   :  { %1842 = vst [vmem:[#allocation4] sm:$0x1] %v1841_v9 }
 0x741 PF:  { %v1915_v7 = vld [vmem:[#allocation12 + $0x1e8] sm:$0xff]  ;;  %v1917_v10 = vld [vmem:[#allocation12 + $0x1f8] sm:$0xff]  ;;  %v1914_v13 = vld [vmem:[#allocation12 + $0x1e0] sm:$0xff]  ;;  %1982 = vmatprep.mubr.f32.mxu0 %v3200_v8  ;;  %2053 = vmatprep.mubr.f32.mxu1 %v3200_v8  ;;  %s3380_s13 = sld [smem:[#allocation17 + $0x5]] }
 0x742   :  { %1918 = vmatprep.subr.mxu0 %v1915_v7  ;;  %1989 = vmatprep.subr.mxu1 %v1917_v10  ;;  %v1916_v14 = vld [vmem:[#allocation12 + $0x1f0] sm:$0xff]  ;;  %v1911_v15 = vld [vmem:[#allocation12 + $0x1c8] sm:$0xff]  ;;  %v1913_v16 = vld [vmem:[#allocation12 + $0x1d8] sm:$0xff] }
 0x743   :  { %1919 = vmatpush1.msra.mxu0 %v1914_v13  ;;  %1990 = vmatpush1.msra.mxu1 %v1916_v14  ;;  %v1910_v17 = vld [vmem:[#allocation12 + $0x1c0] sm:$0xff]  ;;  %v1912_v18 = vld [vmem:[#allocation12 + $0x1d0] sm:$0xff]  ;;  %v1907_v20 = vld [vmem:[#allocation12 + $0x1a8] sm:$0xff] }
 0x744   :  { %1920 = vmatprep.subr.mxu0 %v1911_v15  ;;  %1991 = vmatprep.subr.mxu1 %v1913_v16  ;;  %v1909_v19 = vld [vmem:[#allocation12 + $0x1b8] sm:$0xff]  ;;  %v1906_v21 = vld [vmem:[#allocation12 + $0x1a0] sm:$0xff]  ;;  %v1908_v22 = vld [vmem:[#allocation12 + $0x1b0] sm:$0xff] }
 0x745   :  { %1921 = vmatpush1.msra.mxu0 %v1910_v17  ;;  %1992 = vmatpush1.msra.mxu1 %v1912_v18  ;;  %v1903_v23 = vld [vmem:[#allocation12 + $0x188] sm:$0xff]  ;;  %v1905_v24 = vld [vmem:[#allocation12 + $0x198] sm:$0xff]  ;;  %v1902_v25 = vld [vmem:[#allocation12 + $0x180] sm:$0xff]  ;;  %v1845_v17 = vrot.slane %v3369_v28, 2 }
 0x746   :  { %1922 = vmatprep.subr.mxu0 %v1907_v20  ;;  %1993 = vmatprep.subr.mxu1 %v1909_v19  ;;  %v1904_v26 = vld [vmem:[#allocation12 + $0x190] sm:$0xff]  ;;  %v1899_v27 = vld [vmem:[#allocation12 + $0x168] sm:$0xff]  ;;  %v1901_v29 = vld [vmem:[#allocation12 + $0x178] sm:$0xff] }
 0x747   :  { %1923 = vmatpush1.msra.mxu0 %v1906_v21  ;;  %1994 = vmatpush1.msra.mxu1 %v1908_v22  ;;  %v1898_v30 = vld [vmem:[#allocation12 + $0x160] sm:$0xff]  ;;  %v1900_v31 = vld [vmem:[#allocation12 + $0x170] sm:$0xff]  ;;  %v1895_v32 = vld [vmem:[#allocation12 + $0x148] sm:$0xff]  ;;  %p2857_p12 = scmp.le.s32.totalorder %s3380_s13, 0 }
 0x748   :  { %1924 = vmatprep.subr.mxu0 %v1903_v23  ;;  %1995 = vmatprep.subr.mxu1 %v1905_v24  ;;  %v1897_v33 = vld [vmem:[#allocation12 + $0x158] sm:$0xff]  ;;  %v1894_v34 = vld [vmem:[#allocation12 + $0x140] sm:$0xff]  ;;  %v1896_v35 = vld [vmem:[#allocation12 + $0x150] sm:$0xff] }
 0x749   :  { %1925 = vmatpush1.msra.mxu0 %v1902_v25  ;;  %1996 = vmatpush1.msra.mxu1 %v1904_v26  ;;  %v1891_v36 = vld [vmem:[#allocation12 + $0x128] sm:$0xff]  ;;  %v1893_v37 = vld [vmem:[#allocation12 + $0x138] sm:$0xff]  ;;  %v1890_v39 = vld [vmem:[#allocation12 + $0x120] sm:$0xff] }
 0x74a   :  { %1926 = vmatprep.subr.mxu0 %v1899_v27  ;;  %1997 = vmatprep.subr.mxu1 %v1901_v29  ;;  %v1892_v40 = vld [vmem:[#allocation12 + $0x130] sm:$0xff]  ;;  %v1887_v41 = vld [vmem:[#allocation12 + $0x108] sm:$0xff]  ;;  %v1889_v42 = vld [vmem:[#allocation12 + $0x118] sm:$0xff] }
 0x74b   :  { %1927 = vmatpush1.msra.mxu0 %v1898_v30  ;;  %1998 = vmatpush1.msra.mxu1 %v1900_v31  ;;  %v1886_v43 = vld [vmem:[#allocation12 + $0x100] sm:$0xff]  ;;  %v1888_v44 = vld [vmem:[#allocation12 + $0x110] sm:$0xff]  ;;  %v1883_v45 = vld [vmem:[#allocation12 + $0xe8] sm:$0xff] }
 0x74c   :  { %1928 = vmatprep.subr.mxu0 %v1895_v32  ;;  %1999 = vmatprep.subr.mxu1 %v1897_v33  ;;  %v1885_v46 = vld [vmem:[#allocation12 + $0xf8] sm:$0xff]  ;;  %v1882_v47 = vld [vmem:[#allocation12 + $0xe0] sm:$0xff]  ;;  %v1884_v48 = vld [vmem:[#allocation12 + $0xf0] sm:$0xff] }
 0x74d   :  { %1929 = vmatpush1.msra.mxu0 %v1894_v34  ;;  %2000 = vmatpush1.msra.mxu1 %v1896_v35  ;;  %v1879_v49 = vld [vmem:[#allocation12 + $0xc8] sm:$0xff]  ;;  %v1881_v50 = vld [vmem:[#allocation12 + $0xd8] sm:$0xff]  ;;  %v1878_v51 = vld [vmem:[#allocation12 + $0xc0] sm:$0xff] }
 0x74e   :  { %1930 = vmatprep.subr.mxu0 %v1891_v36  ;;  %2001 = vmatprep.subr.mxu1 %v1893_v37  ;;  %v1880_v52 = vld [vmem:[#allocation12 + $0xd0] sm:$0xff]  ;;  %v1875_v54 = vld [vmem:[#allocation12 + $0xa8] sm:$0xff]  ;;  %v1877_v53 = vld [vmem:[#allocation12 + $0xb8] sm:$0xff] }
 0x74f   :  { %1931 = vmatpush1.msra.mxu0 %v1890_v39  ;;  %2002 = vmatpush1.msra.mxu1 %v1892_v40  ;;  %v1874_v55 = vld [vmem:[#allocation12 + $0xa0] sm:$0xff]  ;;  %v1876_v56 = vld [vmem:[#allocation12 + $0xb0] sm:$0xff]  ;;  %v1871_v57 = vld [vmem:[#allocation12 + $0x88] sm:$0xff] }
 0x750   :  { %1932 = vmatprep.subr.mxu0 %v1887_v41  ;;  %2003 = vmatprep.subr.mxu1 %v1889_v42  ;;  %v1873_v58 = vld [vmem:[#allocation12 + $0x98] sm:$0xff]  ;;  %v1870_v59 = vld [vmem:[#allocation12 + $0x80] sm:$0xff]  ;;  %v1872_v60 = vld [vmem:[#allocation12 + $0x90] sm:$0xff] }
 0x751   :  { %1933 = vmatpush1.msra.mxu0 %v1886_v43  ;;  %2004 = vmatpush1.msra.mxu1 %v1888_v44  ;;  %v1843_v61 = vld [vmem:[#allocation4] sm:$0x1]  ;;  %v1867_v63 = vld [vmem:[#allocation12 + $0x68] sm:$0xff]  ;;  %v1869_v62 = vld [vmem:[#allocation12 + $0x78] sm:$0xff] }
 0x752   :  { %1934 = vmatprep.subr.mxu0 %v1883_v45  ;;  %2005 = vmatprep.subr.mxu1 %v1885_v46  ;;  %2956 = vtanh.f32 %v1843_v61  ;;  %1850 = vst [vmem:[#allocation19 + $0x4] sm:$0x1] %v1843_v61  ;;  %v1866_v0 = vld [vmem:[#allocation12 + $0x60] sm:$0xff]  ;;  %v1868_v1 = vld [vmem:[#allocation12 + $0x70] sm:$0xff]  ;;  %v1863_v2 = vld [vmem:[#allocation12 + $0x48] sm:$0xff] }
 0x753   :  { %1935 = vmatpush1.msra.mxu0 %v1882_v47  ;;  %2006 = vmatpush1.msra.mxu1 %v1884_v48  ;;  %v1865_v3 = vld [vmem:[#allocation12 + $0x58] sm:$0xff]  ;;  %v1862_v4 = vld [vmem:[#allocation12 + $0x40] sm:$0xff]  ;;  %v1864_v5 = vld [vmem:[#allocation12 + $0x50] sm:$0xff] }
 0x754   :  { %1936 = vmatprep.subr.mxu0 %v1879_v49  ;;  %2007 = vmatprep.subr.mxu1 %v1881_v50  ;;  %v1859_v6 = vld [vmem:[#allocation12 + $0x28] sm:$0xff]  ;;  %v1861_v9 = vld [vmem:[#allocation12 + $0x38] sm:$0xff]  ;;  %v1858_v7 = vld [vmem:[#allocation12 + $0x20] sm:$0xff] }
 0x755   :  { %1937 = vmatpush1.msra.mxu0 %v1878_v51  ;;  %2008 = vmatpush1.msra.mxu1 %v1880_v52  ;;  %v1860_v10 = vld [vmem:[#allocation12 + $0x30] sm:$0xff]  ;;  %v1855_v13 = vld [vmem:[#allocation12 + $0x8] sm:$0xff]  ;;  %v1857_v14 = vld [vmem:[#allocation12 + $0x18] sm:$0xff] }
 0x756   :  { %1938 = vmatprep.subr.mxu0 %v1875_v54  ;;  %2009 = vmatprep.subr.mxu1 %v1877_v53  ;;  %v1854_v15 = vld [vmem:[#allocation12] sm:$0xff]  ;;  %v1856_v16 = vld [vmem:[#allocation12 + $0x10] sm:$0xff] }
 0x757   :  { %1939 = vmatpush1.msra.mxu0 %v1874_v55  ;;  %2010 = vmatpush1.msra.mxu1 %v1876_v56  ;;  %v1852_v30 = vld [vmem:[#allocation2 + $0x5] ss:$8 sm:$0xf]  ;;  %v2100_v39 = vld [vmem:[#allocation4] sm:$0x1] }
 0x758   :  { %1940 = vmatprep.subr.mxu0 %v1871_v57  ;;  %2011 = vmatprep.subr.mxu1 %v1873_v58 }
 0x759   :  { %1941 = vmatpush1.msra.mxu0 %v1870_v59  ;;  %2012 = vmatpush1.msra.mxu1 %v1872_v60 }
 0x75a   :  { %1942 = vmatprep.subr.mxu0 %v1867_v63  ;;  %2013 = vmatprep.subr.mxu1 %v1869_v62 }
 0x75b   :  { %1943 = vmatpush1.msra.mxu0 %v1866_v0  ;;  %2014 = vmatpush1.msra.mxu1 %v1868_v1 }
 0x75c   :  { %1944 = vmatprep.subr.mxu0 %v1863_v2  ;;  %2015 = vmatprep.subr.mxu1 %v1865_v3 }
 0x75d   :  { %1945 = vmatpush1.msra.mxu0 %v1862_v4  ;;  %2016 = vmatpush1.msra.mxu1 %v1864_v5 }
 0x75e   :  { %1946 = vmatprep.subr.mxu0 %v1859_v6  ;;  %2017 = vmatprep.subr.mxu1 %v1861_v9 }
 0x75f   :  { %1947 = vmatpush1.msra.mxu0 %v1858_v7  ;;  %2018 = vmatpush1.msra.mxu1 %v1860_v10  ;;  %v2957_v18 = vpop.eup %2956 }
 0x760   :  { %1948 = vmatprep.subr.mxu0 %v1855_v13  ;;  %2019 = vmatprep.subr.mxu1 %v1857_v14  ;;  %v1847_v20 = vmul.f32 %v2957_v18, %v1845_v17 }
 0x761   :  { %1949 = vmatpush1.msra.mxu0 %v1854_v15  ;;  %2020 = vmatpush1.msra.mxu1 %v1856_v16 }
 0x762   :  { %1848 = vst [vmem:[#allocation3] sm:$0x1] %v1847_v20  ;;  %1849 = vst [vmem:[#allocation18 + $0x4] sm:$0x1] %v1847_v20 }
 0x769   :  { %v1853_v19 = vld [vmem:[#allocation3] sm:$0x1] }
 0x76a   :  { %1983 = vmatmul.mubr.f32.vlgmr.msra.gmra.mxu0 %v1853_v19  ;;  %2054 = vmatmul.mubr.f32.vlgmr.msra.gmra.mxu1 %v1853_v19 }
 0x82a   :  { %v1984_v21 = vpop.f32.mrf.mxu0  ;;  %v2055_v22 = vpop.f32.mrf.mxu1 }
 0x82c   :  { %v1986_v23 = vpop.f32.mrf.mxu0  ;;  %v2057_v24 = vpop.f32.mrf.mxu1 }
 0x82d   :  { %v2064_v25 = vcombine.low %v1984_v21, %v1986_v23  ;;  %v2065_v26 = vcombine.low %v2055_v22, %v2057_v24 }
 0x82f   :  { %v2072_v27 = vrot.slane %v2064_v25, %v3300_v38  ;;  %v2079_v29 = vrot.slane %v2065_v26, %v3300_v38 }
 0x831   :  { %v2080_v28 = vcombine.low %v2072_v27, %v2079_v29 }
 0x833   :  { %v2087_v31 = vrot.slane %v2080_v28, %v3300_v38 }
 0x835   :  { %v2089_v32 = vadd.f32 %v2087_v31, %v1852_v30 }
 0x837   :  { %v2855_v33 = vmul.f32 -1.442695, %v2089_v32  ;;  %v2097_v36 = vrot.slane %v2089_v32, 3 }
 0x839   :  { %2958 = vpow2.f32 %v2855_v33 }
 0x846   :  { %v2959_v34 = vpop.eup %2958 }
 0x847   :  { %v2093_v35 = vadd.f32 1.0, %v2959_v34 }
 0x849   :  { %2960 = vrcp.f32 %v2093_v35 }
 0x84a   :  { %2962 = vtanh.f32 %v2097_v36 }
 0x856   :  { %v3385_v37 = vpop.eup %2960 }
 0x857   :  { %v2103_v40 = vrot.slane %v3385_v37, 1  ;;  %v2963_v41 = vpop.eup %2962  ;;  %v2101_v42 = vmul.f32 %v3385_v37, %v2100_v39 }
 0x859   :  { %v2105_v43 = vmul.f32 %v2963_v41, %v2103_v40  ;;  %2112 = sbr.rel (%p2857_p12) target bundleno = 2210 (0x8a2), region = 89 }
 0x85b   :  { %v2106_v44 = vadd.f32 %v2105_v43, %v2101_v42 }
 0x85d   :  { %2107 = vst [vmem:[#allocation4] sm:$0x1] %v2106_v44 }
 0x85e   :  { %v2114_v45 = vld [vmem:[#allocation15 + $0x28] sm:$0xff]  ;;  %v2119_v46 = vstv %s3380_s13 }
 0x85f   :  { %vm2120_vm6 = vcmp.lt.s32.totalorder %v3290_v11, %v2119_v46  ;;  %v2116_v60 = vld [vmem:[#allocation14 + $0x28] sm:$0xff] }
 0x860   :  { %v2121_v47 = vsel %vm2120_vm6, %v2114_v45, -inf }
 0x861   :  { %v2122_v48 = vrot.slane %v2121_v47, 4 }
 0x863   :  { %v2123_v49 = vmax.f32 %v2121_v47, %v2122_v48 }
 0x865   :  { %v2124_v50 = vrot.slane %v2123_v49, 2 }
 0x867   :  { %v2125_v51 = vmax.f32 %v2123_v49, %v2124_v50 }
 0x869   :  { %v2126_v52 = vrot.slane %v2125_v51, 1 }
 0x86b   :  { %v2127_v54 = vmax.f32 %v2125_v51, %v2126_v52 }
 0x86d   :  { %v2128_v53 = vmax.f32 %v2103_v40, %v2127_v54 }
 0x86f   :  { %v2136_v55 = vrot.slane %v2128_v53, %v3293_v12  ;;  %v2129_v58 = vsub.f32 %v2103_v40, %v2128_v53 }
 0x871   :  { %v2138_v56 = vsub.f32 %v2121_v47, %v2136_v55  ;;  %v2130_v59 = vmul.f32 1.442695, %v2129_v58 }
 0x873   :  { %v2139_v57 = vmul.f32 1.442695, %v2138_v56 }
 0x875   :  { %2964 = vpow2.f32 %v2139_v57 }
 0x876   :  { %2966 = vpow2.f32 %v2130_v59 }
 0x882   :  { %v2965_v61 = vpop.eup %2964 }
 0x883   :  { %v2141_v63 = vrot.slane %v2965_v61, 4  ;;  %v2149_v62 = vmul.f32 %v2965_v61, %v2116_v60  ;;  %v2967_v9 = vpop.eup %2966 }
 0x884   :  { %v2148_v15 = vmul.f32 %v2967_v9, %v2963_v41 }
 0x885   :  { %v2142_v0 = vadd.f32 %v2965_v61, %v2141_v63  ;;  %v2150_v1 = vrot.slane %v2149_v62, 4 }
 0x887   :  { %v2143_v2 = vrot.slane %v2142_v0, 2  ;;  %v2151_v3 = vadd.f32 %v2150_v1, %v2149_v62 }
 0x889   :  { %v2144_v4 = vadd.f32 %v2143_v2, %v2142_v0  ;;  %v2152_v6 = vrot.slane %v2151_v3, 2 }
 0x88b   :  { %v2145_v5 = vrot.slane %v2144_v4, 1  ;;  %v2153_v13 = vadd.f32 %v2152_v6, %v2151_v3 }
 0x88d   :  { %v2146_v7 = vadd.f32 %v2145_v5, %v2144_v4  ;;  %v2154_v14 = vrot.slane %v2153_v13, 1 }
 0x88f   :  { %v2147_v10 = vadd.f32 %v2967_v9, %v2146_v7  ;;  %v2155_v16 = vadd.f32 %v2154_v14, %v2153_v13 }
 0x891   :  { %2968 = vrcp.f32 %v2147_v10  ;;  %v2156_v17 = vadd.f32 %v2155_v16, %v2148_v15 }
 0x89e   :  { %v2969_v18 = vpop.eup %2968 }
 0x89f   :  { %v2158_v20 = vmul.f32 %v2969_v18, %v2156_v17 }
 0x8a1   :  { %2159 = vst [vmem:[#allocation4] sm:$0x1] %v2158_v20 }
 0x8a2 PF:  { %v2232_v19 = vld [vmem:[#allocation12 + $0x1e8] sm:$0xff]  ;;  %v2234_v21 = vld [vmem:[#allocation12 + $0x1f8] sm:$0xff]  ;;  %v2231_v22 = vld [vmem:[#allocation12 + $0x1e0] sm:$0xff]  ;;  %2299 = vmatprep.mubr.f32.mxu0 %v3200_v8  ;;  %2370 = vmatprep.mubr.f32.mxu1 %v3200_v8  ;;  %s3396_s5 = sld [smem:[#allocation17 + $0x6]] }
 0x8a3   :  { %2235 = vmatprep.subr.mxu0 %v2232_v19  ;;  %2306 = vmatprep.subr.mxu1 %v2234_v21  ;;  %v2233_v23 = vld [vmem:[#allocation12 + $0x1f0] sm:$0xff]  ;;  %v2228_v24 = vld [vmem:[#allocation12 + $0x1c8] sm:$0xff]  ;;  %v2230_v25 = vld [vmem:[#allocation12 + $0x1d8] sm:$0xff] }
 0x8a4   :  { %2236 = vmatpush1.msra.mxu0 %v2231_v22  ;;  %2307 = vmatpush1.msra.mxu1 %v2233_v23  ;;  %v2227_v26 = vld [vmem:[#allocation12 + $0x1c0] sm:$0xff]  ;;  %v2229_v27 = vld [vmem:[#allocation12 + $0x1d0] sm:$0xff]  ;;  %v2224_v29 = vld [vmem:[#allocation12 + $0x1a8] sm:$0xff] }
 0x8a5   :  { %2237 = vmatprep.subr.mxu0 %v2228_v24  ;;  %2308 = vmatprep.subr.mxu1 %v2230_v25  ;;  %v2226_v28 = vld [vmem:[#allocation12 + $0x1b8] sm:$0xff]  ;;  %v2223_v30 = vld [vmem:[#allocation12 + $0x1a0] sm:$0xff]  ;;  %v2225_v31 = vld [vmem:[#allocation12 + $0x1b0] sm:$0xff] }
 0x8a6   :  { %2238 = vmatpush1.msra.mxu0 %v2227_v26  ;;  %2309 = vmatpush1.msra.mxu1 %v2229_v27  ;;  %v2220_v32 = vld [vmem:[#allocation12 + $0x188] sm:$0xff]  ;;  %v2222_v33 = vld [vmem:[#allocation12 + $0x198] sm:$0xff]  ;;  %v2219_v34 = vld [vmem:[#allocation12 + $0x180] sm:$0xff]  ;;  %v2162_v26 = vrot.slane %v3385_v37, 2 }
 0x8a7   :  { %2239 = vmatprep.subr.mxu0 %v2224_v29  ;;  %2310 = vmatprep.subr.mxu1 %v2226_v28  ;;  %v2221_v35 = vld [vmem:[#allocation12 + $0x190] sm:$0xff]  ;;  %v2216_v36 = vld [vmem:[#allocation12 + $0x168] sm:$0xff]  ;;  %v2218_v39 = vld [vmem:[#allocation12 + $0x178] sm:$0xff] }
 0x8a8   :  { %2240 = vmatpush1.msra.mxu0 %v2223_v30  ;;  %2311 = vmatpush1.msra.mxu1 %v2225_v31  ;;  %v2215_v40 = vld [vmem:[#allocation12 + $0x160] sm:$0xff]  ;;  %v2217_v41 = vld [vmem:[#allocation12 + $0x170] sm:$0xff]  ;;  %v2212_v42 = vld [vmem:[#allocation12 + $0x148] sm:$0xff]  ;;  %p2860_p13 = scmp.le.s32.totalorder %s3396_s5, 0 }
 0x8a9   :  { %2241 = vmatprep.subr.mxu0 %v2220_v32  ;;  %2312 = vmatprep.subr.mxu1 %v2222_v33  ;;  %v2214_v43 = vld [vmem:[#allocation12 + $0x158] sm:$0xff]  ;;  %v2211_v44 = vld [vmem:[#allocation12 + $0x140] sm:$0xff]  ;;  %v2213_v45 = vld [vmem:[#allocation12 + $0x150] sm:$0xff] }
 0x8aa   :  { %2242 = vmatpush1.msra.mxu0 %v2219_v34  ;;  %2313 = vmatpush1.msra.mxu1 %v2221_v35  ;;  %v2208_v46 = vld [vmem:[#allocation12 + $0x128] sm:$0xff]  ;;  %v2210_v47 = vld [vmem:[#allocation12 + $0x138] sm:$0xff]  ;;  %v2207_v48 = vld [vmem:[#allocation12 + $0x120] sm:$0xff] }
 0x8ab   :  { %2243 = vmatprep.subr.mxu0 %v2216_v36  ;;  %2314 = vmatprep.subr.mxu1 %v2218_v39  ;;  %v2209_v49 = vld [vmem:[#allocation12 + $0x130] sm:$0xff]  ;;  %v2204_v50 = vld [vmem:[#allocation12 + $0x108] sm:$0xff]  ;;  %v2206_v51 = vld [vmem:[#allocation12 + $0x118] sm:$0xff] }
 0x8ac   :  { %2244 = vmatpush1.msra.mxu0 %v2215_v40  ;;  %2315 = vmatpush1.msra.mxu1 %v2217_v41  ;;  %v2203_v52 = vld [vmem:[#allocation12 + $0x100] sm:$0xff]  ;;  %v2205_v54 = vld [vmem:[#allocation12 + $0x110] sm:$0xff]  ;;  %v2200_v53 = vld [vmem:[#allocation12 + $0xe8] sm:$0xff] }
 0x8ad   :  { %2245 = vmatprep.subr.mxu0 %v2212_v42  ;;  %2316 = vmatprep.subr.mxu1 %v2214_v43  ;;  %v2202_v55 = vld [vmem:[#allocation12 + $0xf8] sm:$0xff]  ;;  %v2199_v56 = vld [vmem:[#allocation12 + $0xe0] sm:$0xff]  ;;  %v2201_v57 = vld [vmem:[#allocation12 + $0xf0] sm:$0xff] }
 0x8ae   :  { %2246 = vmatpush1.msra.mxu0 %v2211_v44  ;;  %2317 = vmatpush1.msra.mxu1 %v2213_v45  ;;  %v2196_v58 = vld [vmem:[#allocation12 + $0xc8] sm:$0xff]  ;;  %v2198_v59 = vld [vmem:[#allocation12 + $0xd8] sm:$0xff]  ;;  %v2195_v60 = vld [vmem:[#allocation12 + $0xc0] sm:$0xff] }
 0x8af   :  { %2247 = vmatprep.subr.mxu0 %v2208_v46  ;;  %2318 = vmatprep.subr.mxu1 %v2210_v47  ;;  %v2197_v61 = vld [vmem:[#allocation12 + $0xd0] sm:$0xff]  ;;  %v2192_v63 = vld [vmem:[#allocation12 + $0xa8] sm:$0xff]  ;;  %v2194_v62 = vld [vmem:[#allocation12 + $0xb8] sm:$0xff] }
 0x8b0   :  { %2248 = vmatpush1.msra.mxu0 %v2207_v48  ;;  %2319 = vmatpush1.msra.mxu1 %v2209_v49  ;;  %v2191_v0 = vld [vmem:[#allocation12 + $0xa0] sm:$0xff]  ;;  %v2193_v1 = vld [vmem:[#allocation12 + $0xb0] sm:$0xff]  ;;  %v2188_v2 = vld [vmem:[#allocation12 + $0x88] sm:$0xff] }
 0x8b1   :  { %2249 = vmatprep.subr.mxu0 %v2204_v50  ;;  %2320 = vmatprep.subr.mxu1 %v2206_v51  ;;  %v2190_v3 = vld [vmem:[#allocation12 + $0x98] sm:$0xff]  ;;  %v2187_v4 = vld [vmem:[#allocation12 + $0x80] sm:$0xff]  ;;  %v2189_v5 = vld [vmem:[#allocation12 + $0x90] sm:$0xff] }
 0x8b2   :  { %2250 = vmatpush1.msra.mxu0 %v2203_v52  ;;  %2321 = vmatpush1.msra.mxu1 %v2205_v54  ;;  %v2160_v6 = vld [vmem:[#allocation4] sm:$0x1]  ;;  %v2184_v9 = vld [vmem:[#allocation12 + $0x68] sm:$0xff]  ;;  %v2186_v7 = vld [vmem:[#allocation12 + $0x78] sm:$0xff] }
 0x8b3   :  { %2251 = vmatprep.subr.mxu0 %v2200_v53  ;;  %2322 = vmatprep.subr.mxu1 %v2202_v55  ;;  %2970 = vtanh.f32 %v2160_v6  ;;  %2167 = vst [vmem:[#allocation19 + $0x5] sm:$0x1] %v2160_v6  ;;  %v2183_v10 = vld [vmem:[#allocation12 + $0x60] sm:$0xff]  ;;  %v2185_v13 = vld [vmem:[#allocation12 + $0x70] sm:$0xff]  ;;  %v2180_v14 = vld [vmem:[#allocation12 + $0x48] sm:$0xff] }
 0x8b4   :  { %2252 = vmatpush1.msra.mxu0 %v2199_v56  ;;  %2323 = vmatpush1.msra.mxu1 %v2201_v57  ;;  %v2182_v15 = vld [vmem:[#allocation12 + $0x58] sm:$0xff]  ;;  %v2179_v16 = vld [vmem:[#allocation12 + $0x40] sm:$0xff]  ;;  %v2181_v17 = vld [vmem:[#allocation12 + $0x50] sm:$0xff] }
 0x8b5   :  { %2253 = vmatprep.subr.mxu0 %v2196_v58  ;;  %2324 = vmatprep.subr.mxu1 %v2198_v59  ;;  %v2176_v18 = vld [vmem:[#allocation12 + $0x28] sm:$0xff]  ;;  %v2178_v20 = vld [vmem:[#allocation12 + $0x38] sm:$0xff]  ;;  %v2175_v19 = vld [vmem:[#allocation12 + $0x20] sm:$0xff] }
 0x8b6   :  { %2254 = vmatpush1.msra.mxu0 %v2195_v60  ;;  %2325 = vmatpush1.msra.mxu1 %v2197_v61  ;;  %v2177_v21 = vld [vmem:[#allocation12 + $0x30] sm:$0xff]  ;;  %v2172_v22 = vld [vmem:[#allocation12 + $0x8] sm:$0xff]  ;;  %v2174_v23 = vld [vmem:[#allocation12 + $0x18] sm:$0xff] }
 0x8b7   :  { %2255 = vmatprep.subr.mxu0 %v2192_v63  ;;  %2326 = vmatprep.subr.mxu1 %v2194_v62  ;;  %v2171_v24 = vld [vmem:[#allocation12] sm:$0xff]  ;;  %v2173_v25 = vld [vmem:[#allocation12 + $0x10] sm:$0xff] }
 0x8b8   :  { %2256 = vmatpush1.msra.mxu0 %v2191_v0  ;;  %2327 = vmatpush1.msra.mxu1 %v2193_v1  ;;  %v2169_v40 = vld [vmem:[#allocation2 + $0x6] ss:$8 sm:$0xf]  ;;  %v2417_v48 = vld [vmem:[#allocation4] sm:$0x1] }
 0x8b9   :  { %2257 = vmatprep.subr.mxu0 %v2188_v2  ;;  %2328 = vmatprep.subr.mxu1 %v2190_v3 }
 0x8ba   :  { %2258 = vmatpush1.msra.mxu0 %v2187_v4  ;;  %2329 = vmatpush1.msra.mxu1 %v2189_v5 }
 0x8bb   :  { %2259 = vmatprep.subr.mxu0 %v2184_v9  ;;  %2330 = vmatprep.subr.mxu1 %v2186_v7 }
 0x8bc   :  { %2260 = vmatpush1.msra.mxu0 %v2183_v10  ;;  %2331 = vmatpush1.msra.mxu1 %v2185_v13 }
 0x8bd   :  { %2261 = vmatprep.subr.mxu0 %v2180_v14  ;;  %2332 = vmatprep.subr.mxu1 %v2182_v15 }
 0x8be   :  { %2262 = vmatpush1.msra.mxu0 %v2179_v16  ;;  %2333 = vmatpush1.msra.mxu1 %v2181_v17 }
 0x8bf   :  { %2263 = vmatprep.subr.mxu0 %v2176_v18  ;;  %2334 = vmatprep.subr.mxu1 %v2178_v20 }
 0x8c0   :  { %2264 = vmatpush1.msra.mxu0 %v2175_v19  ;;  %2335 = vmatpush1.msra.mxu1 %v2177_v21  ;;  %v2971_v27 = vpop.eup %2970 }
 0x8c1   :  { %2265 = vmatprep.subr.mxu0 %v2172_v22  ;;  %2336 = vmatprep.subr.mxu1 %v2174_v23  ;;  %v2164_v29 = vmul.f32 %v2971_v27, %v2162_v26 }
 0x8c2   :  { %2266 = vmatpush1.msra.mxu0 %v2171_v24  ;;  %2337 = vmatpush1.msra.mxu1 %v2173_v25 }
 0x8c3   :  { %2165 = vst [vmem:[#allocation3] sm:$0x1] %v2164_v29  ;;  %2166 = vst [vmem:[#allocation18 + $0x5] sm:$0x1] %v2164_v29 }
 0x8ca   :  { %v2170_v28 = vld [vmem:[#allocation3] sm:$0x1] }
 0x8cb   :  { %2300 = vmatmul.mubr.f32.vlgmr.msra.gmra.mxu0 %v2170_v28  ;;  %2371 = vmatmul.mubr.f32.vlgmr.msra.gmra.mxu1 %v2170_v28 }
 0x98b   :  { %v2301_v30 = vpop.f32.mrf.mxu0  ;;  %v2372_v31 = vpop.f32.mrf.mxu1 }
 0x98d   :  { %v2303_v32 = vpop.f32.mrf.mxu0  ;;  %v2374_v33 = vpop.f32.mrf.mxu1 }
 0x98e   :  { %v2381_v34 = vcombine.low %v2301_v30, %v2303_v32  ;;  %v2382_v35 = vcombine.low %v2372_v31, %v2374_v33 }
 0x990   :  { %v2389_v36 = vrot.slane %v2381_v34, %v3300_v38  ;;  %v2396_v39 = vrot.slane %v2382_v35, %v3300_v38 }
 0x992   :  { %v2397_v37 = vcombine.low %v2389_v36, %v2396_v39 }
 0x994   :  { %v2404_v41 = vrot.slane %v2397_v37, %v3300_v38 }
 0x996   :  { %v2406_v42 = vadd.f32 %v2404_v41, %v2169_v40 }
 0x998   :  { %v2858_v43 = vmul.f32 -1.442695, %v2406_v42  ;;  %v2414_v46 = vrot.slane %v2406_v42, 3 }
 0x99a   :  { %2972 = vpow2.f32 %v2858_v43 }
 0x9a7   :  { %v2973_v44 = vpop.eup %2972 }
 0x9a8   :  { %v2410_v45 = vadd.f32 1.0, %v2973_v44 }
 0x9aa   :  { %2974 = vrcp.f32 %v2410_v45 }
 0x9ab   :  { %2976 = vtanh.f32 %v2414_v46 }
 0x9b7   :  { %v3401_v47 = vpop.eup %2974 }
 0x9b8   :  { %v2420_v49 = vrot.slane %v3401_v47, 1  ;;  %v2977_v50 = vpop.eup %2976  ;;  %v2418_v51 = vmul.f32 %v3401_v47, %v2417_v48 }
 0x9ba   :  { %v2422_v52 = vmul.f32 %v2977_v50, %v2420_v49  ;;  %2429 = sbr.rel (%p2860_p13) target bundleno = 2563 (0xa03), region = 93 }
 0x9bc   :  { %v2423_v54 = vadd.f32 %v2422_v52, %v2418_v51 }
 0x9be   :  { %2424 = vst [vmem:[#allocation4] sm:$0x1] %v2423_v54 }
 0x9bf   :  { %v2431_v53 = vld [vmem:[#allocation15 + $0x30] sm:$0xff]  ;;  %v2436_v55 = vstv %s3396_s5 }
 0x9c0   :  { %vm2437_vm7 = vcmp.lt.s32.totalorder %v3290_v11, %v2436_v55  ;;  %v2433_v5 = vld [vmem:[#allocation14 + $0x30] sm:$0xff] }
 0x9c1   :  { %v2438_v56 = vsel %vm2437_vm7, %v2431_v53, -inf }
 0x9c2   :  { %v2439_v57 = vrot.slane %v2438_v56, 4 }
 0x9c4   :  { %v2440_v58 = vmax.f32 %v2438_v56, %v2439_v57 }
 0x9c6   :  { %v2441_v59 = vrot.slane %v2440_v58, 2 }
 0x9c8   :  { %v2442_v60 = vmax.f32 %v2440_v58, %v2441_v59 }
 0x9ca   :  { %v2443_v61 = vrot.slane %v2442_v60, 1 }
 0x9cc   :  { %v2444_v63 = vmax.f32 %v2442_v60, %v2443_v61 }
 0x9ce   :  { %v2445_v62 = vmax.f32 %v2420_v49, %v2444_v63 }
 0x9d0   :  { %v2453_v0 = vrot.slane %v2445_v62, %v3293_v12  ;;  %v2446_v3 = vsub.f32 %v2420_v49, %v2445_v62 }
 0x9d2   :  { %v2455_v1 = vsub.f32 %v2438_v56, %v2453_v0  ;;  %v2447_v4 = vmul.f32 1.442695, %v2446_v3 }
 0x9d4   :  { %v2456_v2 = vmul.f32 1.442695, %v2455_v1 }
 0x9d6   :  { %2978 = vpow2.f32 %v2456_v2 }
 0x9d7   :  { %2980 = vpow2.f32 %v2447_v4 }
 0x9e3   :  { %v2979_v6 = vpop.eup %2978 }
 0x9e4   :  { %v2458_v9 = vrot.slane %v2979_v6, 4  ;;  %v2466_v7 = vmul.f32 %v2979_v6, %v2433_v5  ;;  %v2981_v20 = vpop.eup %2980 }
 0x9e5   :  { %v2465_v24 = vmul.f32 %v2981_v20, %v2977_v50 }
 0x9e6   :  { %v2459_v10 = vadd.f32 %v2979_v6, %v2458_v9  ;;  %v2467_v13 = vrot.slane %v2466_v7, 4 }
 0x9e8   :  { %v2460_v14 = vrot.slane %v2459_v10, 2  ;;  %v2468_v15 = vadd.f32 %v2467_v13, %v2466_v7 }
 0x9ea   :  { %v2461_v16 = vadd.f32 %v2460_v14, %v2459_v10  ;;  %v2469_v18 = vrot.slane %v2468_v15, 2 }
 0x9ec   :  { %v2462_v17 = vrot.slane %v2461_v16, 1  ;;  %v2470_v22 = vadd.f32 %v2469_v18, %v2468_v15 }
 0x9ee   :  { %v2463_v19 = vadd.f32 %v2462_v17, %v2461_v16  ;;  %v2471_v23 = vrot.slane %v2470_v22, 1 }
 0x9f0   :  { %v2464_v21 = vadd.f32 %v2981_v20, %v2463_v19  ;;  %v2472_v25 = vadd.f32 %v2471_v23, %v2470_v22 }
 0x9f2   :  { %2982 = vrcp.f32 %v2464_v21  ;;  %v2473_v26 = vadd.f32 %v2472_v25, %v2465_v24 }
 0x9ff   :  { %v2983_v27 = vpop.eup %2982 }
 0xa00   :  { %v2475_v29 = vmul.f32 %v2983_v27, %v2473_v26 }
 0xa02   :  { %2476 = vst [vmem:[#allocation4] sm:$0x1] %v2475_v29 }
 0xa03 PF:  { %v2549_v28 = vld [vmem:[#allocation12 + $0x1e8] sm:$0xff]  ;;  %v2551_v30 = vld [vmem:[#allocation12 + $0x1f8] sm:$0xff]  ;;  %v2548_v31 = vld [vmem:[#allocation12 + $0x1e0] sm:$0xff]  ;;  %2616 = vmatprep.mubr.f32.mxu0 %v3200_v8  ;;  %2687 = vmatprep.mubr.f32.mxu1 %v3200_v8  ;;  %s3412_s14 = sld [smem:[#allocation17 + $0x7]] }
 0xa04   :  { %2552 = vmatprep.subr.mxu0 %v2549_v28  ;;  %2623 = vmatprep.subr.mxu1 %v2551_v30  ;;  %v2550_v32 = vld [vmem:[#allocation12 + $0x1f0] sm:$0xff]  ;;  %v2545_v33 = vld [vmem:[#allocation12 + $0x1c8] sm:$0xff]  ;;  %v2547_v34 = vld [vmem:[#allocation12 + $0x1d8] sm:$0xff] }
 0xa05   :  { %2553 = vmatpush1.msra.mxu0 %v2548_v31  ;;  %2624 = vmatpush1.msra.mxu1 %v2550_v32  ;;  %v2544_v35 = vld [vmem:[#allocation12 + $0x1c0] sm:$0xff]  ;;  %v2546_v36 = vld [vmem:[#allocation12 + $0x1d0] sm:$0xff]  ;;  %v2541_v39 = vld [vmem:[#allocation12 + $0x1a8] sm:$0xff] }
 0xa06   :  { %2554 = vmatprep.subr.mxu0 %v2545_v33  ;;  %2625 = vmatprep.subr.mxu1 %v2547_v34  ;;  %v2543_v37 = vld [vmem:[#allocation12 + $0x1b8] sm:$0xff]  ;;  %v2540_v40 = vld [vmem:[#allocation12 + $0x1a0] sm:$0xff]  ;;  %v2542_v41 = vld [vmem:[#allocation12 + $0x1b0] sm:$0xff]  ;;  %v2479_v34 = vrot.slane %v3401_v47, 2 }
 0xa07   :  { %2555 = vmatpush1.msra.mxu0 %v2544_v35  ;;  %2626 = vmatpush1.msra.mxu1 %v2546_v36  ;;  %v2537_v42 = vld [vmem:[#allocation12 + $0x188] sm:$0xff]  ;;  %v2539_v43 = vld [vmem:[#allocation12 + $0x198] sm:$0xff]  ;;  %v2536_v8 = vld [vmem:[#allocation12 + $0x180] sm:$0xff] }
 0xa08   :  { %2556 = vmatprep.subr.mxu0 %v2541_v39  ;;  %2627 = vmatprep.subr.mxu1 %v2543_v37  ;;  %v2538_v44 = vld [vmem:[#allocation12 + $0x190] sm:$0xff]  ;;  %v2533_v45 = vld [vmem:[#allocation12 + $0x168] sm:$0xff]  ;;  %v2535_v46 = vld [vmem:[#allocation12 + $0x178] sm:$0xff] }
 0xa09   :  { %2557 = vmatpush1.msra.mxu0 %v2540_v40  ;;  %2628 = vmatpush1.msra.mxu1 %v2542_v41  ;;  %v2532_v48 = vld [vmem:[#allocation12 + $0x160] sm:$0xff]  ;;  %v2534_v49 = vld [vmem:[#allocation12 + $0x170] sm:$0xff]  ;;  %v2529_v50 = vld [vmem:[#allocation12 + $0x148] sm:$0xff]  ;;  %p2863_p0 = scmp.le.s32.totalorder %s3412_s14, 0 }
 0xa0a   :  { %2558 = vmatprep.subr.mxu0 %v2537_v42  ;;  %2629 = vmatprep.subr.mxu1 %v2539_v43  ;;  %v2531_v51 = vld [vmem:[#allocation12 + $0x158] sm:$0xff]  ;;  %v2528_v52 = vld [vmem:[#allocation12 + $0x140] sm:$0xff]  ;;  %v2530_v54 = vld [vmem:[#allocation12 + $0x150] sm:$0xff] }
 0xa0b   :  { %2559 = vmatpush1.msra.mxu0 %v2536_v8  ;;  %2630 = vmatpush1.msra.mxu1 %v2538_v44  ;;  %v2525_v53 = vld [vmem:[#allocation12 + $0x128] sm:$0xff]  ;;  %v2527_v55 = vld [vmem:[#allocation12 + $0x138] sm:$0xff]  ;;  %v2524_v56 = vld [vmem:[#allocation12 + $0x120] sm:$0xff] }
 0xa0c   :  { %2560 = vmatprep.subr.mxu0 %v2533_v45  ;;  %2631 = vmatprep.subr.mxu1 %v2535_v46  ;;  %v2526_v57 = vld [vmem:[#allocation12 + $0x130] sm:$0xff]  ;;  %v2521_v58 = vld [vmem:[#allocation12 + $0x108] sm:$0xff]  ;;  %v2523_v59 = vld [vmem:[#allocation12 + $0x118] sm:$0xff] }
 0xa0d   :  { %2561 = vmatpush1.msra.mxu0 %v2532_v48  ;;  %2632 = vmatpush1.msra.mxu1 %v2534_v49  ;;  %v2520_v60 = vld [vmem:[#allocation12 + $0x100] sm:$0xff]  ;;  %v2522_v61 = vld [vmem:[#allocation12 + $0x110] sm:$0xff]  ;;  %v2517_v63 = vld [vmem:[#allocation12 + $0xe8] sm:$0xff] }
 0xa0e   :  { %2562 = vmatprep.subr.mxu0 %v2529_v50  ;;  %2633 = vmatprep.subr.mxu1 %v2531_v51  ;;  %v2519_v62 = vld [vmem:[#allocation12 + $0xf8] sm:$0xff]  ;;  %v2516_v0 = vld [vmem:[#allocation12 + $0xe0] sm:$0xff]  ;;  %v2518_v1 = vld [vmem:[#allocation12 + $0xf0] sm:$0xff] }
 0xa0f   :  { %2563 = vmatpush1.msra.mxu0 %v2528_v52  ;;  %2634 = vmatpush1.msra.mxu1 %v2530_v54  ;;  %v2513_v2 = vld [vmem:[#allocation12 + $0xc8] sm:$0xff]  ;;  %v2515_v3 = vld [vmem:[#allocation12 + $0xd8] sm:$0xff]  ;;  %v2512_v4 = vld [vmem:[#allocation12 + $0xc0] sm:$0xff] }
 0xa10   :  { %2564 = vmatprep.subr.mxu0 %v2525_v53  ;;  %2635 = vmatprep.subr.mxu1 %v2527_v55  ;;  %v2514_v5 = vld [vmem:[#allocation12 + $0xd0] sm:$0xff]  ;;  %v2509_v6 = vld [vmem:[#allocation12 + $0xa8] sm:$0xff]  ;;  %v2511_v9 = vld [vmem:[#allocation12 + $0xb8] sm:$0xff] }
 0xa11   :  { %2565 = vmatpush1.msra.mxu0 %v2524_v56  ;;  %2636 = vmatpush1.msra.mxu1 %v2526_v57  ;;  %v2508_v7 = vld [vmem:[#allocation12 + $0xa0] sm:$0xff]  ;;  %v2510_v10 = vld [vmem:[#allocation12 + $0xb0] sm:$0xff]  ;;  %v2505_v13 = vld [vmem:[#allocation12 + $0x88] sm:$0xff] }
 0xa12   :  { %2566 = vmatprep.subr.mxu0 %v2521_v58  ;;  %2637 = vmatprep.subr.mxu1 %v2523_v59  ;;  %v2507_v14 = vld [vmem:[#allocation12 + $0x98] sm:$0xff]  ;;  %v2504_v15 = vld [vmem:[#allocation12 + $0x80] sm:$0xff]  ;;  %v2506_v16 = vld [vmem:[#allocation12 + $0x90] sm:$0xff] }
 0xa13   :  { %2567 = vmatpush1.msra.mxu0 %v2520_v60  ;;  %2638 = vmatpush1.msra.mxu1 %v2522_v61  ;;  %v2477_v17 = vld [vmem:[#allocation4] sm:$0x1]  ;;  %v2501_v18 = vld [vmem:[#allocation12 + $0x68] sm:$0xff]  ;;  %v2503_v20 = vld [vmem:[#allocation12 + $0x78] sm:$0xff] }
 0xa14   :  { %2568 = vmatprep.subr.mxu0 %v2517_v63  ;;  %2639 = vmatprep.subr.mxu1 %v2519_v62  ;;  %2984 = vtanh.f32 %v2477_v17  ;;  %2484 = vst [vmem:[#allocation19 + $0x6] sm:$0x1] %v2477_v17  ;;  %v2500_v19 = vld [vmem:[#allocation12 + $0x60] sm:$0xff]  ;;  %v2502_v21 = vld [vmem:[#allocation12 + $0x70] sm:$0xff]  ;;  %v2497_v22 = vld [vmem:[#allocation12 + $0x48] sm:$0xff] }
 0xa15   :  { %2569 = vmatpush1.msra.mxu0 %v2516_v0  ;;  %2640 = vmatpush1.msra.mxu1 %v2518_v1  ;;  %v2499_v23 = vld [vmem:[#allocation12 + $0x58] sm:$0xff]  ;;  %v2496_v24 = vld [vmem:[#allocation12 + $0x40] sm:$0xff]  ;;  %v2498_v25 = vld [vmem:[#allocation12 + $0x50] sm:$0xff] }
 0xa16   :  { %2570 = vmatprep.subr.mxu0 %v2513_v2  ;;  %2641 = vmatprep.subr.mxu1 %v2515_v3  ;;  %v2493_v26 = vld [vmem:[#allocation12 + $0x28] sm:$0xff]  ;;  %v2495_v27 = vld [vmem:[#allocation12 + $0x38] sm:$0xff]  ;;  %v2492_v29 = vld [vmem:[#allocation12 + $0x20] sm:$0xff] }
 0xa17   :  { %2571 = vmatpush1.msra.mxu0 %v2512_v4  ;;  %2642 = vmatpush1.msra.mxu1 %v2514_v5  ;;  %v2494_v28 = vld [vmem:[#allocation12 + $0x30] sm:$0xff]  ;;  %v2489_v30 = vld [vmem:[#allocation12 + $0x8] sm:$0xff]  ;;  %v2491_v31 = vld [vmem:[#allocation12 + $0x18] sm:$0xff] }
 0xa18   :  { %2572 = vmatprep.subr.mxu0 %v2509_v6  ;;  %2643 = vmatprep.subr.mxu1 %v2511_v9  ;;  %v2488_v32 = vld [vmem:[#allocation12] sm:$0xff]  ;;  %v2490_v33 = vld [vmem:[#allocation12 + $0x10] sm:$0xff] }
 0xa19   :  { %2573 = vmatpush1.msra.mxu0 %v2508_v7  ;;  %2644 = vmatpush1.msra.mxu1 %v2510_v10  ;;  %v2486_v46 = vld [vmem:[#allocation2 + $0x7] ss:$8 sm:$0xf]  ;;  %v2734_v55 = vld [vmem:[#allocation4] sm:$0x1] }
 0xa1a   :  { %2574 = vmatprep.subr.mxu0 %v2505_v13  ;;  %2645 = vmatprep.subr.mxu1 %v2507_v14 }
 0xa1b   :  { %2575 = vmatpush1.msra.mxu0 %v2504_v15  ;;  %2646 = vmatpush1.msra.mxu1 %v2506_v16 }
 0xa1c   :  { %2576 = vmatprep.subr.mxu0 %v2501_v18  ;;  %2647 = vmatprep.subr.mxu1 %v2503_v20 }
 0xa1d   :  { %2577 = vmatpush1.msra.mxu0 %v2500_v19  ;;  %2648 = vmatpush1.msra.mxu1 %v2502_v21 }
 0xa1e   :  { %2578 = vmatprep.subr.mxu0 %v2497_v22  ;;  %2649 = vmatprep.subr.mxu1 %v2499_v23 }
 0xa1f   :  { %2579 = vmatpush1.msra.mxu0 %v2496_v24  ;;  %2650 = vmatpush1.msra.mxu1 %v2498_v25 }
 0xa20   :  { %2580 = vmatprep.subr.mxu0 %v2493_v26  ;;  %2651 = vmatprep.subr.mxu1 %v2495_v27 }
 0xa21   :  { %2581 = vmatpush1.msra.mxu0 %v2492_v29  ;;  %2652 = vmatpush1.msra.mxu1 %v2494_v28  ;;  %v2985_v35 = vpop.eup %2984 }
 0xa22   :  { %2582 = vmatprep.subr.mxu0 %v2489_v30  ;;  %2653 = vmatprep.subr.mxu1 %v2491_v31  ;;  %v2481_v36 = vmul.f32 %v2985_v35, %v2479_v34 }
 0xa23   :  { %2583 = vmatpush1.msra.mxu0 %v2488_v32  ;;  %2654 = vmatpush1.msra.mxu1 %v2490_v33 }
 0xa24   :  { %2482 = vst [vmem:[#allocation3] sm:$0x1] %v2481_v36  ;;  %2483 = vst [vmem:[#allocation18 + $0x6] sm:$0x1] %v2481_v36 }
 0xa2b   :  { %v2487_v39 = vld [vmem:[#allocation3] sm:$0x1] }
 0xa2c   :  { %2617 = vmatmul.mubr.f32.vlgmr.msra.gmra.mxu0 %v2487_v39  ;;  %2688 = vmatmul.mubr.f32.vlgmr.msra.gmra.mxu1 %v2487_v39 }
 0xaec   :  { %v2618_v37 = vpop.f32.mrf.mxu0  ;;  %v2689_v40 = vpop.f32.mrf.mxu1 }
 0xaee   :  { %v2620_v41 = vpop.f32.mrf.mxu0  ;;  %v2691_v42 = vpop.f32.mrf.mxu1 }
 0xaef   :  { %v2698_v43 = vcombine.low %v2618_v37, %v2620_v41  ;;  %v2699_v8 = vcombine.low %v2689_v40, %v2691_v42 }
 0xaf1   :  { %v2706_v44 = vrot.slane %v2698_v43, %v3300_v38  ;;  %v2713_v45 = vrot.slane %v2699_v8, %v3300_v38 }
 0xaf3   :  { %v2714_v47 = vcombine.low %v2706_v44, %v2713_v45 }
 0xaf5   :  { %v2721_v48 = vrot.slane %v2714_v47, %v3300_v38 }
 0xaf7   :  { %v2723_v49 = vadd.f32 %v2721_v48, %v2486_v46 }
 0xaf9   :  { %v2861_v50 = vmul.f32 -1.442695, %v2723_v49  ;;  %v2731_v54 = vrot.slane %v2723_v49, 3 }
 0xafb   :  { %2986 = vpow2.f32 %v2861_v50 }
 0xb08   :  { %v2987_v51 = vpop.eup %2986 }
 0xb09   :  { %v2727_v52 = vadd.f32 1.0, %v2987_v51 }
 0xb0b   :  { %2988 = vrcp.f32 %v2727_v52 }
 0xb0c   :  { %2990 = vtanh.f32 %v2731_v54 }
 0xb18   :  { %v3417_v53 = vpop.eup %2988 }
 0xb19   :  { %v2737_v56 = vrot.slane %v3417_v53, 1  ;;  %v2991_v57 = vpop.eup %2990  ;;  %v2735_v58 = vmul.f32 %v3417_v53, %v2734_v55 }
 0xb1b   :  { %v2739_v59 = vmul.f32 %v2991_v57, %v2737_v56  ;;  %2746 = sbr.rel (%p2863_p0) target bundleno = 2916 (0xb64), region = 97 }
 0xb1d   :  { %v2740_v60 = vadd.f32 %v2739_v59, %v2735_v58 }
 0xb1f   :  { %2741 = vst [vmem:[#allocation4] sm:$0x1] %v2740_v60 }
 0xb20   :  { %v2748_v38 = vld [vmem:[#allocation15 + $0x38] sm:$0xff]  ;;  %v2753_v61 = vstv %s3412_s14 }
 0xb21   :  { %vm2754_vm8 = vcmp.lt.s32.totalorder %v3290_v11, %v2753_v61  ;;  %v2750_v14 = vld [vmem:[#allocation14 + $0x38] sm:$0xff] }
 0xb22   :  { %v2755_v63 = vsel %vm2754_vm8, %v2748_v38, -inf }
 0xb23   :  { %v2756_v62 = vrot.slane %v2755_v63, 4 }
 0xb25   :  { %v2757_v0 = vmax.f32 %v2755_v63, %v2756_v62 }
 0xb27   :  { %v2758_v1 = vrot.slane %v2757_v0, 2 }
 0xb29   :  { %v2759_v2 = vmax.f32 %v2757_v0, %v2758_v1 }
 0xb2b   :  { %v2760_v3 = vrot.slane %v2759_v2, 1 }
 0xb2d   :  { %v2761_v4 = vmax.f32 %v2759_v2, %v2760_v3 }
 0xb2f   :  { %v2762_v5 = vmax.f32 %v2737_v56, %v2761_v4 }
 0xb31   :  { %v2770_v6 = vrot.slane %v2762_v5, %v3293_v12  ;;  %v2763_v10 = vsub.f32 %v2737_v56, %v2762_v5 }
 0xb33   :  { %v2772_v9 = vsub.f32 %v2755_v63, %v2770_v6  ;;  %v2764_v13 = vmul.f32 1.442695, %v2763_v10 }
 0xb35   :  { %v2773_v7 = vmul.f32 1.442695, %v2772_v9 }
 0xb37   :  { %2992 = vpow2.f32 %v2773_v7 }
 0xb38   :  { %2994 = vpow2.f32 %v2764_v13 }
 0xb44   :  { %v2993_v15 = vpop.eup %2992 }
 0xb45   :  { %v2775_v16 = vrot.slane %v2993_v15, 4  ;;  %v2783_v11 = vmul.f32 %v2993_v15, %v2750_v14  ;;  %v2995_v24 = vpop.eup %2994 }
 0xb46   :  { %v2782_v29 = vmul.f32 %v2995_v24, %v2991_v57 }
 0xb47   :  { %v2776_v17 = vadd.f32 %v2993_v15, %v2775_v16  ;;  %v2784_v18 = vrot.slane %v2783_v11, 4 }
 0xb49   :  { %v2777_v20 = vrot.slane %v2776_v17, 2  ;;  %v2785_v19 = vadd.f32 %v2784_v18, %v2783_v11 }
 0xb4b   :  { %v2778_v21 = vadd.f32 %v2777_v20, %v2776_v17  ;;  %v2786_v23 = vrot.slane %v2785_v19, 2 }
 0xb4d   :  { %v2779_v22 = vrot.slane %v2778_v21, 1  ;;  %v2787_v26 = vadd.f32 %v2786_v23, %v2785_v19 }
 0xb4f   :  { %v2780_v25 = vadd.f32 %v2779_v22, %v2778_v21  ;;  %v2788_v27 = vrot.slane %v2787_v26, 1 }
 0xb51   :  { %v2781_v12 = vadd.f32 %v2995_v24, %v2780_v25  ;;  %v2789_v28 = vadd.f32 %v2788_v27, %v2787_v26 }
 0xb53   :  { %2996 = vrcp.f32 %v2781_v12  ;;  %v2790_v30 = vadd.f32 %v2789_v28, %v2782_v29 }
 0xb60   :  { %v2997_v31 = vpop.eup %2996 }
 0xb61   :  { %v2792_v32 = vmul.f32 %v2997_v31, %v2790_v30 }
 0xb63   :  { %2793 = vst [vmem:[#allocation4] sm:$0x1] %v2792_v32 }
 0xb64 PF:  { %s3202_s15 = smov [#allocation19]  }
 0xb65   :  { %s2818_s16 = sshll.u32 %s3202_s15, 4  ;;  %s2819_s16 = int_to_ptr.vmem [resolvable:$true] %s2818_s16 }
 0xb66   :  { %s3132_s17 = scalar_lea.vmem %s2819_s16, 128  ;;  %p3137_p2 = scmp.lt.s32.totalorder %s2819_s16, %s2819_s16 }
 0xb67   :  { %p3133_p1 = scmp.ne.s32.totalorder %s2819_s16, %s3132_s17  ;;  %p3138_p3 = scmp.lt.s32.totalorder %s3132_s17, %s3132_s17 }
 0xb69   :  { %p3139_p4 = por %p3138_p3, %p3137_p2 }
 0xb6a   :  { %v2794_v33 = vld [vmem:[#allocation4] sm:$0x1] }
 0xb6b   :  { %2998 = vtanh.f32 %v2794_v33  ;;  %2801 = vst [vmem:[#allocation19 + $0x7] sm:$0x1] %v2794_v33  ;;  %p3140_p5 = pnand %p3139_p4, %p3133_p1 }
 0xb6d   :  { %3143 = shalt.err (!%p3140_p5)
}
 0xb6e   :  { %2821 = dma.vmem_to_hbm [thread:$0]  %s2819_s16, 128, %s3442_s10, [#allocation20]   ;;  %v2796_v34 = vrot.slane %v3417_v53, 2 }
 0xb6f   :  { %s3203_s19 = smov [#allocation18]  }
 0xb70   :  { %s2808_s20 = sshll.u32 %s3203_s19, 4  ;;  %s2809_s20 = int_to_ptr.vmem [resolvable:$true] %s2808_s20 }
 0xb71   :  { %s3152_s21 = scalar_lea.vmem %s2809_s20, 128  ;;  %p3157_p7 = scmp.lt.s32.totalorder %s2809_s20, %s2809_s20 }
 0xb72   :  { %p3153_p6 = scmp.ne.s32.totalorder %s2809_s20, %s3152_s21  ;;  %p3158_p8 = scmp.lt.s32.totalorder %s3152_s21, %s3152_s21 }
 0xb74   :  { %p3159_p9 = por %p3158_p8, %p3157_p7 }
 0xb76   :  { %p3160_p10 = pnand %p3159_p9, %p3153_p6 }
 0xb78   :  { %v2999_v35 = vpop.eup %2998 }
 0xb79   :  { %v2798_v36 = vmul.f32 %v2999_v35, %v2796_v34 }
 0xb7b   :  { %2800 = vst [vmem:[#allocation18 + $0x7] sm:$0x1] %v2798_v36  ;;  %2799 = vst [vmem:[#allocation3] sm:$0x1] %v2798_v36 }
 0xb7c   :  { %3163 = shalt.err (!%p3160_p10)
}
 0xb7d   :  { %2811 = dma.vmem_to_hbm [thread:$0]  %s2809_s20, 128, %s3441_s9, [#allocation7]  }
 0xb7e   :  { %3182 = dma.done.wait [#allocation7], 128  }
 0xb7f   :  { %3183 = vsyncadd [#allocation7], 4294967168 }
 0xb80   :  { %3184 = dma.done.wait [#allocation20], 128  }
 0xb81   :  { %3185 = vsyncadd [#allocation20], 4294967168 }
 0xb82   :  { %2828 = vsyncpa [#allocation6], 1 }
 0xb83   :  { %2829 = vsyncpa [#allocation10], 1 }
 0xb84   :  { %2830 = vsyncpa [#allocation13], 1 }
 0xb85   :  { %2831 = vsyncpa [#allocation16], 1 }
 0xb86   :  { %2832 = vsyncpa [#allocation7], 1 }
 0xb87   :  { %2833 = vsyncpa [#allocation20], 1 }
 0xb88   :  { %2834 = vsyncpa [#allocation8], 1 }

</bundles_post_ra>
